<compile_context>
chip_gen: v6e
topology: v6e:2x2x1
jax: 0.10.0
libtpu: 0.0.40
codegen_flags: <defaults>
</compile_context>

<pallas_src>
import functools

import jax
import jax.numpy as jnp
from jax.experimental import pallas as pl
from jax.experimental.pallas import tpu as pltpu


def _bn_kernel(x_ref, gamma_ref, beta_ref, o_ref, *, eps, inv_count):
    # x_ref: (N, TC, HW) block — channels on sublanes, spatial on lanes.
    # Stats accumulate in f32 regardless of the I/O dtype.
    x = x_ref[...].astype(jnp.float32)

    # Two-pass statistics: mean, then E[(x - mean)^2].  Numerically safer than
    # E[x^2] - E[x]^2 and the second pass is ~free on the VMEM-resident block.
    mean = jnp.sum(x, axis=(0, 2), keepdims=True) * inv_count       # (1, TC, 1)
    centered = x - mean
    var = jnp.sum(centered * centered, axis=(0, 2), keepdims=True) * inv_count
    inv_std = jax.lax.rsqrt(var + eps)                              # (1, TC, 1)

    # Fused normalize + affine: one multiply + one add per element.
    scale = gamma_ref[...].astype(jnp.float32) * inv_std            # (1, TC, 1)
    o_ref[...] = (centered * scale
                  + beta_ref[...].astype(jnp.float32)).astype(o_ref.dtype)


def _pick_channel_tile(c, n, hw, dtype_bytes, *, max_block_bytes=8 << 20,
                       max_tc=512):
    """Pick a channel tile that is a multiple of 8 (sublane rule), keeps one
    (N, TC, HW) in+out block pair under the byte budget, and — when channels
    allow — yields at least 2 grid blocks so the "parallel" axis can shard
    across both v7x TensorCores.  Returns (tile, padded_c)."""
    row_bytes = max(1, n * hw * dtype_bytes)
    budget = int(max(8, min(c, max_tc, max_block_bytes // (2 * row_bytes))))
    if c >= 16:
        budget = min(budget, -(-c // 2))   # prefer >= 2 grid steps (megacore)
    budget = max(budget - budget % 8, 8)
    for t in range(budget, 7, -8):
        if c % t == 0:
            return t, c
    # No exact divisor fits the budget: pad channels to a multiple of the
    # budget-sized tile instead of one giant all-channel block (VMEM cliff).
    t = budget
    padded_c = -(-c // t) * t
    return t, padded_c


def batchnorm2d(x_nchw, gamma, beta, *, eps=1e-3):
    """Training-mode BatchNorm2d forward (batch stats over N, H, W per channel)."""
    n, c, h, w = x_nchw.shape
    hw = h * w
    dtype = x_nchw.dtype
    dtype_bytes = jnp.dtype(dtype).itemsize

    # NCHW -> (N, C, H*W): free contiguous reshape; no casts in the wrapper.
    x3d = x_nchw.reshape(n, c, hw)
    gamma2d = gamma.reshape(c, 1)
    beta2d = beta.reshape(c, 1)

    tc, cp = _pick_channel_tile(c, n, hw, dtype_bytes)
    if cp != c:
        # Padded channels: x=0 -> var=0 -> rsqrt(eps) finite; gamma=1, beta=0.
        x3d = jnp.pad(x3d, ((0, 0), (0, cp - c), (0, 0)))
        gamma2d = jnp.pad(gamma2d, ((0, cp - c), (0, 0)), constant_values=1)
        beta2d = jnp.pad(beta2d, ((0, cp - c), (0, 0)))

    grid = (cp // tc,)
    inv_count = 1.0 / float(n * hw)

    nel = n * c * hw
    cost = pl.CostEstimate(
        flops=6 * nel,
        transcendentals=c,
        bytes_accessed=2 * nel * dtype_bytes + 2 * c * gamma.dtype.itemsize,
    )

    out3d = pl.pallas_call(
        functools.partial(_bn_kernel, eps=float(eps), inv_count=inv_count),
        out_shape=jax.ShapeDtypeStruct((n, cp, hw), dtype),
        grid=grid,
        in_specs=[
            pl.BlockSpec((n, tc, hw), lambda i: (0, i, 0)),
            pl.BlockSpec((tc, 1), lambda i: (i, 0)),
            pl.BlockSpec((tc, 1), lambda i: (i, 0)),
        ],
        out_specs=pl.BlockSpec((n, tc, hw), lambda i: (0, i, 0)),
        compiler_params=pltpu.CompilerParams(
            dimension_semantics=("parallel",)),
        cost_estimate=cost,
    )(x3d, gamma2d, beta2d)

    if cp != c:
        out3d = out3d[:, :c, :]
    # (N, C, H*W) -> NCHW: free reshape.
    return out3d.reshape(n, c, h, w)


if __name__ == "__main__":
    key = jax.random.PRNGKey(0)
    kx, kg, kb = jax.random.split(key, 3)
    N, C, H, W = 1, 960, 14, 14  # matches the module's fixed input shape

    # Non-zero mean stresses the variance path; module init is gamma=1, beta=0
    # but we use non-trivial affine params to exercise that code path too.
    x = jax.random.normal(kx, (N, C, H, W), dtype=jnp.float32) + 0.5
    gamma = 1.0 + 0.1 * jax.random.normal(kg, (C,), dtype=jnp.float32)
    beta = 0.1 * jax.random.normal(kb, (C,), dtype=jnp.float32)

    y = jax.block_until_ready(batchnorm2d(x, gamma, beta, eps=1e-3))

    # Reference check (pure JAX, same training-mode batch-norm semantics).
    mean = jnp.mean(x, axis=(0, 2, 3), keepdims=True)
    var = jnp.mean((x - mean) ** 2, axis=(0, 2, 3), keepdims=True)
    ref = (x - mean) * jax.lax.rsqrt(var + 1e-3) * gamma.reshape(1, C, 1, 1) \
        + beta.reshape(1, C, 1, 1)
    assert y.shape == (N, C, H, W)
    assert jnp.max(jnp.abs(y - ref)) < 1e-4

    print("KERNEL_OK")
</pallas_src>

<mosaic_0001>
module attributes {stable_mosaic.version = 11 : i64} {
  func.func @_bn_kernel(%arg0: i32, %arg1: memref<1x480x196xf32, #tpu.memory_space<vmem>>, %arg2: memref<480x1xf32, #tpu.memory_space<vmem>>, %arg3: memref<480x1xf32, #tpu.memory_space<vmem>>, %arg4: memref<1x480x196xf32, #tpu.memory_space<vmem>>) attributes {dimension_semantics = [#tpu.dimension_semantics<parallel>], iteration_bounds = array<i64: 2>, scalar_prefetch = 0 : i64, scratch_operands = 0 : i64, tpu.core_type = #tpu.core_type<tc>, window_params = [{transform_indices = @transform_0, window_bounds = array<i64: 1, 480, 196>}, {transform_indices = @transform_1, window_bounds = array<i64: 480, 1>}, {transform_indices = @transform_2, window_bounds = array<i64: 480, 1>}, {transform_indices = @transform_3, window_bounds = array<i64: 1, 480, 196>}]} {
    %c0 = arith.constant 0 : index
    %c0_0 = arith.constant 0 : index
    %c0_1 = arith.constant 0 : index
    %0 = vector.load %arg1[%c0, %c0_0, %c0_1] : memref<1x480x196xf32, #tpu.memory_space<vmem>>, vector<1x480x196xf32>
    %cst = arith.constant dense<0.000000e+00> : vector<480xf32>
    %1 = vector.multi_reduction <add>, %0, %cst [0, 2] : vector<1x480x196xf32> to vector<480xf32>
    %2 = vector.shape_cast %1 : vector<480xf32> to vector<1x480x1xf32>
    %cst_2 = arith.constant 0.00510204071 : f32
    %3 = vector.broadcast %cst_2 : f32 to vector<1x480x1xf32>
    %4 = arith.mulf %2, %3 : vector<1x480x1xf32>
    %5 = vector.broadcast %4 : vector<1x480x1xf32> to vector<1x480x196xf32>
    %6 = arith.subf %0, %5 : vector<1x480x196xf32>
    %7 = arith.mulf %6, %6 : vector<1x480x196xf32>
    %cst_3 = arith.constant dense<0.000000e+00> : vector<480xf32>
    %8 = vector.multi_reduction <add>, %7, %cst_3 [0, 2] : vector<1x480x196xf32> to vector<480xf32>
    %9 = vector.shape_cast %8 : vector<480xf32> to vector<1x480x1xf32>
    %cst_4 = arith.constant 0.00510204071 : f32
    %10 = vector.broadcast %cst_4 : f32 to vector<1x480x1xf32>
    %11 = arith.mulf %9, %10 : vector<1x480x1xf32>
    %cst_5 = arith.constant 1.000000e-03 : f32
    %12 = vector.broadcast %cst_5 : f32 to vector<1x480x1xf32>
    %13 = arith.addf %11, %12 : vector<1x480x1xf32>
    %14 = math.rsqrt %13 : vector<1x480x1xf32>
    %c0_6 = arith.constant 0 : index
    %c0_7 = arith.constant 0 : index
    %15 = vector.load %arg2[%c0_6, %c0_7] : memref<480x1xf32, #tpu.memory_space<vmem>>, vector<480x1xf32>
    %16 = vector.shape_cast %15 : vector<480x1xf32> to vector<1x480x1xf32>
    %17 = arith.mulf %16, %14 : vector<1x480x1xf32>
    %18 = vector.broadcast %17 : vector<1x480x1xf32> to vector<1x480x196xf32>
    %19 = arith.mulf %6, %18 : vector<1x480x196xf32>
    %c0_8 = arith.constant 0 : index
    %c0_9 = arith.constant 0 : index
    %20 = vector.load %arg3[%c0_8, %c0_9] : memref<480x1xf32, #tpu.memory_space<vmem>>, vector<480x1xf32>
    %21 = vector.shape_cast %20 : vector<480x1xf32> to vector<1x480x1xf32>
    %22 = vector.broadcast %21 : vector<1x480x1xf32> to vector<1x480x196xf32>
    %23 = arith.addf %19, %22 : vector<1x480x196xf32>
    %c0_10 = arith.constant 0 : index
    %c0_11 = arith.constant 0 : index
    %c0_12 = arith.constant 0 : index
    %24 = vector.load %arg4[%c0_10, %c0_11, %c0_12] : memref<1x480x196xf32, #tpu.memory_space<vmem>>, vector<1x480x196xf32>
    tpu.vector_store %arg4[%c0_10, %c0_11, %c0_12], %23 {strides = array<i32>} : memref<1x480x196xf32, #tpu.memory_space<vmem>>, vector<1x480x196xf32>,
    return
  }
  func.func @transform_0(%arg0: i32) -> (i32, i32, i32) {
    %c0_i32 = arith.constant 0 : i32
    %c0_i32_0 = arith.constant 0 : i32
    %c0_i32_1 = arith.constant 0 : i32
    return %c0_i32, %arg0, %c0_i32_0 : i32, i32, i32
  }
  func.func @transform_1(%arg0: i32) -> (i32, i32) {
    %c0_i32 = arith.constant 0 : i32
    %c0_i32_0 = arith.constant 0 : i32
    return %arg0, %c0_i32 : i32, i32
  }
  func.func @transform_2(%arg0: i32) -> (i32, i32) {
    %c0_i32 = arith.constant 0 : i32
    %c0_i32_0 = arith.constant 0 : i32
    return %arg0, %c0_i32 : i32, i32
  }
  func.func @transform_3(%arg0: i32) -> (i32, i32, i32) {
    %c0_i32 = arith.constant 0 : i32
    %c0_i32_0 = arith.constant 0 : i32
    %c0_i32_1 = arith.constant 0 : i32
    return %c0_i32, %arg0, %c0_i32_0 : i32, i32, i32
  }
}

</mosaic_0001>

<bundles_post_ra>
// kernel: tpu_custom_call.1
= control target key start
LH: loop header
LB: loop body
LE: loop exit
PB: predicated region body
PF: predicated region fallthrough
CT: control target
= control target key end

     0   :  { %s2715_s12 = smov 0   ;;  %s4576_s0 = inlined_call_operand.vmem [shape: f32[1,960,196], index: 0, kind: input, shape index: {}]   ;;  %s4577_s1 = inlined_call_operand.vmem [shape: f32[960,1], index: 1, kind: input, shape index: {}]   ;;  %s4578_s2 = inlined_call_operand.vmem [shape: f32[960,1], index: 2, kind: input, shape index: {}]   ;;  %s4579_s3 = inlined_call_operand.vmem [shape: f32[1,960,196], index: 3, kind: output, shape index: {}]  }
   0x1 LB: > { %s2526_s13 = sadd.s32 4294967295, %s2692_s12   ;;  %p2530_p0 = scmp.ge.s32.totalorder %s2692_s12, 1  ;;  %s2692_s12 = sphi %s2715_s12, %s13_s12  }
   0x2   : > { %p161_p1 = scmp.lt.s32.totalorder %s2692_s12, 3 }
   0x4   : > { %p162_p2 = pnand %p2530_p0, %p161_p1 }
   0x6   : > { %165 = sbr.rel (%p162_p2) target bundleno = 706 (0x2c2), region = 32 }
   0xb   : > { %s197_s14 = smul.u32 60, %s2526_s13  ;;  %vm343_vm0 = vcmask 556032  }
   0xd   : > { %p198_p3 = scmp.lt.s32.totalorder %s197_s14, 119 }
   0xf   : > { %s5136_s14 = smov (!%p198_p3, %s197_s14), 119 }
  0x10   : > { %s2539_s15 = sshll.u32 %s5136_s14, 4  ;;  %s2533_s19 = sshll.u32 %s5136_s14, 3 }
  0x11   : > { %s2731_s18 = scalar_lea.vmem %s4576_s0, %s2539_s15  ;;  %s3897_s22 = scalar_lea.vmem %s4577_s1, %s2533_s19 }
  0x12   : > { %v2734_v0 = vld [vmem:[%s2731_s18] sm:$0xff]  ;;  %v2737_v1 = vld [vmem:[%s2731_s18 + $0x8] sm:$0xff]  ;;  %v2748_v5 = vld [vmem:[%s2731_s18 + $0x10] sm:$0xff]  ;;  %s3962_s25 = scalar_lea.vmem %s4578_s2, %s2533_s19  ;;  %s4148_s28 = scalar_lea.vmem %s4579_s3, %s2539_s15 }
  0x13   : > { %v2740_v2 = vld [vmem:[%s2731_s18 + $0x20] sm:$0xff]  ;;  %v344_v3 = vsel %vm343_vm0, %v2737_v1, 0.0  ;;  %v2745_v4 = vld [vmem:[%s2731_s18 + $0x28] sm:$0xff]  ;;  %v2751_v6 = vld [vmem:[%s2731_s18 + $0x18] sm:$0xff] }
  0x14   : > { %v345_v7 = vadd.f32 %v344_v3, %v2734_v0  ;;  %v352_v8 = vsel %vm343_vm0, %v2745_v4, 0.0  ;;  %v348_v9 = vsel %vm343_vm0, %v2751_v6, 0.0  ;;  %v2759_v10 = vld [vmem:[%s2731_s18 + $0x30] sm:$0xff]  ;;  %v2762_v11 = vld [vmem:[%s2731_s18 + $0x38] sm:$0xff]  ;;  %v2771_v15 = vld [vmem:[%s2731_s18 + $0x48] sm:$0xff] }
  0x15   : > { %v353_v12 = vadd.f32 %v352_v8, %v2740_v2  ;;  %v356_v13 = vsel %vm343_vm0, %v2762_v11, 0.0  ;;  %v2768_v14 = vld [vmem:[%s2731_s18 + $0x58] sm:$0xff]  ;;  %v349_v16 = vadd.f32 %v348_v9, %v2748_v5  ;;  %v2776_v18 = vld [vmem:[%s2731_s18 + $0x40] sm:$0xff]  ;;  %v360_v19 = vsel %vm343_vm0, %v2771_v15, 0.0  ;;  %v2781_v20 = vld [vmem:[%s2731_s18 + $0x50] sm:$0xff] }
  0x16   : > { %346 = vadd.xlane.f32.xlu0 %v345_v7  ;;  %v357_v17 = vadd.f32 %v356_v13, %v2759_v10  ;;  %v364_v21 = vsel %vm343_vm0, %v2768_v14, 0.0  ;;  %v2786_v22 = vld [vmem:[%s2731_s18 + $0x68] sm:$0xff]  ;;  %v2789_v23 = vld [vmem:[%s2731_s18 + $0x78] sm:$0xff]  ;;  %v361_v24 = vadd.f32 %v360_v19, %v2776_v18  ;;  %v2794_v26 = vld [vmem:[%s2731_s18 + $0x60] sm:$0xff] }
  0x17   : > { %354 = vadd.xlane.f32.xlu1 %v353_v12  ;;  %v365_v25 = vadd.f32 %v364_v21, %v2781_v20  ;;  %v368_v27 = vsel %vm343_vm0, %v2786_v22, 0.0  ;;  %v2799_v28 = vld [vmem:[%s2731_s18 + $0x70] sm:$0xff]  ;;  %v372_v29 = vsel %vm343_vm0, %v2789_v23, 0.0  ;;  %v2804_v30 = vld [vmem:[%s2731_s18 + $0x88] sm:$0xff]  ;;  %v2807_v31 = vld [vmem:[%s2731_s18 + $0x98] sm:$0xff] }
  0x18   : > { %v369_v32 = vadd.f32 %v368_v27, %v2794_v26  ;;  %v373_v33 = vadd.f32 %v372_v29, %v2799_v28  ;;  %v2812_v34 = vld [vmem:[%s2731_s18 + $0x80] sm:$0xff]  ;;  %v376_v35 = vsel %vm343_vm0, %v2804_v30, 0.0  ;;  %v2817_v36 = vld [vmem:[%s2731_s18 + $0x90] sm:$0xff]  ;;  %v380_v37 = vsel %vm343_vm0, %v2807_v31, 0.0  ;;  %v2822_v38 = vld [vmem:[%s2731_s18 + $0xa8] sm:$0xff] }
  0x19   : > { %v2825_v39 = vld [vmem:[%s2731_s18 + $0xb8] sm:$0xff]  ;;  %v377_v40 = vadd.f32 %v376_v35, %v2812_v34  ;;  %v381_v41 = vadd.f32 %v380_v37, %v2817_v36  ;;  %v2830_v42 = vld [vmem:[%s2731_s18 + $0xa0] sm:$0xff]  ;;  %v384_v43 = vsel %vm343_vm0, %v2822_v38, 0.0  ;;  %v2835_v44 = vld [vmem:[%s2731_s18 + $0xb0] sm:$0xff] }
  0x1a   : > { %350 = vadd.xlane.f32.xlu0 %v349_v16  ;;  %v388_v45 = vsel %vm343_vm0, %v2825_v39, 0.0  ;;  %v2840_v46 = vld [vmem:[%s2731_s18 + $0xc8] sm:$0xff]  ;;  %v2843_v47 = vld [vmem:[%s2731_s18 + $0xd8] sm:$0xff]  ;;  %v385_v48 = vadd.f32 %v384_v43, %v2830_v42  ;;  %v2848_v50 = vld [vmem:[%s2731_s18 + $0xc0] sm:$0xff] }
  0x1b   : > { %358 = vadd.xlane.f32.xlu1 %v357_v17  ;;  %v389_v49 = vadd.f32 %v388_v45, %v2835_v44  ;;  %v392_v51 = vsel %vm343_vm0, %v2840_v46, 0.0  ;;  %v2853_v52 = vld [vmem:[%s2731_s18 + $0xd0] sm:$0xff]  ;;  %v396_v53 = vsel %vm343_vm0, %v2843_v47, 0.0  ;;  %v2858_v54 = vld [vmem:[%s2731_s18 + $0xe8] sm:$0xff]  ;;  %v2861_v55 = vld [vmem:[%s2731_s18 + $0xf8] sm:$0xff] }
  0x1c   : > { %v393_v56 = vadd.f32 %v392_v51, %v2848_v50  ;;  %v397_v57 = vadd.f32 %v396_v53, %v2853_v52  ;;  %v2866_v58 = vld [vmem:[%s2731_s18 + $0xe0] sm:$0xff]  ;;  %v400_v59 = vsel %vm343_vm0, %v2858_v54, 0.0  ;;  %v2871_v60 = vld [vmem:[%s2731_s18 + $0xf0] sm:$0xff]  ;;  %v404_v61 = vsel %vm343_vm0, %v2861_v55, 0.0  ;;  %v2876_v62 = vld [vmem:[%s2731_s18 + $0x108] sm:$0xff] }
  0x1d   : > { %v2879_v63 = vld [vmem:[%s2731_s18 + $0x118] sm:$0xff]  ;;  %v401_v3 = vadd.f32 %v400_v59, %v2866_v58  ;;  %v405_v7 = vadd.f32 %v404_v61, %v2871_v60  ;;  %v2884_v8 = vld [vmem:[%s2731_s18 + $0x100] sm:$0xff]  ;;  %v408_v9 = vsel %vm343_vm0, %v2876_v62, 0.0  ;;  %v2889_v12 = vld [vmem:[%s2731_s18 + $0x110] sm:$0xff] }
  0x1e   : > { %362 = vadd.xlane.f32.xlu0 %v361_v24  ;;  %v412_v13 = vsel %vm343_vm0, %v2879_v63, 0.0  ;;  %v2894_v16 = vld [vmem:[%s2731_s18 + $0x128] sm:$0xff]  ;;  %v2897_v17 = vld [vmem:[%s2731_s18 + $0x138] sm:$0xff]  ;;  %v409_v19 = vadd.f32 %v408_v9, %v2884_v8  ;;  %v2902_v24 = vld [vmem:[%s2731_s18 + $0x120] sm:$0xff] }
  0x1f   : > { %366 = vadd.xlane.f32.xlu1 %v365_v25  ;;  %v413_v21 = vadd.f32 %v412_v13, %v2889_v12  ;;  %v416_v25 = vsel %vm343_vm0, %v2894_v16, 0.0  ;;  %v2907_v27 = vld [vmem:[%s2731_s18 + $0x130] sm:$0xff]  ;;  %v420_v29 = vsel %vm343_vm0, %v2897_v17, 0.0 }
  0x20   : > { %v417_v35 = vadd.f32 %v416_v25, %v2902_v24  ;;  %v421_v37 = vadd.f32 %v420_v29, %v2907_v27  ;;  %v2925_v43 = vld [vmem:[%s2731_s18 + $0x150] sm:$0xff] }
  0x21   : > { %v2943_v59 = vld [vmem:[%s2731_s18 + $0x170] sm:$0xff] }
  0x22   : > { %370 = vadd.xlane.f32.xlu0 %v369_v32  ;;  %v2912_v32 = vld [vmem:[%s2731_s18 + $0x148] sm:$0xff]  ;;  %4768 = vst [vmem:[#allocation5_spill] sm:$0xff] %v2943_v59  ;;  %v2961_v25 = vld [vmem:[%s2731_s18 + $0x190] sm:$0xff] }
  0x23   : > { %374 = vadd.xlane.f32.xlu1 %v373_v33  ;;  %v2915_v33 = vld [vmem:[%s2731_s18 + $0x158] sm:$0xff]  ;;  %4772 = vst [vmem:[#allocation9_spill] sm:$0xff] %v2961_v25 }
  0x24   : > { %v428_v45 = vsel %vm343_vm0, %v2915_v33, 0.0 }
  0x25   : > { %v429_v53 = vadd.f32 %v428_v45, %v2925_v43 }
  0x26   : > { %378 = vadd.xlane.f32.xlu0 %v377_v40  ;;  %v2920_v40 = vld [vmem:[%s2731_s18 + $0x140] sm:$0xff] }
  0x27   : > { %382 = vadd.xlane.f32.xlu1 %v381_v41  ;;  %v424_v41 = vsel %vm343_vm0, %v2912_v32, 0.0 }
  0x28   : > { %v425_v51 = vadd.f32 %v424_v41, %v2920_v40 }
  0x2a   : > { %386 = vadd.xlane.f32.xlu0 %v385_v48  ;;  %v2930_v48 = vld [vmem:[%s2731_s18 + $0x168] sm:$0xff] }
  0x2b   : > { %390 = vadd.xlane.f32.xlu1 %v389_v49  ;;  %4765 = vst [vmem:[#allocation2_spill] sm:$0xff] %v2930_v48  ;;  %v2933_v49 = vld [vmem:[%s2731_s18 + $0x178] sm:$0xff] }
  0x2c   : > { %4766 = vst [vmem:[#allocation3_spill] sm:$0xff] %v2933_v49  ;;  %v436_v61 = vsel %vm343_vm0, %v2933_v49, 0.0 }
  0x2d   : > { %v437_v13 = vadd.f32 %v436_v61, %v2943_v59  ;;  %v342_v59 = vld [vmem:[%s2731_s18 + $0x3b8] sm:$0xff] }
  0x2e   : > { %394 = vadd.xlane.f32.xlu0 %v393_v56  ;;  %v2938_v56 = vld [vmem:[%s2731_s18 + $0x160] sm:$0xff] }
  0x2f   : > { %398 = vadd.xlane.f32.xlu1 %v397_v57  ;;  %4767 = vst [vmem:[#allocation4_spill] sm:$0xff] %v2938_v56  ;;  %v432_v57 = vsel %vm343_vm0, %v2930_v48, 0.0  ;;  %v339_v48 = vld [vmem:[%s2731_s18 + $0x3a0] sm:$0xff] }
  0x30   : > { %v433_v9 = vadd.f32 %v432_v57, %v2938_v56  ;;  %v2979_v57 = vld [vmem:[%s2731_s18 + $0x1b0] sm:$0xff] }
  0x31   : > { %4776 = vst [vmem:[#allocation13_spill] sm:$0xff] %v2979_v57 }
  0x32   : > { %402 = vadd.xlane.f32.xlu0 %v401_v3  ;;  %v2948_v3 = vld [vmem:[%s2731_s18 + $0x188] sm:$0xff] }
  0x33   : > { %406 = vadd.xlane.f32.xlu1 %v405_v7  ;;  %4769 = vst [vmem:[#allocation6_spill] sm:$0xff] %v2948_v3  ;;  %v2951_v7 = vld [vmem:[%s2731_s18 + $0x198] sm:$0xff] }
  0x34   : > { %4770 = vst [vmem:[#allocation7_spill] sm:$0xff] %v2951_v7  ;;  %v444_v29 = vsel %vm343_vm0, %v2951_v7, 0.0  ;;  %v2984_v7 = vld [vmem:[%s2731_s18 + $0x1c8] sm:$0xff] }
  0x35   : > { %v445_v45 = vadd.f32 %v444_v29, %v2961_v25  ;;  %4777 = vst [vmem:[#allocation14_spill] sm:$0xff] %v2984_v7  ;;  %v2992_v29 = vld [vmem:[%s2731_s18 + $0x1c0] sm:$0xff] }
  0x36   : > { %410 = vadd.xlane.f32.xlu0 %v409_v19  ;;  %v2956_v19 = vld [vmem:[%s2731_s18 + $0x180] sm:$0xff]  ;;  %4779 = vst [vmem:[#allocation16_spill] sm:$0xff] %v2992_v29 }
  0x37   : > { %414 = vadd.xlane.f32.xlu1 %v413_v21  ;;  %4771 = vst [vmem:[#allocation8_spill] sm:$0xff] %v2956_v19  ;;  %v440_v21 = vsel %vm343_vm0, %v2948_v3, 0.0  ;;  %v3002_v3 = vld [vmem:[%s2731_s18 + $0x1e8] sm:$0xff] }
  0x38   : > { %v441_v41 = vadd.f32 %v440_v21, %v2956_v19  ;;  %4781 = vst [vmem:[#allocation18_spill] sm:$0xff] %v3002_v3  ;;  %v334_v19 = vld [vmem:[%s2731_s18 + $0x378] sm:$0xff] }
  0x3a   : > { %418 = vadd.xlane.f32.xlu0 %v417_v35  ;;  %v2966_v35 = vld [vmem:[%s2731_s18 + $0x1a8] sm:$0xff] }
  0x3b   : > { %422 = vadd.xlane.f32.xlu1 %v421_v37  ;;  %4773 = vst [vmem:[#allocation10_spill] sm:$0xff] %v2966_v35  ;;  %v2969_v37 = vld [vmem:[%s2731_s18 + $0x1b8] sm:$0xff] }
  0x3c   : > { %4774 = vst [vmem:[#allocation11_spill] sm:$0xff] %v2969_v37  ;;  %v452_v61 = vsel %vm343_vm0, %v2969_v37, 0.0  ;;  %v2997_v37 = vld [vmem:[%s2731_s18 + $0x1d0] sm:$0xff] }
  0x3d   : > { %v453_v21 = vadd.f32 %v452_v61, %v2979_v57  ;;  %4780 = vst [vmem:[#allocation17_spill] sm:$0xff] %v2997_v37  ;;  %v3010_v61 = vld [vmem:[%s2731_s18 + $0x1e0] sm:$0xff] }
  0x3e   : > { %426 = vadd.xlane.f32.xlu0 %v425_v51  ;;  %v2974_v51 = vld [vmem:[%s2731_s18 + $0x1a0] sm:$0xff]  ;;  %4783 = vst [vmem:[#allocation20_spill] sm:$0xff] %v3010_v61 }
  0x3f   : > { %430 = vadd.xlane.f32.xlu1 %v429_v53  ;;  %4775 = vst [vmem:[#allocation12_spill] sm:$0xff] %v2974_v51  ;;  %v448_v53 = vsel %vm343_vm0, %v2966_v35, 0.0  ;;  %v456_v35 = vsel %vm343_vm0, %v2984_v7, 0.0  ;;  %v464_v7 = vsel %vm343_vm0, %v3002_v3, 0.0 }
  0x42   : > { %434 = vadd.xlane.f32.xlu0 %v433_v9  ;;  %v2987_v9 = vld [vmem:[%s2731_s18 + $0x1d8] sm:$0xff] }
  0x43   : > { %438 = vadd.xlane.f32.xlu1 %v437_v13  ;;  %4778 = vst [vmem:[#allocation15_spill] sm:$0xff] %v2987_v9  ;;  %v449_v13 = vadd.f32 %v448_v53, %v2974_v51  ;;  %v460_v25 = vsel %vm343_vm0, %v2987_v9, 0.0  ;;  %v3015_v9 = vld [vmem:[%s2731_s18 + $0x1f0] sm:$0xff]  ;;  %v3020_v51 = vld [vmem:[%s2731_s18 + $0x208] sm:$0xff] }
  0x44   : > { %v461_v53 = vadd.f32 %v460_v25, %v2997_v37  ;;  %4784 = vst [vmem:[#allocation21_spill] sm:$0xff] %v3015_v9  ;;  %4785 = vst [vmem:[#allocation22_spill] sm:$0xff] %v3020_v51  ;;  %v465_v25 = vadd.f32 %v464_v7, %v3010_v61  ;;  %v472_v3 = vsel %vm343_vm0, %v3020_v51, 0.0  ;;  %v3056_v61 = vld [vmem:[%s2731_s18 + $0x248] sm:$0xff] }
  0x45   : > { %4793 = vst [vmem:[#allocation30_spill] sm:$0xff] %v3056_v61 }
  0x46   : > { %442 = vadd.xlane.f32.xlu0 %v441_v41  ;;  %v3005_v41 = vld [vmem:[%s2731_s18 + $0x1f8] sm:$0xff] }
  0x47   : > { %446 = vadd.xlane.f32.xlu1 %v445_v45  ;;  %4782 = vst [vmem:[#allocation19_spill] sm:$0xff] %v3005_v41  ;;  %v457_v45 = vadd.f32 %v456_v35, %v2992_v29  ;;  %v468_v57 = vsel %vm343_vm0, %v3005_v41, 0.0  ;;  %v3033_v41 = vld [vmem:[%s2731_s18 + $0x210] sm:$0xff]  ;;  %v3038_v29 = vld [vmem:[%s2731_s18 + $0x228] sm:$0xff] }
  0x48   : > { %v469_v35 = vadd.f32 %v468_v57, %v3015_v9  ;;  %4788 = vst [vmem:[#allocation25_spill] sm:$0xff] %v3033_v41  ;;  %4789 = vst [vmem:[#allocation26_spill] sm:$0xff] %v3038_v29  ;;  %v480_v51 = vsel %vm343_vm0, %v3038_v29, 0.0  ;;  %v488_v29 = vsel %vm343_vm0, %v3056_v61, 0.0 }
  0x4a   : > { %450 = vadd.xlane.f32.xlu0 %v449_v13  ;;  %v3023_v13 = vld [vmem:[%s2731_s18 + $0x218] sm:$0xff] }
  0x4b   : > { %454 = vadd.xlane.f32.xlu1 %v453_v21  ;;  %4786 = vst [vmem:[#allocation23_spill] sm:$0xff] %v3023_v13  ;;  %v3028_v21 = vld [vmem:[%s2731_s18 + $0x200] sm:$0xff]  ;;  %v476_v37 = vsel %vm343_vm0, %v3023_v13, 0.0  ;;  %v3051_v13 = vld [vmem:[%s2731_s18 + $0x230] sm:$0xff] }
  0x4c   : > { %4787 = vst [vmem:[#allocation24_spill] sm:$0xff] %v3028_v21  ;;  %v473_v7 = vadd.f32 %v472_v3, %v3028_v21  ;;  %v477_v57 = vadd.f32 %v476_v37, %v3033_v41  ;;  %4792 = vst [vmem:[#allocation29_spill] sm:$0xff] %v3051_v13  ;;  %v3074_v21 = vld [vmem:[%s2731_s18 + $0x268] sm:$0xff] }
  0x4d   : > { %4797 = vst [vmem:[#allocation34_spill] sm:$0xff] %v3074_v21  ;;  %v496_v61 = vsel %vm343_vm0, %v3074_v21, 0.0 }
  0x4e   : > { %458 = vadd.xlane.f32.xlu0 %v457_v45  ;;  %v3041_v45 = vld [vmem:[%s2731_s18 + $0x238] sm:$0xff] }
  0x4f   : > { %462 = vadd.xlane.f32.xlu1 %v461_v53  ;;  %4790 = vst [vmem:[#allocation27_spill] sm:$0xff] %v3041_v45  ;;  %v3046_v53 = vld [vmem:[%s2731_s18 + $0x220] sm:$0xff]  ;;  %v484_v9 = vsel %vm343_vm0, %v3041_v45, 0.0  ;;  %v3069_v45 = vld [vmem:[%s2731_s18 + $0x250] sm:$0xff] }
  0x50   : > { %4791 = vst [vmem:[#allocation28_spill] sm:$0xff] %v3046_v53  ;;  %v481_v3 = vadd.f32 %v480_v51, %v3046_v53  ;;  %v485_v37 = vadd.f32 %v484_v9, %v3051_v13  ;;  %4796 = vst [vmem:[#allocation33_spill] sm:$0xff] %v3069_v45  ;;  %v3092_v53 = vld [vmem:[%s2731_s18 + $0x288] sm:$0xff] }
  0x51   : > { %4801 = vst [vmem:[#allocation38_spill] sm:$0xff] %v3092_v53  ;;  %v504_v21 = vsel %vm343_vm0, %v3092_v53, 0.0 }
  0x52   : > { %466 = vadd.xlane.f32.xlu0 %v465_v25  ;;  %v3059_v25 = vld [vmem:[%s2731_s18 + $0x258] sm:$0xff] }
  0x53   : > { %470 = vadd.xlane.f32.xlu1 %v469_v35  ;;  %4794 = vst [vmem:[#allocation31_spill] sm:$0xff] %v3059_v25  ;;  %v3064_v35 = vld [vmem:[%s2731_s18 + $0x240] sm:$0xff]  ;;  %v492_v41 = vsel %vm343_vm0, %v3059_v25, 0.0  ;;  %v3087_v25 = vld [vmem:[%s2731_s18 + $0x270] sm:$0xff] }
  0x54   : > { %4795 = vst [vmem:[#allocation32_spill] sm:$0xff] %v3064_v35  ;;  %v489_v51 = vadd.f32 %v488_v29, %v3064_v35  ;;  %v493_v9 = vadd.f32 %v492_v41, %v3069_v45  ;;  %4800 = vst [vmem:[#allocation37_spill] sm:$0xff] %v3087_v25  ;;  %v3110_v35 = vld [vmem:[%s2731_s18 + $0x2a8] sm:$0xff] }
  0x55   : > { %4805 = vst [vmem:[#allocation42_spill] sm:$0xff] %v3110_v35  ;;  %v512_v53 = vsel %vm343_vm0, %v3110_v35, 0.0 }
  0x56   : > { %474 = vadd.xlane.f32.xlu0 %v473_v7  ;;  %v3077_v7 = vld [vmem:[%s2731_s18 + $0x278] sm:$0xff] }
  0x57   : > { %478 = vadd.xlane.f32.xlu1 %v477_v57  ;;  %4798 = vst [vmem:[#allocation35_spill] sm:$0xff] %v3077_v7  ;;  %v3082_v57 = vld [vmem:[%s2731_s18 + $0x260] sm:$0xff]  ;;  %v500_v13 = vsel %vm343_vm0, %v3077_v7, 0.0  ;;  %v3105_v7 = vld [vmem:[%s2731_s18 + $0x290] sm:$0xff] }
  0x58   : > { %4799 = vst [vmem:[#allocation36_spill] sm:$0xff] %v3082_v57  ;;  %v497_v29 = vadd.f32 %v496_v61, %v3082_v57  ;;  %v501_v41 = vadd.f32 %v500_v13, %v3087_v25  ;;  %4804 = vst [vmem:[#allocation41_spill] sm:$0xff] %v3105_v7  ;;  %v3128_v57 = vld [vmem:[%s2731_s18 + $0x2c8] sm:$0xff] }
  0x59   : > { %4809 = vst [vmem:[#allocation46_spill] sm:$0xff] %v3128_v57  ;;  %v520_v35 = vsel %vm343_vm0, %v3128_v57, 0.0 }
  0x5a   : > { %482 = vadd.xlane.f32.xlu0 %v481_v3  ;;  %v3095_v3 = vld [vmem:[%s2731_s18 + $0x298] sm:$0xff] }
  0x5b   : > { %486 = vadd.xlane.f32.xlu1 %v485_v37  ;;  %4802 = vst [vmem:[#allocation39_spill] sm:$0xff] %v3095_v3  ;;  %v3100_v37 = vld [vmem:[%s2731_s18 + $0x280] sm:$0xff]  ;;  %v508_v45 = vsel %vm343_vm0, %v3095_v3, 0.0  ;;  %v3123_v3 = vld [vmem:[%s2731_s18 + $0x2b0] sm:$0xff] }
  0x5c   : > { %4803 = vst [vmem:[#allocation40_spill] sm:$0xff] %v3100_v37  ;;  %v505_v61 = vadd.f32 %v504_v21, %v3100_v37  ;;  %v509_v13 = vadd.f32 %v508_v45, %v3105_v7  ;;  %4808 = vst [vmem:[#allocation45_spill] sm:$0xff] %v3123_v3  ;;  %v3146_v37 = vld [vmem:[%s2731_s18 + $0x2e8] sm:$0xff] }
  0x5d   : > { %4813 = vst [vmem:[#allocation50_spill] sm:$0xff] %v3146_v37  ;;  %v528_v57 = vsel %vm343_vm0, %v3146_v37, 0.0 }
  0x5e   : > { %490 = vadd.xlane.f32.xlu0 %v489_v51  ;;  %v3113_v51 = vld [vmem:[%s2731_s18 + $0x2b8] sm:$0xff] }
  0x5f   : > { %494 = vadd.xlane.f32.xlu1 %v493_v9  ;;  %4806 = vst [vmem:[#allocation43_spill] sm:$0xff] %v3113_v51  ;;  %v3118_v9 = vld [vmem:[%s2731_s18 + $0x2a0] sm:$0xff]  ;;  %v516_v25 = vsel %vm343_vm0, %v3113_v51, 0.0  ;;  %v3141_v51 = vld [vmem:[%s2731_s18 + $0x2d0] sm:$0xff] }
  0x60   : > { %4807 = vst [vmem:[#allocation44_spill] sm:$0xff] %v3118_v9  ;;  %v513_v21 = vadd.f32 %v512_v53, %v3118_v9  ;;  %v517_v45 = vadd.f32 %v516_v25, %v3123_v3  ;;  %4812 = vst [vmem:[#allocation49_spill] sm:$0xff] %v3141_v51  ;;  %v3164_v9 = vld [vmem:[%s2731_s18 + $0x308] sm:$0xff] }
  0x61   : > { %4817 = vst [vmem:[#allocation54_spill] sm:$0xff] %v3164_v9  ;;  %v536_v37 = vsel %vm343_vm0, %v3164_v9, 0.0 }
  0x62   : > { %498 = vadd.xlane.f32.xlu0 %v497_v29  ;;  %v3131_v29 = vld [vmem:[%s2731_s18 + $0x2d8] sm:$0xff] }
  0x63   : > { %502 = vadd.xlane.f32.xlu1 %v501_v41  ;;  %4810 = vst [vmem:[#allocation47_spill] sm:$0xff] %v3131_v29  ;;  %v3136_v41 = vld [vmem:[%s2731_s18 + $0x2c0] sm:$0xff]  ;;  %v524_v7 = vsel %vm343_vm0, %v3131_v29, 0.0  ;;  %v3159_v29 = vld [vmem:[%s2731_s18 + $0x2f0] sm:$0xff] }
  0x64   : > { %4811 = vst [vmem:[#allocation48_spill] sm:$0xff] %v3136_v41  ;;  %v521_v53 = vadd.f32 %v520_v35, %v3136_v41  ;;  %v525_v25 = vadd.f32 %v524_v7, %v3141_v51  ;;  %4816 = vst [vmem:[#allocation53_spill] sm:$0xff] %v3159_v29  ;;  %v3182_v41 = vld [vmem:[%s2731_s18 + $0x328] sm:$0xff] }
  0x65   : > { %4821 = vst [vmem:[#allocation58_spill] sm:$0xff] %v3182_v41  ;;  %v544_v9 = vsel %vm343_vm0, %v3182_v41, 0.0 }
  0x66   : > { %506 = vadd.xlane.f32.xlu0 %v505_v61  ;;  %v3149_v61 = vld [vmem:[%s2731_s18 + $0x2f8] sm:$0xff] }
  0x67   : > { %510 = vadd.xlane.f32.xlu1 %v509_v13  ;;  %4814 = vst [vmem:[#allocation51_spill] sm:$0xff] %v3149_v61  ;;  %v3154_v13 = vld [vmem:[%s2731_s18 + $0x2e0] sm:$0xff]  ;;  %v532_v3 = vsel %vm343_vm0, %v3149_v61, 0.0  ;;  %v3177_v61 = vld [vmem:[%s2731_s18 + $0x310] sm:$0xff] }
  0x68   : > { %4815 = vst [vmem:[#allocation52_spill] sm:$0xff] %v3154_v13  ;;  %v529_v35 = vadd.f32 %v528_v57, %v3154_v13  ;;  %v533_v7 = vadd.f32 %v532_v3, %v3159_v29  ;;  %4820 = vst [vmem:[#allocation57_spill] sm:$0xff] %v3177_v61  ;;  %v328_v13 = vld [vmem:[%s2731_s18 + $0x348] sm:$0xff] }
  0x69   : > { %v552_v41 = vsel %vm343_vm0, %v328_v13, 0.0  ;;  %v333_v13 = vld [vmem:[%s2731_s18 + $0x370] sm:$0xff] }
  0x6a   : > { %514 = vadd.xlane.f32.xlu0 %v513_v21  ;;  %v3167_v21 = vld [vmem:[%s2731_s18 + $0x318] sm:$0xff] }
  0x6b   : > { %518 = vadd.xlane.f32.xlu1 %v517_v45  ;;  %4818 = vst [vmem:[#allocation55_spill] sm:$0xff] %v3167_v21  ;;  %v3172_v45 = vld [vmem:[%s2731_s18 + $0x300] sm:$0xff]  ;;  %v540_v51 = vsel %vm343_vm0, %v3167_v21, 0.0  ;;  %v3195_v21 = vld [vmem:[%s2731_s18 + $0x330] sm:$0xff] }
  0x6c   : > { %4819 = vst [vmem:[#allocation56_spill] sm:$0xff] %v3172_v45  ;;  %v537_v57 = vadd.f32 %v536_v37, %v3172_v45  ;;  %v541_v3 = vadd.f32 %v540_v51, %v3177_v61  ;;  %4824 = vst [vmem:[#allocation61_spill] sm:$0xff] %v3195_v21  ;;  %v3208_v61 = vld [vmem:[%s2731_s18 + $0x350] sm:$0xff]  ;;  %v332_v45 = vld [vmem:[%s2731_s18 + $0x368] sm:$0xff] }
  0x6d   : > { %4826 = vst [vmem:[#allocation63_spill] sm:$0xff] %v3208_v61 }
  0x6e   : > { %522 = vadd.xlane.f32.xlu0 %v521_v53  ;;  %v3185_v53 = vld [vmem:[%s2731_s18 + $0x338] sm:$0xff] }
  0x6f   : > { %526 = vadd.xlane.f32.xlu1 %v525_v25  ;;  %4822 = vst [vmem:[#allocation59_spill] sm:$0xff] %v3185_v53  ;;  %v3190_v25 = vld [vmem:[%s2731_s18 + $0x320] sm:$0xff]  ;;  %v548_v29 = vsel %vm343_vm0, %v3185_v53, 0.0 }
  0x70   : > { %4823 = vst [vmem:[#allocation60_spill] sm:$0xff] %v3190_v25  ;;  %v545_v37 = vadd.f32 %v544_v9, %v3190_v25  ;;  %v549_v51 = vadd.f32 %v548_v29, %v3195_v21  ;;  %v564_v21 = vsel %vm343_vm0, %v334_v19, 0.0  ;;  %v336_v25 = vld [vmem:[%s2731_s18 + $0x388] sm:$0xff] }
  0x71   : > { %v565_v49 = vadd.f32 %v564_v21, %v333_v13 }
  0x72   : > { %530 = vadd.xlane.f32.xlu0 %v529_v35  ;;  %v330_v35 = vld [vmem:[%s2731_s18 + $0x358] sm:$0xff] }
  0x73   : > { %534 = vadd.xlane.f32.xlu1 %v533_v7  ;;  %v3204_v7 = vld [vmem:[%s2731_s18 + $0x340] sm:$0xff]  ;;  %v556_v53 = vsel %vm343_vm0, %v330_v35, 0.0  ;;  %v338_v35 = vld [vmem:[%s2731_s18 + $0x398] sm:$0xff] }
  0x74   : > { %4825 = vst [vmem:[#allocation62_spill] sm:$0xff] %v3204_v7  ;;  %v553_v9 = vadd.f32 %v552_v41, %v3204_v7  ;;  %v557_v29 = vadd.f32 %v556_v53, %v3208_v61  ;;  %v335_v41 = vld [vmem:[%s2731_s18 + $0x380] sm:$0xff]  ;;  %v337_v7 = vld [vmem:[%s2731_s18 + $0x390] sm:$0xff]  ;;  %v572_v53 = vsel %vm343_vm0, %v338_v35, 0.0  ;;  %v340_v61 = vld [vmem:[%s2731_s18 + $0x3a8] sm:$0xff] }
  0x75   : > { %v573_v19 = vadd.f32 %v572_v53, %v337_v7  ;;  %v576_v56 = vsel %vm343_vm0, %v340_v61, 0.0 }
  0x76   : > { %538 = vadd.xlane.f32.xlu0 %v537_v57  ;;  %v331_v57 = vld [vmem:[%s2731_s18 + $0x360] sm:$0xff]  ;;  %v577_v21 = vadd.f32 %v576_v56, %v339_v48 }
  0x77   : > { %542 = vadd.xlane.f32.xlu1 %v541_v3  ;;  %v560_v3 = vsel %vm343_vm0, %v332_v45, 0.0 }
  0x7a   : > { %546 = vadd.xlane.f32.xlu0 %v545_v37  ;;  %v561_v37 = vadd.f32 %v560_v3, %v331_v57  ;;  %v580_v57 = vsel %vm343_vm0, %v342_v59, 0.0 }
  0x7b   : > { %550 = vadd.xlane.f32.xlu1 %v549_v51  ;;  %v568_v51 = vsel %vm343_vm0, %v336_v25, 0.0 }
  0x7c   : > { %v569_v45 = vadd.f32 %v568_v51, %v335_v41 }
  0x7e   : > { %554 = vadd.xlane.f32.xlu0 %v553_v9  ;;  %v341_v9 = vld [vmem:[%s2731_s18 + $0x3b0] sm:$0xff] }
  0x7f   : > { %558 = vadd.xlane.f32.xlu1 %v557_v29  ;;  %v581_v29 = vadd.f32 %v580_v57, %v341_v9 }
  0x82   : > { %562 = vadd.xlane.f32.xlu0 %v561_v37 }
  0x83   : > { %566 = vadd.xlane.f32.xlu1 %v565_v49 }
  0x86   : > { %570 = vadd.xlane.f32.xlu0 %v569_v45 }
  0x87   : > { %574 = vadd.xlane.f32.xlu1 %v573_v19 }
  0x8a   : > { %578 = vadd.xlane.f32.xlu0 %v577_v21 }
  0x8b   : > { %582 = vadd.xlane.f32.xlu1 %v581_v29 }
  0x9f   : > { %v347_v25 = vpop.xlane.xlu0 %346 }
  0xa0   : > { %v584_v3 = vmul.f32 0.0051020407, %v347_v25  ;;  %v355_v13 = vpop.xlane.xlu1 %354 }
  0xa1   : > { %v586_v35 = vmul.f32 0.0051020407, %v355_v13 }
  0xa2   : > { %v3232_v37 = vsub.f32 %v2734_v0, %v584_v3  ;;  %v3235_v49 = vsub.f32 %v2737_v1, %v584_v3 }
  0xa3   : > { %v3238_v61 = vsub.f32 %v2740_v2, %v586_v35  ;;  %v3241_v59 = vsub.f32 %v2745_v4, %v586_v35  ;;  %v351_v48 = vpop.xlane.xlu0 %350 }
  0xa4   : > { %v585_v56 = vmul.f32 0.0051020407, %v351_v48  ;;  %v359_v7 = vpop.xlane.xlu1 %358  ;;  %v764_v41 = vmul.f32 %v3232_v37, %v3232_v37  ;;  %v765_v51 = vmul.f32 %v3235_v49, %v3235_v49 }
  0xa5   : > { %v587_v0 = vmul.f32 0.0051020407, %v359_v7  ;;  %v768_v1 = vmul.f32 %v3238_v61, %v3238_v61  ;;  %v769_v2 = vmul.f32 %v3241_v59, %v3241_v59 }
  0xa6   : > { %v3252_v53 = vsub.f32 %v2748_v5, %v585_v56  ;;  %v3255_v4 = vsub.f32 %v2751_v6, %v585_v56  ;;  %v884_v45 = vsel %vm343_vm0, %v765_v51, 0.0 }
  0xa7   : > { %v3259_v19 = vsub.f32 %v2759_v10, %v587_v0  ;;  %v3262_v9 = vsub.f32 %v2762_v11, %v587_v0  ;;  %v885_v57 = vadd.f32 %v884_v45, %v764_v41  ;;  %v363_v21 = vpop.xlane.xlu0 %362  ;;  %v892_v29 = vsel %vm343_vm0, %v769_v2, 0.0 }
  0xa8   : > { %v367_v25 = vpop.xlane.xlu1 %366  ;;  %v766_v5 = vmul.f32 %v3252_v53, %v3252_v53  ;;  %v767_v6 = vmul.f32 %v3255_v4, %v3255_v4  ;;  %v588_v3 = vmul.f32 0.0051020407, %v363_v21  ;;  %v893_v35 = vadd.f32 %v892_v29, %v768_v1 }
  0xa9   : > { %886 = vadd.xlane.f32.xlu0 %v885_v57  ;;  %v589_v13 = vmul.f32 0.0051020407, %v367_v25  ;;  %v770_v10 = vmul.f32 %v3259_v19, %v3259_v19  ;;  %v771_v11 = vmul.f32 %v3262_v9, %v3262_v9 }
  0xaa   : > { %v888_v48 = vsel %vm343_vm0, %v767_v6, 0.0  ;;  %v3275_v56 = vsub.f32 %v2776_v18, %v588_v3  ;;  %v3278_v7 = vsub.f32 %v2771_v15, %v588_v3 }
  0xab   : > { %v3281_v41 = vsub.f32 %v2781_v20, %v589_v13  ;;  %v3284_v51 = vsub.f32 %v2768_v14, %v589_v13  ;;  %v889_v0 = vadd.f32 %v888_v48, %v766_v5  ;;  %v896_v1 = vsel %vm343_vm0, %v771_v11, 0.0  ;;  %v371_v2 = vpop.xlane.xlu0 %370 }
  0xac   : > { %v375_v45 = vpop.xlane.xlu1 %374  ;;  %v590_v57 = vmul.f32 0.0051020407, %v371_v2  ;;  %v772_v21 = vmul.f32 %v3275_v56, %v3275_v56  ;;  %v773_v18 = vmul.f32 %v3278_v7, %v3278_v7  ;;  %v897_v20 = vadd.f32 %v896_v1, %v770_v10 }
  0xad   : > { %890 = vadd.xlane.f32.xlu1 %v889_v0  ;;  %v591_v15 = vmul.f32 0.0051020407, %v375_v45  ;;  %894 = vadd.xlane.f32.xlu0 %v893_v35  ;;  %v774_v14 = vmul.f32 %v3281_v41, %v3281_v41  ;;  %v775_v29 = vmul.f32 %v3284_v51, %v3284_v51 }
  0xae   : > { %v3296_v25 = vsub.f32 %v2794_v26, %v590_v57  ;;  %v3299_v5 = vsub.f32 %v2786_v22, %v590_v57  ;;  %v900_v6 = vsel %vm343_vm0, %v773_v18, 0.0 }
  0xaf   : > { %v3303_v3 = vsub.f32 %v2799_v28, %v591_v15  ;;  %v3306_v13 = vsub.f32 %v2789_v23, %v591_v15  ;;  %v904_v35 = vsel %vm343_vm0, %v775_v29, 0.0  ;;  %v901_v10 = vadd.f32 %v900_v6, %v772_v21  ;;  %v379_v11 = vpop.xlane.xlu0 %378 }
  0xb0   : > { %v383_v48 = vpop.xlane.xlu1 %382  ;;  %v592_v0 = vmul.f32 0.0051020407, %v379_v11  ;;  %v776_v26 = vmul.f32 %v3296_v25, %v3296_v25  ;;  %v777_v22 = vmul.f32 %v3299_v5, %v3299_v5  ;;  %v905_v2 = vadd.f32 %v904_v35, %v774_v14 }
  0xb1   : > { %898 = vadd.xlane.f32.xlu1 %v897_v20  ;;  %v593_v1 = vmul.f32 0.0051020407, %v383_v48  ;;  %902 = vadd.xlane.f32.xlu0 %v901_v10  ;;  %v778_v23 = vmul.f32 %v3303_v3, %v3303_v3  ;;  %v779_v28 = vmul.f32 %v3306_v13, %v3306_v13 }
  0xb2   : > { %v3318_v45 = vsub.f32 %v2812_v34, %v592_v0  ;;  %v3321_v57 = vsub.f32 %v2804_v30, %v592_v0  ;;  %v908_v21 = vsel %vm343_vm0, %v777_v22, 0.0 }
  0xb3   : > { %v3325_v18 = vsub.f32 %v2817_v36, %v593_v1  ;;  %v3328_v15 = vsub.f32 %v2807_v31, %v593_v1  ;;  %v912_v20 = vsel %vm343_vm0, %v779_v28, 0.0  ;;  %v909_v14 = vadd.f32 %v908_v21, %v776_v26  ;;  %v387_v29 = vpop.xlane.xlu0 %386 }
  0xb4   : > { %v391_v6 = vpop.xlane.xlu1 %390  ;;  %v594_v35 = vmul.f32 0.0051020407, %v387_v29  ;;  %v780_v34 = vmul.f32 %v3318_v45, %v3318_v45  ;;  %v781_v30 = vmul.f32 %v3321_v57, %v3321_v57  ;;  %v913_v11 = vadd.f32 %v912_v20, %v778_v23 }
  0xb5   : > { %906 = vadd.xlane.f32.xlu1 %v905_v2  ;;  %v595_v10 = vmul.f32 0.0051020407, %v391_v6  ;;  %v782_v36 = vmul.f32 %v3325_v18, %v3325_v18  ;;  %v783_v31 = vmul.f32 %v3328_v15, %v3328_v15  ;;  %910 = vadd.xlane.f32.xlu0 %v909_v14 }
  0xb6   : > { %v3340_v48 = vsub.f32 %v2830_v42, %v594_v35  ;;  %v3343_v0 = vsub.f32 %v2822_v38, %v594_v35  ;;  %v916_v26 = vsel %vm343_vm0, %v781_v30, 0.0 }
  0xb7   : > { %v3347_v22 = vsub.f32 %v2835_v44, %v595_v10  ;;  %v3350_v1 = vsub.f32 %v2825_v39, %v595_v10  ;;  %v920_v2 = vsel %vm343_vm0, %v783_v31, 0.0  ;;  %v395_v23 = vpop.xlane.xlu0 %394  ;;  %v917_v28 = vadd.f32 %v916_v26, %v780_v34 }
  0xb8   : > { %v399_v21 = vpop.xlane.xlu1 %398  ;;  %v596_v20 = vmul.f32 0.0051020407, %v395_v23  ;;  %v784_v42 = vmul.f32 %v3340_v48, %v3340_v48  ;;  %v785_v38 = vmul.f32 %v3343_v0, %v3343_v0  ;;  %v921_v29 = vadd.f32 %v920_v2, %v782_v36 }
  0xb9   : > { %914 = vadd.xlane.f32.xlu1 %v913_v11  ;;  %v597_v14 = vmul.f32 0.0051020407, %v399_v21  ;;  %v786_v44 = vmul.f32 %v3347_v22, %v3347_v22  ;;  %v787_v39 = vmul.f32 %v3350_v1, %v3350_v1  ;;  %918 = vadd.xlane.f32.xlu0 %v917_v28 }
  0xba   : > { %v3362_v6 = vsub.f32 %v2848_v50, %v596_v20  ;;  %v3365_v35 = vsub.f32 %v2840_v46, %v596_v20  ;;  %v924_v34 = vsel %vm343_vm0, %v785_v38, 0.0 }
  0xbb   : > { %v3369_v30 = vsub.f32 %v2853_v52, %v597_v14  ;;  %v3372_v10 = vsub.f32 %v2843_v47, %v597_v14  ;;  %v928_v11 = vsel %vm343_vm0, %v787_v39, 0.0  ;;  %v403_v36 = vpop.xlane.xlu0 %402  ;;  %v925_v31 = vadd.f32 %v924_v34, %v784_v42 }
  0xbc   : > { %v407_v26 = vpop.xlane.xlu1 %406  ;;  %v598_v2 = vmul.f32 0.0051020407, %v403_v36  ;;  %v788_v50 = vmul.f32 %v3362_v6, %v3362_v6  ;;  %v789_v46 = vmul.f32 %v3365_v35, %v3365_v35  ;;  %v929_v28 = vadd.f32 %v928_v11, %v786_v44 }
  0xbd   : > { %922 = vadd.xlane.f32.xlu1 %v921_v29  ;;  %v599_v23 = vmul.f32 0.0051020407, %v407_v26  ;;  %v790_v52 = vmul.f32 %v3369_v30, %v3369_v30  ;;  %v791_v47 = vmul.f32 %v3372_v10, %v3372_v10  ;;  %926 = vadd.xlane.f32.xlu0 %v925_v31 }
  0xbe   : > { %v3384_v21 = vsub.f32 %v2866_v58, %v598_v2  ;;  %v3387_v20 = vsub.f32 %v2858_v54, %v598_v2  ;;  %v932_v42 = vsel %vm343_vm0, %v789_v46, 0.0 }
  0xbf   : > { %v3391_v38 = vsub.f32 %v2871_v60, %v599_v23  ;;  %v3394_v14 = vsub.f32 %v2861_v55, %v599_v23  ;;  %v936_v29 = vsel %vm343_vm0, %v791_v47, 0.0  ;;  %v411_v44 = vpop.xlane.xlu0 %410  ;;  %v933_v39 = vadd.f32 %v932_v42, %v788_v50 }
  0xc0   : > { %4827 = vst [vmem:[#allocation64_spill] sm:$0xff] %v3384_v21  ;;  %4828 = vst [vmem:[#allocation65_spill] sm:$0xff] %v3387_v20  ;;  %v415_v34 = vpop.xlane.xlu1 %414  ;;  %v600_v11 = vmul.f32 0.0051020407, %v411_v44  ;;  %v792_v58 = vmul.f32 %v3384_v21, %v3384_v21  ;;  %v793_v54 = vmul.f32 %v3387_v20, %v3387_v20  ;;  %v937_v31 = vadd.f32 %v936_v29, %v790_v52 }
  0xc1   : > { %930 = vadd.xlane.f32.xlu1 %v929_v28  ;;  %v601_v36 = vmul.f32 0.0051020407, %v415_v34  ;;  %v794_v60 = vmul.f32 %v3391_v38, %v3391_v38  ;;  %v795_v55 = vmul.f32 %v3394_v14, %v3394_v14  ;;  %934 = vadd.xlane.f32.xlu0 %v933_v39 }
  0xc2   : > { %v3406_v26 = vsub.f32 %v2884_v8, %v600_v11  ;;  %v3409_v2 = vsub.f32 %v2876_v62, %v600_v11  ;;  %v940_v50 = vsel %vm343_vm0, %v793_v54, 0.0  ;;  %v2694_v54 = vmov 0  }
  0xc3   : > { %v3413_v46 = vsub.f32 %v2889_v12, %v601_v36  ;;  %v3416_v23 = vsub.f32 %v2879_v63, %v601_v36  ;;  %v944_v28 = vsel %vm343_vm0, %v795_v55, 0.0  ;;  %v419_v52 = vpop.xlane.xlu0 %418  ;;  %v941_v47 = vadd.f32 %v940_v50, %v792_v58  ;;  %2550 = vset.pattern.permute.xlu0 %v2694_v54  ;;  %2551 = vset.pattern.permute.xlu1 %v2694_v54 }
  0xc4   : > { %4829 = vst [vmem:[#allocation66_spill] sm:$0xff] %v3406_v26  ;;  %4830 = vst [vmem:[#allocation67_spill] sm:$0xff] %v3409_v2  ;;  %v423_v42 = vpop.xlane.xlu1 %422  ;;  %v945_v29 = vadd.f32 %v944_v28, %v794_v60  ;;  %v602_v44 = vmul.f32 0.0051020407, %v419_v52  ;;  %v796_v8 = vmul.f32 %v3406_v26, %v3406_v26  ;;  %v797_v62 = vmul.f32 %v3409_v2, %v3409_v2 }
  0xc5   : > { %938 = vadd.xlane.f32.xlu1 %v937_v31  ;;  %v603_v39 = vmul.f32 0.0051020407, %v423_v42  ;;  %v798_v12 = vmul.f32 %v3413_v46, %v3413_v46  ;;  %v799_v63 = vmul.f32 %v3416_v23, %v3416_v23  ;;  %942 = vadd.xlane.f32.xlu0 %v941_v47 }
  0xc6   : > { %v3428_v34 = vsub.f32 %v2902_v24, %v602_v44  ;;  %v3431_v11 = vsub.f32 %v2894_v16, %v602_v44  ;;  %v948_v58 = vsel %vm343_vm0, %v797_v62, 0.0 }
  0xc7   : > { %v3435_v36 = vsub.f32 %v2907_v27, %v603_v39  ;;  %v3438_v31 = vsub.f32 %v2897_v17, %v603_v39  ;;  %v952_v60 = vsel %vm343_vm0, %v799_v63, 0.0  ;;  %v427_v55 = vpop.xlane.xlu0 %426  ;;  %v949_v50 = vadd.f32 %v948_v58, %v796_v8 }
  0xc8   : > { %4831 = vst [vmem:[#allocation68_spill] sm:$0xff] %v3428_v34  ;;  %4832 = vst [vmem:[#allocation69_spill] sm:$0xff] %v3431_v11  ;;  %v431_v24 = vpop.xlane.xlu1 %430  ;;  %v604_v28 = vmul.f32 0.0051020407, %v427_v55  ;;  %v800_v16 = vmul.f32 %v3428_v34, %v3428_v34  ;;  %v801_v52 = vmul.f32 %v3431_v11, %v3431_v11  ;;  %v953_v42 = vadd.f32 %v952_v60, %v798_v12 }
  0xc9   : > { %946 = vadd.xlane.f32.xlu1 %v945_v29  ;;  %v605_v47 = vmul.f32 0.0051020407, %v431_v24  ;;  %v802_v27 = vmul.f32 %v3435_v36, %v3435_v36  ;;  %v803_v17 = vmul.f32 %v3438_v31, %v3438_v31  ;;  %950 = vadd.xlane.f32.xlu0 %v949_v50  ;;  %v4836_v24 = vld [vmem:[#allocation4_spill] sm:$0xff] }
  0xca   : > { %v3450_v44 = vsub.f32 %v2920_v40, %v604_v28  ;;  %v3453_v8 = vsub.f32 %v2912_v32, %v604_v28  ;;  %v956_v62 = vsel %vm343_vm0, %v801_v52, 0.0 }
  0xcb   : > { %v3457_v39 = vsub.f32 %v2925_v43, %v605_v47  ;;  %v3460_v29 = vsub.f32 %v2915_v33, %v605_v47  ;;  %v960_v12 = vsel %vm343_vm0, %v803_v17, 0.0  ;;  %v435_v63 = vpop.xlane.xlu0 %434  ;;  %v957_v58 = vadd.f32 %v956_v62, %v800_v16  ;;  %v4838_v16 = vld [vmem:[#allocation2_spill] sm:$0xff]  ;;  %v4840_v17 = vld [vmem:[#allocation5_spill] sm:$0xff] }
  0xcc   : > { %4833 = vst [vmem:[#allocation70_spill] sm:$0xff] %v3450_v44  ;;  %4834 = vst [vmem:[#allocation71_spill] sm:$0xff] %v3453_v8  ;;  %v439_v54 = vpop.xlane.xlu1 %438  ;;  %v606_v60 = vmul.f32 0.0051020407, %v435_v63  ;;  %v804_v40 = vmul.f32 %v3450_v44, %v3450_v44  ;;  %v805_v32 = vmul.f32 %v3453_v8, %v3453_v8  ;;  %v961_v50 = vadd.f32 %v960_v12, %v802_v27 }
  0xcd   : > { %4835 = vst [vmem:[#allocation72_spill] sm:$0xff] %v3460_v29  ;;  %954 = vadd.xlane.f32.xlu1 %v953_v42  ;;  %v607_v55 = vmul.f32 0.0051020407, %v439_v54  ;;  %v806_v43 = vmul.f32 %v3457_v39, %v3457_v39  ;;  %v807_v33 = vmul.f32 %v3460_v29, %v3460_v29  ;;  %958 = vadd.xlane.f32.xlu0 %v957_v58  ;;  %v4842_v42 = vld [vmem:[#allocation3_spill] sm:$0xff] }
  0xce   : > { %v3472_v28 = vsub.f32 %v4836_v24, %v606_v60  ;;  %v3475_v52 = vsub.f32 %v4838_v16, %v606_v60  ;;  %v964_v47 = vsel %vm343_vm0, %v805_v32, 0.0 }
  0xcf   : > { %v3479_v62 = vsub.f32 %v4840_v17, %v607_v55  ;;  %v3482_v27 = vsub.f32 %v4842_v42, %v607_v55  ;;  %v968_v12 = vsel %vm343_vm0, %v807_v33, 0.0  ;;  %v443_v63 = vpop.xlane.xlu0 %442  ;;  %v965_v54 = vadd.f32 %v964_v47, %v804_v40  ;;  %v4844_v33 = vld [vmem:[#allocation8_spill] sm:$0xff]  ;;  %v4846_v47 = vld [vmem:[#allocation6_spill] sm:$0xff] }
  0xd0   : > { %4837 = vst [vmem:[#allocation4_spill] sm:$0xff] %v3472_v28  ;;  %4839 = vst [vmem:[#allocation2_spill] sm:$0xff] %v3475_v52  ;;  %v447_v8 = vpop.xlane.xlu1 %446  ;;  %v608_v58 = vmul.f32 0.0051020407, %v443_v63  ;;  %v808_v24 = vmul.f32 %v3472_v28, %v3472_v28  ;;  %v809_v60 = vmul.f32 %v3475_v52, %v3475_v52  ;;  %v969_v16 = vadd.f32 %v968_v12, %v806_v43  ;;  %v4848_v28 = vld [vmem:[#allocation9_spill] sm:$0xff] }
  0xd1   : > { %4841 = vst [vmem:[#allocation5_spill] sm:$0xff] %v3479_v62  ;;  %4843 = vst [vmem:[#allocation3_spill] sm:$0xff] %v3482_v27  ;;  %962 = vadd.xlane.f32.xlu1 %v961_v50  ;;  %v609_v32 = vmul.f32 0.0051020407, %v447_v8  ;;  %v810_v17 = vmul.f32 %v3479_v62, %v3479_v62  ;;  %v811_v55 = vmul.f32 %v3482_v27, %v3482_v27  ;;  %966 = vadd.xlane.f32.xlu0 %v965_v54  ;;  %v4850_v8 = vld [vmem:[#allocation7_spill] sm:$0xff] }
  0xd2   : > { %v3494_v40 = vsub.f32 %v4844_v33, %v608_v58  ;;  %v3497_v42 = vsub.f32 %v4846_v47, %v608_v58  ;;  %v972_v63 = vsel %vm343_vm0, %v809_v60, 0.0 }
  0xd3   : > { %v3501_v52 = vsub.f32 %v4848_v28, %v609_v32  ;;  %v3504_v50 = vsub.f32 %v4850_v8, %v609_v32  ;;  %v976_v43 = vsel %vm343_vm0, %v811_v55, 0.0  ;;  %v451_v12 = vpop.xlane.xlu0 %450  ;;  %v973_v44 = vadd.f32 %v972_v63, %v808_v24  ;;  %v4852_v55 = vld [vmem:[#allocation12_spill] sm:$0xff]  ;;  %v4854_v63 = vld [vmem:[#allocation10_spill] sm:$0xff] }
  0xd4   : > { %4845 = vst [vmem:[#allocation8_spill] sm:$0xff] %v3494_v40  ;;  %4847 = vst [vmem:[#allocation6_spill] sm:$0xff] %v3497_v42  ;;  %v455_v11 = vpop.xlane.xlu1 %454  ;;  %v610_v54 = vmul.f32 0.0051020407, %v451_v12  ;;  %v812_v33 = vmul.f32 %v3494_v40, %v3494_v40  ;;  %v813_v58 = vmul.f32 %v3497_v42, %v3497_v42  ;;  %v977_v47 = vadd.f32 %v976_v43, %v810_v17  ;;  %v4856_v40 = vld [vmem:[#allocation13_spill] sm:$0xff] }
  0xd5   : > { %4849 = vst [vmem:[#allocation9_spill] sm:$0xff] %v3501_v52  ;;  %4851 = vst [vmem:[#allocation7_spill] sm:$0xff] %v3504_v50  ;;  %970 = vadd.xlane.f32.xlu1 %v969_v16  ;;  %v611_v60 = vmul.f32 0.0051020407, %v455_v11  ;;  %v814_v28 = vmul.f32 %v3501_v52, %v3501_v52  ;;  %v815_v32 = vmul.f32 %v3504_v50, %v3504_v50  ;;  %974 = vadd.xlane.f32.xlu0 %v973_v44  ;;  %v4858_v11 = vld [vmem:[#allocation11_spill] sm:$0xff] }
  0xd6   : > { %v3516_v24 = vsub.f32 %v4852_v55, %v610_v54  ;;  %v3519_v8 = vsub.f32 %v4854_v63, %v610_v54  ;;  %v980_v12 = vsel %vm343_vm0, %v813_v58, 0.0  ;;  %v4914_v52 = vld [vmem:[#allocation39_spill] sm:$0xff] }
  0xd7   : > { %v3523_v42 = vsub.f32 %v4856_v40, %v611_v60  ;;  %v3526_v16 = vsub.f32 %v4858_v11, %v611_v60  ;;  %v984_v17 = vsel %vm343_vm0, %v815_v32, 0.0  ;;  %v459_v43 = vpop.xlane.xlu0 %458  ;;  %v981_v34 = vadd.f32 %v980_v12, %v812_v33  ;;  %v4860_v32 = vld [vmem:[#allocation16_spill] sm:$0xff]  ;;  %v4862_v12 = vld [vmem:[#allocation14_spill] sm:$0xff] }
  0xd8   : > { %4853 = vst [vmem:[#allocation12_spill] sm:$0xff] %v3516_v24  ;;  %4855 = vst [vmem:[#allocation10_spill] sm:$0xff] %v3519_v8  ;;  %v463_v50 = vpop.xlane.xlu1 %462  ;;  %v612_v44 = vmul.f32 0.0051020407, %v459_v43  ;;  %v816_v55 = vmul.f32 %v3516_v24, %v3516_v24  ;;  %v817_v54 = vmul.f32 %v3519_v8, %v3519_v8  ;;  %v985_v63 = vadd.f32 %v984_v17, %v814_v28  ;;  %v4864_v24 = vld [vmem:[#allocation17_spill] sm:$0xff] }
  0xd9   : > { %4857 = vst [vmem:[#allocation13_spill] sm:$0xff] %v3523_v42  ;;  %4859 = vst [vmem:[#allocation11_spill] sm:$0xff] %v3526_v16  ;;  %978 = vadd.xlane.f32.xlu1 %v977_v47  ;;  %v613_v58 = vmul.f32 0.0051020407, %v463_v50  ;;  %v818_v40 = vmul.f32 %v3523_v42, %v3523_v42  ;;  %v819_v60 = vmul.f32 %v3526_v16, %v3526_v16  ;;  %982 = vadd.xlane.f32.xlu0 %v981_v34  ;;  %v4866_v50 = vld [vmem:[#allocation15_spill] sm:$0xff] }
  0xda   : > { %v3538_v33 = vsub.f32 %v4860_v32, %v612_v44  ;;  %v3541_v11 = vsub.f32 %v4862_v12, %v612_v44  ;;  %v988_v43 = vsel %vm343_vm0, %v817_v54, 0.0 }
  0xdb   : > { %v3545_v8 = vsub.f32 %v4864_v24, %v613_v58  ;;  %v3548_v47 = vsub.f32 %v4866_v50, %v613_v58  ;;  %v992_v28 = vsel %vm343_vm0, %v819_v60, 0.0  ;;  %v467_v17 = vpop.xlane.xlu0 %466  ;;  %v989_v42 = vadd.f32 %v988_v43, %v816_v55  ;;  %v4868_v60 = vld [vmem:[#allocation20_spill] sm:$0xff]  ;;  %v4870_v43 = vld [vmem:[#allocation18_spill] sm:$0xff] }
  0xdc   : > { %4861 = vst [vmem:[#allocation16_spill] sm:$0xff] %v3538_v33  ;;  %4863 = vst [vmem:[#allocation14_spill] sm:$0xff] %v3541_v11  ;;  %v471_v16 = vpop.xlane.xlu1 %470  ;;  %v614_v34 = vmul.f32 0.0051020407, %v467_v17  ;;  %v820_v32 = vmul.f32 %v3538_v33, %v3538_v33  ;;  %v821_v44 = vmul.f32 %v3541_v11, %v3541_v11  ;;  %v993_v12 = vadd.f32 %v992_v28, %v818_v40  ;;  %v4872_v33 = vld [vmem:[#allocation21_spill] sm:$0xff] }
  0xdd   : > { %4865 = vst [vmem:[#allocation17_spill] sm:$0xff] %v3545_v8  ;;  %4867 = vst [vmem:[#allocation15_spill] sm:$0xff] %v3548_v47  ;;  %986 = vadd.xlane.f32.xlu1 %v985_v63  ;;  %v615_v54 = vmul.f32 0.0051020407, %v471_v16  ;;  %v822_v24 = vmul.f32 %v3545_v8, %v3545_v8  ;;  %v823_v58 = vmul.f32 %v3548_v47, %v3548_v47  ;;  %990 = vadd.xlane.f32.xlu0 %v989_v42  ;;  %v4874_v16 = vld [vmem:[#allocation19_spill] sm:$0xff] }
  0xde   : > { %v3560_v55 = vsub.f32 %v4868_v60, %v614_v34  ;;  %v3563_v50 = vsub.f32 %v4870_v43, %v614_v34  ;;  %v996_v17 = vsel %vm343_vm0, %v821_v44, 0.0 }
  0xdf   : > { %v3567_v11 = vsub.f32 %v4872_v33, %v615_v54  ;;  %v3570_v63 = vsub.f32 %v4874_v16, %v615_v54  ;;  %v1000_v40 = vsel %vm343_vm0, %v823_v58, 0.0  ;;  %v475_v28 = vpop.xlane.xlu0 %474  ;;  %v997_v8 = vadd.f32 %v996_v17, %v820_v32  ;;  %v4876_v58 = vld [vmem:[#allocation24_spill] sm:$0xff]  ;;  %v4878_v17 = vld [vmem:[#allocation22_spill] sm:$0xff] }
  0xe0   : > { %4869 = vst [vmem:[#allocation20_spill] sm:$0xff] %v3560_v55  ;;  %4871 = vst [vmem:[#allocation18_spill] sm:$0xff] %v3563_v50  ;;  %v479_v47 = vpop.xlane.xlu1 %478  ;;  %v616_v42 = vmul.f32 0.0051020407, %v475_v28  ;;  %v824_v60 = vmul.f32 %v3560_v55, %v3560_v55  ;;  %v825_v34 = vmul.f32 %v3563_v50, %v3563_v50  ;;  %v1001_v43 = vadd.f32 %v1000_v40, %v822_v24  ;;  %v4880_v55 = vld [vmem:[#allocation25_spill] sm:$0xff] }
  0xe1   : > { %4873 = vst [vmem:[#allocation21_spill] sm:$0xff] %v3567_v11  ;;  %4875 = vst [vmem:[#allocation19_spill] sm:$0xff] %v3570_v63  ;;  %994 = vadd.xlane.f32.xlu1 %v993_v12  ;;  %v617_v44 = vmul.f32 0.0051020407, %v479_v47  ;;  %v826_v33 = vmul.f32 %v3567_v11, %v3567_v11  ;;  %v827_v54 = vmul.f32 %v3570_v63, %v3570_v63  ;;  %998 = vadd.xlane.f32.xlu0 %v997_v8  ;;  %v4882_v47 = vld [vmem:[#allocation23_spill] sm:$0xff] }
  0xe2   : > { %v3582_v32 = vsub.f32 %v4876_v58, %v616_v42  ;;  %v3585_v16 = vsub.f32 %v4878_v17, %v616_v42  ;;  %v1004_v28 = vsel %vm343_vm0, %v825_v34, 0.0 }
  0xe3   : > { %v3589_v50 = vsub.f32 %v4880_v55, %v617_v44  ;;  %v3592_v12 = vsub.f32 %v4882_v47, %v617_v44  ;;  %v1008_v24 = vsel %vm343_vm0, %v827_v54, 0.0  ;;  %v483_v40 = vpop.xlane.xlu0 %482  ;;  %v1005_v11 = vadd.f32 %v1004_v28, %v824_v60  ;;  %v4884_v54 = vld [vmem:[#allocation28_spill] sm:$0xff]  ;;  %v4886_v28 = vld [vmem:[#allocation26_spill] sm:$0xff] }
  0xe4   : > { %4877 = vst [vmem:[#allocation24_spill] sm:$0xff] %v3582_v32  ;;  %4879 = vst [vmem:[#allocation22_spill] sm:$0xff] %v3585_v16  ;;  %v487_v63 = vpop.xlane.xlu1 %486  ;;  %v618_v8 = vmul.f32 0.0051020407, %v483_v40  ;;  %v828_v58 = vmul.f32 %v3582_v32, %v3582_v32  ;;  %v829_v42 = vmul.f32 %v3585_v16, %v3585_v16  ;;  %v1009_v17 = vadd.f32 %v1008_v24, %v826_v33  ;;  %v4888_v32 = vld [vmem:[#allocation29_spill] sm:$0xff] }
  0xe5   : > { %4881 = vst [vmem:[#allocation25_spill] sm:$0xff] %v3589_v50  ;;  %4883 = vst [vmem:[#allocation23_spill] sm:$0xff] %v3592_v12  ;;  %1002 = vadd.xlane.f32.xlu1 %v1001_v43  ;;  %v619_v34 = vmul.f32 0.0051020407, %v487_v63  ;;  %v830_v55 = vmul.f32 %v3589_v50, %v3589_v50  ;;  %v831_v44 = vmul.f32 %v3592_v12, %v3592_v12  ;;  %1006 = vadd.xlane.f32.xlu0 %v1005_v11  ;;  %v4890_v63 = vld [vmem:[#allocation27_spill] sm:$0xff] }
  0xe6   : > { %v3604_v60 = vsub.f32 %v4884_v54, %v618_v8  ;;  %v3607_v47 = vsub.f32 %v4886_v28, %v618_v8  ;;  %v1012_v40 = vsel %vm343_vm0, %v829_v42, 0.0 }
  0xe7   : > { %v3611_v16 = vsub.f32 %v4888_v32, %v619_v34  ;;  %v3614_v43 = vsub.f32 %v4890_v63, %v619_v34  ;;  %v1016_v33 = vsel %vm343_vm0, %v831_v44, 0.0  ;;  %v491_v24 = vpop.xlane.xlu0 %490  ;;  %v1013_v50 = vadd.f32 %v1012_v40, %v828_v58  ;;  %v4892_v44 = vld [vmem:[#allocation32_spill] sm:$0xff]  ;;  %v4894_v40 = vld [vmem:[#allocation30_spill] sm:$0xff] }
  0xe8   : > { %4885 = vst [vmem:[#allocation28_spill] sm:$0xff] %v3604_v60  ;;  %4887 = vst [vmem:[#allocation26_spill] sm:$0xff] %v3607_v47  ;;  %v495_v12 = vpop.xlane.xlu1 %494  ;;  %v620_v11 = vmul.f32 0.0051020407, %v491_v24  ;;  %v832_v54 = vmul.f32 %v3604_v60, %v3604_v60  ;;  %v833_v8 = vmul.f32 %v3607_v47, %v3607_v47  ;;  %v1017_v28 = vadd.f32 %v1016_v33, %v830_v55  ;;  %v4896_v60 = vld [vmem:[#allocation33_spill] sm:$0xff] }
  0xe9   : > { %4889 = vst [vmem:[#allocation29_spill] sm:$0xff] %v3611_v16  ;;  %4891 = vst [vmem:[#allocation27_spill] sm:$0xff] %v3614_v43  ;;  %1010 = vadd.xlane.f32.xlu1 %v1009_v17  ;;  %v621_v42 = vmul.f32 0.0051020407, %v495_v12  ;;  %v834_v32 = vmul.f32 %v3611_v16, %v3611_v16  ;;  %v835_v34 = vmul.f32 %v3614_v43, %v3614_v43  ;;  %1014 = vadd.xlane.f32.xlu0 %v1013_v50  ;;  %v4898_v12 = vld [vmem:[#allocation31_spill] sm:$0xff] }
  0xea   : > { %v3626_v58 = vsub.f32 %v4892_v44, %v620_v11  ;;  %v3629_v63 = vsub.f32 %v4894_v40, %v620_v11  ;;  %v1020_v24 = vsel %vm343_vm0, %v833_v8, 0.0 }
  0xeb   : > { %v3633_v47 = vsub.f32 %v4896_v60, %v621_v42  ;;  %v3636_v17 = vsub.f32 %v4898_v12, %v621_v42  ;;  %v1024_v55 = vsel %vm343_vm0, %v835_v34, 0.0  ;;  %v499_v33 = vpop.xlane.xlu0 %498  ;;  %v1021_v16 = vadd.f32 %v1020_v24, %v832_v54  ;;  %v4900_v34 = vld [vmem:[#allocation36_spill] sm:$0xff]  ;;  %v4902_v24 = vld [vmem:[#allocation34_spill] sm:$0xff] }
  0xec   : > { %4893 = vst [vmem:[#allocation32_spill] sm:$0xff] %v3626_v58  ;;  %4895 = vst [vmem:[#allocation30_spill] sm:$0xff] %v3629_v63  ;;  %v503_v43 = vpop.xlane.xlu1 %502  ;;  %v622_v50 = vmul.f32 0.0051020407, %v499_v33  ;;  %v836_v44 = vmul.f32 %v3626_v58, %v3626_v58  ;;  %v837_v11 = vmul.f32 %v3629_v63, %v3629_v63  ;;  %v1025_v40 = vadd.f32 %v1024_v55, %v834_v32  ;;  %v4904_v58 = vld [vmem:[#allocation37_spill] sm:$0xff] }
  0xed   : > { %4897 = vst [vmem:[#allocation33_spill] sm:$0xff] %v3633_v47  ;;  %4899 = vst [vmem:[#allocation31_spill] sm:$0xff] %v3636_v17  ;;  %1018 = vadd.xlane.f32.xlu1 %v1017_v28  ;;  %v623_v8 = vmul.f32 0.0051020407, %v503_v43  ;;  %v838_v60 = vmul.f32 %v3633_v47, %v3633_v47  ;;  %v839_v42 = vmul.f32 %v3636_v17, %v3636_v17  ;;  %1022 = vadd.xlane.f32.xlu0 %v1021_v16  ;;  %v4906_v43 = vld [vmem:[#allocation35_spill] sm:$0xff] }
  0xee   : > { %v3648_v54 = vsub.f32 %v4900_v34, %v622_v50  ;;  %v3651_v12 = vsub.f32 %v4902_v24, %v622_v50  ;;  %v1028_v33 = vsel %vm343_vm0, %v837_v11, 0.0 }
  0xef   : > { %v3655_v63 = vsub.f32 %v4904_v58, %v623_v8  ;;  %v3658_v28 = vsub.f32 %v4906_v43, %v623_v8  ;;  %v1032_v32 = vsel %vm343_vm0, %v839_v42, 0.0  ;;  %v507_v55 = vpop.xlane.xlu0 %506  ;;  %v1029_v47 = vadd.f32 %v1028_v33, %v836_v44  ;;  %v4908_v42 = vld [vmem:[#allocation40_spill] sm:$0xff]  ;;  %v4910_v33 = vld [vmem:[#allocation38_spill] sm:$0xff] }
  0xf0   : > { %4901 = vst [vmem:[#allocation36_spill] sm:$0xff] %v3648_v54  ;;  %4903 = vst [vmem:[#allocation34_spill] sm:$0xff] %v3651_v12  ;;  %v511_v17 = vpop.xlane.xlu1 %510  ;;  %v840_v16 = vmul.f32 %v3648_v54, %v3648_v54  ;;  %v841_v50 = vmul.f32 %v3651_v12, %v3651_v12  ;;  %v624_v34 = vmul.f32 0.0051020407, %v507_v55  ;;  %v1033_v24 = vadd.f32 %v1032_v32, %v838_v60  ;;  %v4912_v12 = vld [vmem:[#allocation41_spill] sm:$0xff] }
  0xf1   : > { %4905 = vst [vmem:[#allocation37_spill] sm:$0xff] %v3655_v63  ;;  %4907 = vst [vmem:[#allocation35_spill] sm:$0xff] %v3658_v28  ;;  %v842_v11 = vmul.f32 %v3655_v63, %v3655_v63  ;;  %v843_v58 = vmul.f32 %v3658_v28, %v3658_v28  ;;  %1026 = vadd.xlane.f32.xlu1 %v1025_v40  ;;  %v625_v8 = vmul.f32 0.0051020407, %v511_v17  ;;  %1030 = vadd.xlane.f32.xlu0 %v1029_v47 }
  0xf2   : > { %v3670_v44 = vsub.f32 %v4908_v42, %v624_v34  ;;  %v3673_v43 = vsub.f32 %v4910_v33, %v624_v34  ;;  %v1036_v54 = vsel %vm343_vm0, %v841_v50, 0.0 }
  0xf3   : > { %v3677_v55 = vsub.f32 %v4912_v12, %v625_v8  ;;  %v3680_v63 = vsub.f32 %v4914_v52, %v625_v8  ;;  %v1040_v28 = vsel %vm343_vm0, %v843_v58, 0.0  ;;  %v515_v40 = vpop.xlane.xlu0 %514  ;;  %v1037_v17 = vadd.f32 %v1036_v54, %v840_v16  ;;  %v4916_v58 = vld [vmem:[#allocation44_spill] sm:$0xff]  ;;  %v4918_v16 = vld [vmem:[#allocation42_spill] sm:$0xff] }
  0xf4   : > { %4909 = vst [vmem:[#allocation40_spill] sm:$0xff] %v3670_v44  ;;  %4911 = vst [vmem:[#allocation38_spill] sm:$0xff] %v3673_v43  ;;  %v519_v60 = vpop.xlane.xlu1 %518  ;;  %v844_v47 = vmul.f32 %v3670_v44, %v3670_v44  ;;  %v845_v32 = vmul.f32 %v3673_v43, %v3673_v43  ;;  %v626_v34 = vmul.f32 0.0051020407, %v515_v40  ;;  %v1041_v8 = vadd.f32 %v1040_v28, %v842_v11  ;;  %v4920_v43 = vld [vmem:[#allocation45_spill] sm:$0xff]  ;;  %v4922_v44 = vld [vmem:[#allocation43_spill] sm:$0xff] }
  0xf5   : > { %4913 = vst [vmem:[#allocation41_spill] sm:$0xff] %v3677_v55  ;;  %4915 = vst [vmem:[#allocation39_spill] sm:$0xff] %v3680_v63  ;;  %v846_v50 = vmul.f32 %v3677_v55, %v3677_v55  ;;  %v847_v12 = vmul.f32 %v3680_v63, %v3680_v63  ;;  %1034 = vadd.xlane.f32.xlu1 %v1033_v24  ;;  %v627_v52 = vmul.f32 0.0051020407, %v519_v60  ;;  %1038 = vadd.xlane.f32.xlu0 %v1037_v17 }
  0xf6   : > { %v3692_v54 = vsub.f32 %v4916_v58, %v626_v34  ;;  %v3695_v42 = vsub.f32 %v4918_v16, %v626_v34  ;;  %v1044_v33 = vsel %vm343_vm0, %v845_v32, 0.0  ;;  %v4926_v58 = vld [vmem:[#allocation46_spill] sm:$0xff] }
  0xf7   : > { %v3699_v40 = vsub.f32 %v4920_v43, %v627_v52  ;;  %v3702_v55 = vsub.f32 %v4922_v44, %v627_v52  ;;  %v1048_v63 = vsel %vm343_vm0, %v847_v12, 0.0  ;;  %v523_v24 = vpop.xlane.xlu0 %522  ;;  %v1045_v60 = vadd.f32 %v1044_v33, %v844_v47  ;;  %v4924_v12 = vld [vmem:[#allocation48_spill] sm:$0xff] }
  0xf8   : > { %4917 = vst [vmem:[#allocation44_spill] sm:$0xff] %v3692_v54  ;;  %4919 = vst [vmem:[#allocation42_spill] sm:$0xff] %v3695_v42  ;;  %v527_v28 = vpop.xlane.xlu1 %526  ;;  %v848_v11 = vmul.f32 %v3692_v54, %v3692_v54  ;;  %v849_v17 = vmul.f32 %v3695_v42, %v3695_v42  ;;  %v628_v34 = vmul.f32 0.0051020407, %v523_v24  ;;  %v1049_v52 = vadd.f32 %v1048_v63, %v846_v50  ;;  %v4928_v42 = vld [vmem:[#allocation49_spill] sm:$0xff]  ;;  %v4930_v54 = vld [vmem:[#allocation47_spill] sm:$0xff] }
  0xf9   : > { %4921 = vst [vmem:[#allocation45_spill] sm:$0xff] %v3699_v40  ;;  %4923 = vst [vmem:[#allocation43_spill] sm:$0xff] %v3702_v55  ;;  %v850_v32 = vmul.f32 %v3699_v40, %v3699_v40  ;;  %v851_v43 = vmul.f32 %v3702_v55, %v3702_v55  ;;  %1042 = vadd.xlane.f32.xlu1 %v1041_v8  ;;  %v629_v44 = vmul.f32 0.0051020407, %v527_v28  ;;  %1046 = vadd.xlane.f32.xlu0 %v1045_v60 }
  0xfa   : > { %v3714_v47 = vsub.f32 %v4924_v12, %v628_v34  ;;  %v3717_v16 = vsub.f32 %v4926_v58, %v628_v34  ;;  %v1052_v33 = vsel %vm343_vm0, %v849_v17, 0.0  ;;  %v4934_v12 = vld [vmem:[#allocation50_spill] sm:$0xff] }
  0xfb   : > { %v3721_v24 = vsub.f32 %v4928_v42, %v629_v44  ;;  %v3724_v40 = vsub.f32 %v4930_v54, %v629_v44  ;;  %v1056_v55 = vsel %vm343_vm0, %v851_v43, 0.0  ;;  %v531_v8 = vpop.xlane.xlu0 %530  ;;  %v1053_v28 = vadd.f32 %v1052_v33, %v848_v11  ;;  %v4932_v43 = vld [vmem:[#allocation52_spill] sm:$0xff] }
  0xfc   : > { %4925 = vst [vmem:[#allocation48_spill] sm:$0xff] %v3714_v47  ;;  %4927 = vst [vmem:[#allocation46_spill] sm:$0xff] %v3717_v16  ;;  %v535_v63 = vpop.xlane.xlu1 %534  ;;  %v852_v50 = vmul.f32 %v3714_v47, %v3714_v47  ;;  %v853_v60 = vmul.f32 %v3717_v16, %v3717_v16  ;;  %v630_v34 = vmul.f32 0.0051020407, %v531_v8  ;;  %v1057_v44 = vadd.f32 %v1056_v55, %v850_v32  ;;  %v4936_v16 = vld [vmem:[#allocation53_spill] sm:$0xff]  ;;  %v4938_v47 = vld [vmem:[#allocation51_spill] sm:$0xff] }
  0xfd   : > { %4929 = vst [vmem:[#allocation49_spill] sm:$0xff] %v3721_v24  ;;  %4931 = vst [vmem:[#allocation47_spill] sm:$0xff] %v3724_v40  ;;  %v854_v17 = vmul.f32 %v3721_v24, %v3721_v24  ;;  %v855_v42 = vmul.f32 %v3724_v40, %v3724_v40  ;;  %1050 = vadd.xlane.f32.xlu1 %v1049_v52  ;;  %v631_v54 = vmul.f32 0.0051020407, %v535_v63  ;;  %1054 = vadd.xlane.f32.xlu0 %v1053_v28 }
  0xfe   : > { %v3736_v11 = vsub.f32 %v4932_v43, %v630_v34  ;;  %v3739_v58 = vsub.f32 %v4934_v12, %v630_v34  ;;  %v1060_v33 = vsel %vm343_vm0, %v853_v60, 0.0  ;;  %v4942_v43 = vld [vmem:[#allocation54_spill] sm:$0xff] }
  0xff   : > { %v3743_v8 = vsub.f32 %v4936_v16, %v631_v54  ;;  %v3746_v24 = vsub.f32 %v4938_v47, %v631_v54  ;;  %v1064_v40 = vsel %vm343_vm0, %v855_v42, 0.0  ;;  %v539_v52 = vpop.xlane.xlu0 %538  ;;  %v1061_v63 = vadd.f32 %v1060_v33, %v852_v50  ;;  %v4940_v42 = vld [vmem:[#allocation56_spill] sm:$0xff] }
 0x100   : > { %4933 = vst [vmem:[#allocation52_spill] sm:$0xff] %v3736_v11  ;;  %4935 = vst [vmem:[#allocation50_spill] sm:$0xff] %v3739_v58  ;;  %v543_v55 = vpop.xlane.xlu1 %542  ;;  %v856_v32 = vmul.f32 %v3736_v11, %v3736_v11  ;;  %v857_v28 = vmul.f32 %v3739_v58, %v3739_v58  ;;  %v632_v34 = vmul.f32 0.0051020407, %v539_v52  ;;  %v1065_v54 = vadd.f32 %v1064_v40, %v854_v17  ;;  %v4944_v58 = vld [vmem:[#allocation57_spill] sm:$0xff]  ;;  %v4946_v11 = vld [vmem:[#allocation55_spill] sm:$0xff] }
 0x101   : > { %4937 = vst [vmem:[#allocation53_spill] sm:$0xff] %v3743_v8  ;;  %4939 = vst [vmem:[#allocation51_spill] sm:$0xff] %v3746_v24  ;;  %v858_v60 = vmul.f32 %v3743_v8, %v3743_v8  ;;  %v859_v16 = vmul.f32 %v3746_v24, %v3746_v24  ;;  %1058 = vadd.xlane.f32.xlu1 %v1057_v44  ;;  %v633_v47 = vmul.f32 0.0051020407, %v543_v55  ;;  %1062 = vadd.xlane.f32.xlu0 %v1061_v63 }
 0x102   : > { %v3758_v50 = vsub.f32 %v4940_v42, %v632_v34  ;;  %v3761_v12 = vsub.f32 %v4942_v43, %v632_v34  ;;  %v1068_v33 = vsel %vm343_vm0, %v857_v28, 0.0  ;;  %v4950_v42 = vld [vmem:[#allocation58_spill] sm:$0xff] }
 0x103   : > { %v3765_v52 = vsub.f32 %v4944_v58, %v633_v47  ;;  %v3768_v8 = vsub.f32 %v4946_v11, %v633_v47  ;;  %v1072_v24 = vsel %vm343_vm0, %v859_v16, 0.0  ;;  %v547_v44 = vpop.xlane.xlu0 %546  ;;  %v1069_v55 = vadd.f32 %v1068_v33, %v856_v32  ;;  %v4948_v16 = vld [vmem:[#allocation60_spill] sm:$0xff] }
 0x104   : > { %4941 = vst [vmem:[#allocation56_spill] sm:$0xff] %v3758_v50  ;;  %4943 = vst [vmem:[#allocation54_spill] sm:$0xff] %v3761_v12  ;;  %v551_v40 = vpop.xlane.xlu1 %550  ;;  %v860_v17 = vmul.f32 %v3758_v50, %v3758_v50  ;;  %v861_v63 = vmul.f32 %v3761_v12, %v3761_v12  ;;  %v634_v34 = vmul.f32 0.0051020407, %v547_v44  ;;  %v1073_v47 = vadd.f32 %v1072_v24, %v858_v60  ;;  %v4952_v12 = vld [vmem:[#allocation61_spill] sm:$0xff]  ;;  %v4954_v50 = vld [vmem:[#allocation59_spill] sm:$0xff] }
 0x105   : > { %4945 = vst [vmem:[#allocation57_spill] sm:$0xff] %v3765_v52  ;;  %4947 = vst [vmem:[#allocation55_spill] sm:$0xff] %v3768_v8  ;;  %v862_v28 = vmul.f32 %v3765_v52, %v3765_v52  ;;  %v863_v58 = vmul.f32 %v3768_v8, %v3768_v8  ;;  %1066 = vadd.xlane.f32.xlu1 %v1065_v54  ;;  %v635_v11 = vmul.f32 0.0051020407, %v551_v40  ;;  %1070 = vadd.xlane.f32.xlu0 %v1069_v55 }
 0x106   : > { %v3780_v32 = vsub.f32 %v4948_v16, %v634_v34  ;;  %v3783_v43 = vsub.f32 %v4950_v42, %v634_v34  ;;  %v1076_v33 = vsel %vm343_vm0, %v861_v63, 0.0  ;;  %v2672_v42 = vld [vmem:[%s2731_s18 + $0x348] sm:$0xff] }
 0x107   : > { %v3787_v44 = vsub.f32 %v4952_v12, %v635_v11  ;;  %v3790_v52 = vsub.f32 %v4954_v50, %v635_v11  ;;  %v1080_v54 = vsel %vm343_vm0, %v863_v58, 0.0  ;;  %v555_v40 = vpop.xlane.xlu0 %554  ;;  %v1077_v24 = vadd.f32 %v1076_v33, %v860_v17  ;;  %v4956_v17 = vld [vmem:[#allocation62_spill] sm:$0xff] }
 0x108   : > { %4949 = vst [vmem:[#allocation60_spill] sm:$0xff] %v3780_v32  ;;  %4951 = vst [vmem:[#allocation58_spill] sm:$0xff] %v3783_v43  ;;  %v559_v60 = vpop.xlane.xlu1 %558  ;;  %v864_v55 = vmul.f32 %v3780_v32, %v3780_v32  ;;  %v865_v34 = vmul.f32 %v3783_v43, %v3783_v43  ;;  %v636_v63 = vmul.f32 0.0051020407, %v555_v40  ;;  %v1081_v58 = vadd.f32 %v1080_v54, %v862_v28  ;;  %v4959_v43 = vld [vmem:[#allocation63_spill] sm:$0xff] }
 0x109   : > { %4953 = vst [vmem:[#allocation61_spill] sm:$0xff] %v3787_v44  ;;  %4955 = vst [vmem:[#allocation59_spill] sm:$0xff] %v3790_v52  ;;  %v866_v12 = vmul.f32 %v3787_v44, %v3787_v44  ;;  %v867_v50 = vmul.f32 %v3790_v52, %v3790_v52  ;;  %1074 = vadd.xlane.f32.xlu1 %v1073_v47  ;;  %v637_v11 = vmul.f32 0.0051020407, %v559_v60  ;;  %1078 = vadd.xlane.f32.xlu0 %v1077_v24  ;;  %v2673_v44 = vld [vmem:[%s2731_s18 + $0x358] sm:$0xff] }
 0x10a   : > { %v3802_v16 = vsub.f32 %v4956_v17, %v636_v63  ;;  %v3805_v33 = vsub.f32 %v2672_v42, %v636_v63  ;;  %v1084_v32 = vsel %vm343_vm0, %v865_v34, 0.0  ;;  %v2675_v17 = vld [vmem:[%s2731_s18 + $0x368] sm:$0xff] }
 0x10b   : > { %v3809_v40 = vsub.f32 %v4959_v43, %v637_v11  ;;  %v3812_v8 = vsub.f32 %v2673_v44, %v637_v11  ;;  %v1088_v47 = vsel %vm343_vm0, %v867_v50, 0.0  ;;  %v563_v28 = vpop.xlane.xlu0 %562  ;;  %v1085_v54 = vadd.f32 %v1084_v32, %v864_v55  ;;  %v2674_v32 = vld [vmem:[%s2731_s18 + $0x360] sm:$0xff] }
 0x10c   : > { %4957 = vst [vmem:[#allocation62_spill] sm:$0xff] %v3802_v16  ;;  %4958 = vst [vmem:[#allocation73_spill] sm:$0xff] %v3805_v33  ;;  %v567_v24 = vpop.xlane.xlu1 %566  ;;  %v868_v60 = vmul.f32 %v3802_v16, %v3802_v16  ;;  %v869_v34 = vmul.f32 %v3805_v33, %v3805_v33  ;;  %v638_v43 = vmul.f32 0.0051020407, %v563_v28  ;;  %v1089_v11 = vadd.f32 %v1088_v47, %v866_v12  ;;  %v2676_v33 = vld [vmem:[%s2731_s18 + $0x370] sm:$0xff] }
 0x10d   : > { %4960 = vst [vmem:[#allocation63_spill] sm:$0xff] %v3809_v40  ;;  %4961 = vst [vmem:[#allocation74_spill] sm:$0xff] %v3812_v8  ;;  %v870_v63 = vmul.f32 %v3809_v40, %v3809_v40  ;;  %v871_v44 = vmul.f32 %v3812_v8, %v3812_v8  ;;  %1082 = vadd.xlane.f32.xlu1 %v1081_v58  ;;  %v639_v50 = vmul.f32 0.0051020407, %v567_v24  ;;  %1086 = vadd.xlane.f32.xlu0 %v1085_v54  ;;  %v2677_v40 = vld [vmem:[%s2731_s18 + $0x378] sm:$0xff] }
 0x10e   : > { %v3824_v55 = vsub.f32 %v2674_v32, %v638_v43  ;;  %v3827_v42 = vsub.f32 %v2675_v17, %v638_v43  ;;  %v1092_v16 = vsel %vm343_vm0, %v869_v34, 0.0  ;;  %v2679_v32 = vld [vmem:[%s2731_s18 + $0x388] sm:$0xff] }
 0x10f   : > { %v3831_v28 = vsub.f32 %v2676_v33, %v639_v50  ;;  %v3834_v52 = vsub.f32 %v2677_v40, %v639_v50  ;;  %v1096_v58 = vsel %vm343_vm0, %v871_v44, 0.0  ;;  %v571_v12 = vpop.xlane.xlu0 %570  ;;  %v1093_v47 = vadd.f32 %v1092_v16, %v868_v60  ;;  %v2678_v16 = vld [vmem:[%s2731_s18 + $0x380] sm:$0xff] }
 0x110   : > { %4962 = vst [vmem:[#allocation75_spill] sm:$0xff] %v3824_v55  ;;  %4963 = vst [vmem:[#allocation76_spill] sm:$0xff] %v3827_v42  ;;  %v575_v54 = vpop.xlane.xlu1 %574  ;;  %v872_v24 = vmul.f32 %v3824_v55, %v3824_v55  ;;  %v873_v34 = vmul.f32 %v3827_v42, %v3827_v42  ;;  %v640_v33 = vmul.f32 0.0051020407, %v571_v12  ;;  %v1097_v50 = vadd.f32 %v1096_v58, %v870_v63  ;;  %v2680_v42 = vld [vmem:[%s2731_s18 + $0x390] sm:$0xff] }
 0x111   : > { %4964 = vst [vmem:[#allocation77_spill] sm:$0xff] %v3831_v28  ;;  %4965 = vst [vmem:[#allocation78_spill] sm:$0xff] %v3834_v52  ;;  %v874_v43 = vmul.f32 %v3831_v28, %v3831_v28  ;;  %v875_v40 = vmul.f32 %v3834_v52, %v3834_v52  ;;  %1090 = vadd.xlane.f32.xlu1 %v1089_v11  ;;  %v641_v44 = vmul.f32 0.0051020407, %v575_v54  ;;  %1094 = vadd.xlane.f32.xlu0 %v1093_v47  ;;  %v2681_v28 = vld [vmem:[%s2731_s18 + $0x398] sm:$0xff] }
 0x112   : > { %v3846_v60 = vsub.f32 %v2678_v16, %v640_v33  ;;  %v3849_v17 = vsub.f32 %v2679_v32, %v640_v33  ;;  %v1100_v55 = vsel %vm343_vm0, %v873_v34, 0.0  ;;  %v2683_v16 = vld [vmem:[%s2731_s18 + $0x3a8] sm:$0xff]  ;;  %v2685_v52 = vld [vmem:[%s2731_s18 + $0x3b8] sm:$0xff] }
 0x113   : > { %v3853_v12 = vsub.f32 %v2680_v42, %v641_v44  ;;  %v3856_v8 = vsub.f32 %v2681_v28, %v641_v44  ;;  %v1104_v11 = vsel %vm343_vm0, %v875_v40, 0.0  ;;  %v579_v63 = vpop.xlane.xlu0 %578  ;;  %v1101_v58 = vadd.f32 %v1100_v55, %v872_v24  ;;  %v2682_v55 = vld [vmem:[%s2731_s18 + $0x3a0] sm:$0xff] }
 0x114   : > { %4966 = vst [vmem:[#allocation79_spill] sm:$0xff] %v3846_v60  ;;  %4967 = vst [vmem:[#allocation80_spill] sm:$0xff] %v3849_v17  ;;  %v583_v47 = vpop.xlane.xlu1 %582  ;;  %v876_v54 = vmul.f32 %v3846_v60, %v3846_v60  ;;  %v877_v34 = vmul.f32 %v3849_v17, %v3849_v17  ;;  %v642_v42 = vmul.f32 0.0051020407, %v579_v63  ;;  %v1105_v44 = vadd.f32 %v1104_v11, %v874_v43  ;;  %v2684_v17 = vld [vmem:[%s2731_s18 + $0x3b0] sm:$0xff] }
 0x115   : > { %4968 = vst [vmem:[#allocation81_spill] sm:$0xff] %v3853_v12  ;;  %4969 = vst [vmem:[#allocation82_spill] sm:$0xff] %v3856_v8  ;;  %v878_v33 = vmul.f32 %v3853_v12, %v3853_v12  ;;  %v879_v28 = vmul.f32 %v3856_v8, %v3856_v8  ;;  %1098 = vadd.xlane.f32.xlu1 %v1097_v50  ;;  %v643_v40 = vmul.f32 0.0051020407, %v583_v47  ;;  %1102 = vadd.xlane.f32.xlu0 %v1101_v58 }
 0x116   : > { %v3868_v24 = vsub.f32 %v2682_v55, %v642_v42  ;;  %v3871_v32 = vsub.f32 %v2683_v16, %v642_v42  ;;  %v1108_v60 = vsel %vm343_vm0, %v877_v34, 0.0 }
 0x117   : > { %v3875_v63 = vsub.f32 %v2684_v17, %v643_v40  ;;  %v3878_v12 = vsub.f32 %v2685_v52, %v643_v40  ;;  %v1112_v8 = vsel %vm343_vm0, %v879_v28, 0.0  ;;  %v1109_v50 = vadd.f32 %v1108_v60, %v876_v54 }
 0x118   : > { %4970 = vst [vmem:[#allocation83_spill] sm:$0xff] %v3868_v24  ;;  %4971 = vst [vmem:[#allocation84_spill] sm:$0xff] %v3871_v32  ;;  %v880_v43 = vmul.f32 %v3868_v24, %v3868_v24  ;;  %v881_v11 = vmul.f32 %v3871_v32, %v3871_v32  ;;  %v1113_v17 = vadd.f32 %v1112_v8, %v878_v33 }
 0x119   : > { %4972 = vst [vmem:[#allocation85_spill] sm:$0xff] %v3875_v63  ;;  %4973 = vst [vmem:[#allocation86_spill] sm:$0xff] %v3878_v12  ;;  %v882_v58 = vmul.f32 %v3875_v63, %v3875_v63  ;;  %v883_v47 = vmul.f32 %v3878_v12, %v3878_v12  ;;  %1106 = vadd.xlane.f32.xlu1 %v1105_v44  ;;  %1110 = vadd.xlane.f32.xlu0 %v1109_v50 }
 0x11a   : > { %v1116_v52 = vsel %vm343_vm0, %v881_v11, 0.0 }
 0x11b   : > { %v1120_v34 = vsel %vm343_vm0, %v883_v47, 0.0  ;;  %v1117_v60 = vadd.f32 %v1116_v52, %v880_v43 }
 0x11c   : > { %v1121_v54 = vadd.f32 %v1120_v34, %v882_v58 }
 0x11d   : > { %1114 = vadd.xlane.f32.xlu1 %v1113_v17  ;;  %1118 = vadd.xlane.f32.xlu0 %v1117_v60 }
 0x121   : > { %1122 = vadd.xlane.f32.xlu1 %v1121_v54  ;;  %v1304_v54 = vld [vmem:[%s3897_s22] sm:$0xff] }
 0x132   : > { %v887_v42 = vpop.xlane.xlu0 %886 }
 0x133   : > { %v1124_v28 = vmul.f32 0.0051020407, %v887_v42 }
 0x135   : > { %v1184_v40 = vadd.f32 0.001, %v1124_v28 }
 0x136   : > { %v891_v55 = vpop.xlane.xlu1 %890  ;;  %v895_v16 = vpop.xlane.xlu0 %894 }
 0x137   : > { %2552 = vrsqrt.f32 %v1184_v40  ;;  %v1125_v32 = vmul.f32 0.0051020407, %v891_v55  ;;  %v1126_v44 = vmul.f32 0.0051020407, %v895_v16 }
 0x139   : > { %v1185_v8 = vadd.f32 0.001, %v1125_v32  ;;  %v1186_v33 = vadd.f32 0.001, %v1126_v44 }
 0x13a   : > { %v899_v50 = vpop.xlane.xlu1 %898  ;;  %v903_v11 = vpop.xlane.xlu0 %902 }
 0x13b   : > { %2554 = vrsqrt.f32 %v1185_v8  ;;  %v1127_v43 = vmul.f32 0.0051020407, %v899_v50  ;;  %v1128_v47 = vmul.f32 0.0051020407, %v903_v11  ;;  %v1305_v50 = vld [vmem:[%s3897_s22 + $0x8] sm:$0xff] }
 0x13c   : > { %2556 = vrsqrt.f32 %v1186_v33 }
 0x13d   : > { %v1187_v58 = vadd.f32 0.001, %v1127_v43  ;;  %v1188_v60 = vadd.f32 0.001, %v1128_v47 }
 0x13e   : > { %v907_v17 = vpop.xlane.xlu1 %906  ;;  %v911_v52 = vpop.xlane.xlu0 %910 }
 0x13f   : > { %2558 = vrsqrt.f32 %v1187_v58  ;;  %v1129_v34 = vmul.f32 0.0051020407, %v907_v17  ;;  %v1130_v42 = vmul.f32 0.0051020407, %v911_v52  ;;  %v1306_v58 = vld [vmem:[%s3897_s22 + $0x10] sm:$0xff] }
 0x140   : > { %2560 = vrsqrt.f32 %v1188_v60 }
 0x141   : > { %v1189_v40 = vadd.f32 0.001, %v1129_v34  ;;  %v1190_v33 = vadd.f32 0.001, %v1130_v42 }
 0x142   : > { %v915_v32 = vpop.xlane.xlu1 %914  ;;  %v919_v28 = vpop.xlane.xlu0 %918 }
 0x143   : > { %v1131_v44 = vmul.f32 0.0051020407, %v915_v32  ;;  %2562 = vrsqrt.f32 %v1189_v40  ;;  %v1132_v60 = vmul.f32 0.0051020407, %v919_v28  ;;  %v1307_v40 = vld [vmem:[%s3897_s22 + $0x18] sm:$0xff] }
 0x144   : > { %v2553_v55 = vpop.eup %2552  ;;  %2564 = vrsqrt.f32 %v1190_v33  ;;  %v1308_v33 = vld [vmem:[%s3897_s22 + $0x20] sm:$0xff] }
 0x145   : > { %v1364_v16 = vmul.f32 %v2553_v55, %v1304_v54  ;;  %v1191_v52 = vadd.f32 0.001, %v1131_v44 }
 0x146   : > { %v923_v8 = vpop.xlane.xlu1 %922  ;;  %v927_v11 = vpop.xlane.xlu0 %926 }
 0x147   : > { %v1133_v43 = vmul.f32 0.0051020407, %v923_v8  ;;  %1426 = vperm.xlu0 %2550, %v1364_v16   ;;  %v1192_v8 = vadd.f32 0.001, %v1132_v60  ;;  %v1134_v2 = vmul.f32 0.0051020407, %v927_v11 }
 0x148   : > { %v2555_v47 = vpop.eup %2554 }
 0x149   : > { %v2557_v17 = vpop.eup %2556  ;;  %v1193_v24 = vadd.f32 0.001, %v1133_v43  ;;  %v1365_v12 = vmul.f32 %v2555_v47, %v1305_v50  ;;  %v1194_v43 = vadd.f32 0.001, %v1134_v2 }
 0x14a   : > { %v931_v34 = vpop.xlane.xlu1 %930  ;;  %v935_v63 = vpop.xlane.xlu0 %934  ;;  %v1366_v54 = vmul.f32 %v2557_v17, %v1306_v58 }
 0x14b   : > { %2566 = vrsqrt.f32 %v1193_v24  ;;  %v1135_v32 = vmul.f32 0.0051020407, %v931_v34  ;;  %1431 = vperm.xlu1 %2551, %v1365_v12   ;;  %v1136_v47 = vmul.f32 0.0051020407, %v935_v63  ;;  %v1309_v34 = vld [vmem:[%s3897_s22 + $0x28] sm:$0xff] }
 0x14c   : > { %v2559_v42 = vpop.eup %2558  ;;  %2568 = vrsqrt.f32 %v1191_v52 }
 0x14d   : > { %v1195_v55 = vadd.f32 0.001, %v1135_v32  ;;  %v1367_v44 = vmul.f32 %v2559_v42, %v1307_v40  ;;  %v2561_v28 = vpop.eup %2560  ;;  %v1313_v42 = vld [vmem:[%s3897_s22 + $0x48] sm:$0xff] }
 0x14e   : > { %v939_v16 = vpop.xlane.xlu1 %938  ;;  %v943_v26 = vpop.xlane.xlu0 %942  ;;  %v1368_v52 = vmul.f32 %v2561_v28, %v1308_v33 }
 0x14f   : > { %2570 = vrsqrt.f32 %v1195_v55  ;;  %v1137_v50 = vmul.f32 0.0051020407, %v939_v16  ;;  %1436 = vperm.xlu1 %2551, %v1366_v54   ;;  %v1196_v54 = vadd.f32 0.001, %v1136_v47  ;;  %v1138_v40 = vmul.f32 0.0051020407, %v943_v26 }
 0x150   : > { %2572 = vrsqrt.f32 %v1192_v8  ;;  %v2563_v11 = vpop.eup %2562 }
 0x151   : > { %v1197_v24 = vadd.f32 0.001, %v1137_v50  ;;  %v2565_v16 = vpop.eup %2564  ;;  %v1369_v63 = vmul.f32 %v2563_v11, %v1309_v34  ;;  %v1310_v50 = vld [vmem:[%s3897_s22 + $0x30] sm:$0xff]  ;;  %v1311_v11 = vld [vmem:[%s3897_s22 + $0x38] sm:$0xff] }
 0x152   : > { %v947_v12 = vpop.xlane.xlu1 %946  ;;  %v951_v58 = vpop.xlane.xlu0 %950 }
 0x153   : > { %2574 = vrsqrt.f32 %v1197_v24  ;;  %v1139_v17 = vmul.f32 0.0051020407, %v947_v12  ;;  %1441 = vperm.xlu1 %2551, %v1367_v44   ;;  %v1198_v24 = vadd.f32 0.001, %v1138_v40  ;;  %v1315_v12 = vld [vmem:[%s3897_s22 + $0x58] sm:$0xff] }
 0x154   : > { %2576 = vrsqrt.f32 %v1194_v43  ;;  %v1140_v43 = vmul.f32 0.0051020407, %v951_v58 }
 0x155   : > { %v1199_v60 = vadd.f32 0.001, %v1139_v17 }
 0x156   : > { %v955_v32 = vpop.xlane.xlu1 %954  ;;  %v959_v55 = vpop.xlane.xlu0 %958 }
 0x157   : > { %2578 = vrsqrt.f32 %v1199_v60  ;;  %v1141_v2 = vmul.f32 0.0051020407, %v955_v32  ;;  %1446 = vperm.xlu1 %2551, %v1368_v52   ;;  %v1370_v60 = vmul.f32 %v2565_v16, %v1310_v50  ;;  %v1142_v40 = vmul.f32 0.0051020407, %v959_v55  ;;  %v1312_v16 = vld [vmem:[%s3897_s22 + $0x40] sm:$0xff] }
 0x158   : > { %v2567_v8 = vpop.eup %2566  ;;  %2580 = vrsqrt.f32 %v1196_v54  ;;  %v1200_v54 = vadd.f32 0.001, %v1140_v43 }
 0x159   : > { %v1201_v44 = vadd.f32 0.001, %v1141_v2  ;;  %v1373_v28 = vmul.f32 %v2567_v8, %v1313_v42  ;;  %v2569_v17 = vpop.eup %2568  ;;  %v1317_v2 = vld [vmem:[%s3897_s22 + $0x68] sm:$0xff] }
 0x15a   : > { %v963_v33 = vpop.xlane.xlu1 %962  ;;  %v967_v47 = vpop.xlane.xlu0 %966 }
 0x15b   : > { %2582 = vrsqrt.f32 %v1201_v44  ;;  %v1143_v26 = vmul.f32 0.0051020407, %v963_v33  ;;  %1471 = vperm.xlu0 %2550, %v1373_v28   ;;  %1451 = vperm.xlu1 %2551, %v1369_v63   ;;  %v1371_v44 = vmul.f32 %v2569_v17, %v1311_v11  ;;  %v1144_v43 = vmul.f32 0.0051020407, %v967_v47  ;;  %v1314_v17 = vld [vmem:[%s3897_s22 + $0x50] sm:$0xff] }
 0x15c   : > { %v2571_v52 = vpop.eup %2570  ;;  %2584 = vrsqrt.f32 %v1198_v24  ;;  %v1202_v24 = vadd.f32 0.001, %v1142_v40 }
 0x15d   : > { %v1203_v34 = vadd.f32 0.001, %v1143_v26  ;;  %v1375_v32 = vmul.f32 %v2571_v52, %v1315_v12  ;;  %v2573_v58 = vpop.eup %2572  ;;  %v1319_v12 = vld [vmem:[%s3897_s22 + $0x78] sm:$0xff] }
 0x15e   : > { %v971_v42 = vpop.xlane.xlu1 %970  ;;  %v975_v8 = vpop.xlane.xlu0 %974 }
 0x15f   : > { %2586 = vrsqrt.f32 %v1203_v34  ;;  %v1145_v27 = vmul.f32 0.0051020407, %v971_v42  ;;  %1481 = vperm.xlu0 %2550, %v1375_v32   ;;  %1456 = vperm.xlu1 %2551, %v1370_v60   ;;  %v1372_v34 = vmul.f32 %v2573_v58, %v1312_v16  ;;  %v1204_v42 = vadd.f32 0.001, %v1144_v43  ;;  %v1316_v58 = vld [vmem:[%s3897_s22 + $0x60] sm:$0xff] }
 0x160   : > { %v2575_v63 = vpop.eup %2574  ;;  %2588 = vrsqrt.f32 %v1200_v54  ;;  %v1321_v54 = vld [vmem:[%s3897_s22 + $0x88] sm:$0xff] }
 0x161   : > { %v1205_v50 = vadd.f32 0.001, %v1145_v27  ;;  %v1377_v28 = vmul.f32 %v2575_v63, %v1317_v2  ;;  %v2577_v55 = vpop.eup %2576  ;;  %v1146_v2 = vmul.f32 0.0051020407, %v975_v8 }
 0x162   : > { %v979_v33 = vpop.xlane.xlu1 %978  ;;  %v983_v26 = vpop.xlane.xlu0 %982 }
 0x163   : > { %2590 = vrsqrt.f32 %v1205_v50  ;;  %v1147_v52 = vmul.f32 0.0051020407, %v979_v33  ;;  %1491 = vperm.xlu0 %2550, %v1377_v28   ;;  %1461 = vperm.xlu1 %2551, %v1371_v44   ;;  %v1374_v50 = vmul.f32 %v2577_v55, %v1314_v17  ;;  %v1148_v43 = vmul.f32 0.0051020407, %v983_v26  ;;  %v1318_v55 = vld [vmem:[%s3897_s22 + $0x70] sm:$0xff] }
 0x164   : > { %v2579_v60 = vpop.eup %2578  ;;  %2592 = vrsqrt.f32 %v1202_v24  ;;  %v1206_v24 = vadd.f32 0.001, %v1146_v2 }
 0x165   : > { %v1207_v11 = vadd.f32 0.001, %v1147_v52  ;;  %v1379_v32 = vmul.f32 %v2579_v60, %v1319_v12  ;;  %v2581_v47 = vpop.eup %2580  ;;  %v1323_v12 = vld [vmem:[%s3897_s22 + $0x98] sm:$0xff] }
 0x166   : > { %v987_v27 = vpop.xlane.xlu1 %986  ;;  %v991_v40 = vpop.xlane.xlu0 %990 }
 0x167   : > { %2594 = vrsqrt.f32 %v1207_v11  ;;  %v1149_v63 = vmul.f32 0.0051020407, %v987_v27  ;;  %1501 = vperm.xlu0 %2550, %v1379_v32   ;;  %1466 = vperm.xlu1 %2551, %v1372_v34   ;;  %v1376_v11 = vmul.f32 %v2581_v47, %v1316_v58  ;;  %v1150_v2 = vmul.f32 0.0051020407, %v991_v40  ;;  %v1320_v47 = vld [vmem:[%s3897_s22 + $0x80] sm:$0xff] }
 0x168   : > { %v2583_v44 = vpop.eup %2582  ;;  %2596 = vrsqrt.f32 %v1204_v42  ;;  %v1208_v42 = vadd.f32 0.001, %v1148_v43 }
 0x169   : > { %v1209_v16 = vadd.f32 0.001, %v1149_v63  ;;  %v1381_v28 = vmul.f32 %v2583_v44, %v1321_v54  ;;  %v2585_v8 = vpop.eup %2584  ;;  %v1325_v54 = vld [vmem:[%s3897_s22 + $0xa8] sm:$0xff] }
 0x16a   : > { %v995_v33 = vpop.xlane.xlu1 %994  ;;  %v999_v52 = vpop.xlane.xlu0 %998 }
 0x16b   : > { %2598 = vrsqrt.f32 %v1209_v16  ;;  %v1151_v60 = vmul.f32 0.0051020407, %v995_v33  ;;  %1511 = vperm.xlu0 %2550, %v1381_v28   ;;  %1476 = vperm.xlu1 %2551, %v1374_v50   ;;  %v1378_v16 = vmul.f32 %v2585_v8, %v1318_v55  ;;  %v1152_v43 = vmul.f32 0.0051020407, %v999_v52  ;;  %v1322_v8 = vld [vmem:[%s3897_s22 + $0x90] sm:$0xff] }
 0x16c   : > { %v2587_v34 = vpop.eup %2586  ;;  %2600 = vrsqrt.f32 %v1206_v24  ;;  %v1210_v24 = vadd.f32 0.001, %v1150_v2 }
 0x16d   : > { %v1211_v17 = vadd.f32 0.001, %v1151_v60  ;;  %v1383_v32 = vmul.f32 %v2587_v34, %v1323_v12  ;;  %v2589_v26 = vpop.eup %2588  ;;  %v1327_v12 = vld [vmem:[%s3897_s22 + $0xb8] sm:$0xff] }
 0x16e   : > { %v1003_v27 = vpop.xlane.xlu1 %1002  ;;  %v1007_v63 = vpop.xlane.xlu0 %1006 }
 0x16f   : > { %2602 = vrsqrt.f32 %v1211_v17  ;;  %v1153_v44 = vmul.f32 0.0051020407, %v1003_v27  ;;  %1521 = vperm.xlu0 %2550, %v1383_v32   ;;  %1486 = vperm.xlu1 %2551, %v1376_v11   ;;  %v1380_v17 = vmul.f32 %v2589_v26, %v1320_v47  ;;  %v1154_v2 = vmul.f32 0.0051020407, %v1007_v63  ;;  %v1324_v26 = vld [vmem:[%s3897_s22 + $0xa0] sm:$0xff] }
 0x170   : > { %v2591_v50 = vpop.eup %2590  ;;  %2604 = vrsqrt.f32 %v1208_v42  ;;  %v1212_v42 = vadd.f32 0.001, %v1152_v43 }
 0x171   : > { %v1213_v58 = vadd.f32 0.001, %v1153_v44  ;;  %v1385_v28 = vmul.f32 %v2591_v50, %v1325_v54  ;;  %v2593_v40 = vpop.eup %2592  ;;  %v1329_v54 = vld [vmem:[%s3897_s22 + $0xc8] sm:$0xff] }
 0x172   : > { %v1011_v33 = vpop.xlane.xlu1 %1010  ;;  %v1015_v60 = vpop.xlane.xlu0 %1014 }
 0x173   : > { %2606 = vrsqrt.f32 %v1213_v58  ;;  %v1155_v34 = vmul.f32 0.0051020407, %v1011_v33  ;;  %1531 = vperm.xlu0 %2550, %v1385_v28   ;;  %1496 = vperm.xlu1 %2551, %v1378_v16   ;;  %v1382_v58 = vmul.f32 %v2593_v40, %v1322_v8  ;;  %v1156_v43 = vmul.f32 0.0051020407, %v1015_v60  ;;  %v1326_v40 = vld [vmem:[%s3897_s22 + $0xb0] sm:$0xff] }
 0x174   : > { %v2595_v11 = vpop.eup %2594  ;;  %2608 = vrsqrt.f32 %v1210_v24  ;;  %v1214_v24 = vadd.f32 0.001, %v1154_v2 }
 0x175   : > { %v1215_v55 = vadd.f32 0.001, %v1155_v34  ;;  %v1387_v32 = vmul.f32 %v2595_v11, %v1327_v12  ;;  %v2597_v52 = vpop.eup %2596  ;;  %v1331_v12 = vld [vmem:[%s3897_s22 + $0xd8] sm:$0xff] }
 0x176   : > { %v1019_v27 = vpop.xlane.xlu1 %1018  ;;  %v1023_v44 = vpop.xlane.xlu0 %1022 }
 0x177   : > { %2610 = vrsqrt.f32 %v1215_v55  ;;  %v1157_v50 = vmul.f32 0.0051020407, %v1019_v27  ;;  %1541 = vperm.xlu0 %2550, %v1387_v32   ;;  %1506 = vperm.xlu1 %2551, %v1380_v17   ;;  %v1384_v55 = vmul.f32 %v2597_v52, %v1324_v26  ;;  %v1158_v2 = vmul.f32 0.0051020407, %v1023_v44  ;;  %v1328_v52 = vld [vmem:[%s3897_s22 + $0xc0] sm:$0xff] }
 0x178   : > { %v2599_v16 = vpop.eup %2598  ;;  %2612 = vrsqrt.f32 %v1212_v42  ;;  %v1216_v42 = vadd.f32 0.001, %v1156_v43 }
 0x179   : > { %v1217_v47 = vadd.f32 0.001, %v1157_v50  ;;  %v1389_v28 = vmul.f32 %v2599_v16, %v1329_v54  ;;  %v2601_v63 = vpop.eup %2600  ;;  %v1333_v54 = vld [vmem:[%s3897_s22 + $0xe8] sm:$0xff] }
 0x17a   : > { %v1027_v33 = vpop.xlane.xlu1 %1026  ;;  %v1031_v34 = vpop.xlane.xlu0 %1030 }
 0x17b   : > { %2614 = vrsqrt.f32 %v1217_v47  ;;  %v1159_v11 = vmul.f32 0.0051020407, %v1027_v33  ;;  %1551 = vperm.xlu0 %2550, %v1389_v28   ;;  %1516 = vperm.xlu1 %2551, %v1382_v58   ;;  %v1386_v47 = vmul.f32 %v2601_v63, %v1326_v40  ;;  %v1160_v43 = vmul.f32 0.0051020407, %v1031_v34  ;;  %v1330_v63 = vld [vmem:[%s3897_s22 + $0xd0] sm:$0xff] }
 0x17c   : > { %v2603_v17 = vpop.eup %2602  ;;  %2616 = vrsqrt.f32 %v1214_v24  ;;  %v1218_v24 = vadd.f32 0.001, %v1158_v2 }
 0x17d   : > { %v1219_v8 = vadd.f32 0.001, %v1159_v11  ;;  %v1391_v32 = vmul.f32 %v2603_v17, %v1331_v12  ;;  %v2605_v60 = vpop.eup %2604  ;;  %v1335_v12 = vld [vmem:[%s3897_s22 + $0xf8] sm:$0xff] }
 0x17e   : > { %v1035_v27 = vpop.xlane.xlu1 %1034  ;;  %v1039_v50 = vpop.xlane.xlu0 %1038 }
 0x17f   : > { %2618 = vrsqrt.f32 %v1219_v8  ;;  %v1161_v16 = vmul.f32 0.0051020407, %v1035_v27  ;;  %1561 = vperm.xlu0 %2550, %v1391_v32   ;;  %1526 = vperm.xlu1 %2551, %v1384_v55   ;;  %v1388_v8 = vmul.f32 %v2605_v60, %v1328_v52  ;;  %v1162_v2 = vmul.f32 0.0051020407, %v1039_v50  ;;  %v1332_v60 = vld [vmem:[%s3897_s22 + $0xe0] sm:$0xff] }
 0x180   : > { %v2607_v58 = vpop.eup %2606  ;;  %2620 = vrsqrt.f32 %v1216_v42  ;;  %v1220_v42 = vadd.f32 0.001, %v1160_v43 }
 0x181   : > { %v1221_v26 = vadd.f32 0.001, %v1161_v16  ;;  %v1393_v28 = vmul.f32 %v2607_v58, %v1333_v54  ;;  %v2609_v44 = vpop.eup %2608  ;;  %v1337_v54 = vld [vmem:[%s3897_s22 + $0x108] sm:$0xff] }
 0x182   : > { %v1043_v33 = vpop.xlane.xlu1 %1042  ;;  %v1047_v11 = vpop.xlane.xlu0 %1046 }
 0x183   : > { %2622 = vrsqrt.f32 %v1221_v26  ;;  %v1163_v17 = vmul.f32 0.0051020407, %v1043_v33  ;;  %1571 = vperm.xlu0 %2550, %v1393_v28   ;;  %1536 = vperm.xlu1 %2551, %v1386_v47   ;;  %v1390_v26 = vmul.f32 %v2609_v44, %v1330_v63  ;;  %v1164_v43 = vmul.f32 0.0051020407, %v1047_v11  ;;  %v1334_v44 = vld [vmem:[%s3897_s22 + $0xf0] sm:$0xff] }
 0x184   : > { %v2611_v55 = vpop.eup %2610  ;;  %2624 = vrsqrt.f32 %v1218_v24  ;;  %v1222_v24 = vadd.f32 0.001, %v1162_v2 }
 0x185   : > { %v1223_v40 = vadd.f32 0.001, %v1163_v17  ;;  %v1395_v32 = vmul.f32 %v2611_v55, %v1335_v12  ;;  %v2613_v34 = vpop.eup %2612  ;;  %v1339_v12 = vld [vmem:[%s3897_s22 + $0x118] sm:$0xff] }
 0x186   : > { %v1051_v27 = vpop.xlane.xlu1 %1050  ;;  %v1055_v16 = vpop.xlane.xlu0 %1054 }
 0x187   : > { %2626 = vrsqrt.f32 %v1223_v40  ;;  %v1165_v58 = vmul.f32 0.0051020407, %v1051_v27  ;;  %1581 = vperm.xlu0 %2550, %v1395_v32   ;;  %1546 = vperm.xlu1 %2551, %v1388_v8   ;;  %v1392_v40 = vmul.f32 %v2613_v34, %v1332_v60  ;;  %v1166_v2 = vmul.f32 0.0051020407, %v1055_v16  ;;  %v1336_v34 = vld [vmem:[%s3897_s22 + $0x100] sm:$0xff] }
 0x188   : > { %v2615_v47 = vpop.eup %2614  ;;  %2628 = vrsqrt.f32 %v1220_v42  ;;  %v1224_v42 = vadd.f32 0.001, %v1164_v43 }
 0x189   : > { %v1225_v52 = vadd.f32 0.001, %v1165_v58  ;;  %v1397_v28 = vmul.f32 %v2615_v47, %v1337_v54  ;;  %v2617_v50 = vpop.eup %2616  ;;  %v1341_v54 = vld [vmem:[%s3897_s22 + $0x128] sm:$0xff] }
 0x18a   : > { %v1059_v33 = vpop.xlane.xlu1 %1058  ;;  %v1063_v17 = vpop.xlane.xlu0 %1062 }
 0x18b   : > { %2630 = vrsqrt.f32 %v1225_v52  ;;  %v1167_v55 = vmul.f32 0.0051020407, %v1059_v33  ;;  %1591 = vperm.xlu0 %2550, %v1397_v28   ;;  %1556 = vperm.xlu1 %2551, %v1390_v26   ;;  %v1394_v52 = vmul.f32 %v2617_v50, %v1334_v44  ;;  %v1168_v43 = vmul.f32 0.0051020407, %v1063_v17  ;;  %v1338_v50 = vld [vmem:[%s3897_s22 + $0x110] sm:$0xff] }
 0x18c   : > { %v2619_v8 = vpop.eup %2618  ;;  %2632 = vrsqrt.f32 %v1222_v24  ;;  %v1226_v24 = vadd.f32 0.001, %v1166_v2 }
 0x18d   : > { %v1227_v63 = vadd.f32 0.001, %v1167_v55  ;;  %v1399_v32 = vmul.f32 %v2619_v8, %v1339_v12  ;;  %v2621_v11 = vpop.eup %2620  ;;  %v1343_v12 = vld [vmem:[%s3897_s22 + $0x138] sm:$0xff] }
 0x18e   : > { %v1067_v27 = vpop.xlane.xlu1 %1066  ;;  %v1071_v58 = vpop.xlane.xlu0 %1070 }
 0x18f   : > { %2634 = vrsqrt.f32 %v1227_v63  ;;  %v1169_v47 = vmul.f32 0.0051020407, %v1067_v27  ;;  %1601 = vperm.xlu0 %2550, %v1399_v32   ;;  %1566 = vperm.xlu1 %2551, %v1392_v40   ;;  %v1396_v63 = vmul.f32 %v2621_v11, %v1336_v34  ;;  %v1170_v2 = vmul.f32 0.0051020407, %v1071_v58  ;;  %v1340_v11 = vld [vmem:[%s3897_s22 + $0x120] sm:$0xff] }
 0x190   : > { %v2623_v26 = vpop.eup %2622  ;;  %2636 = vrsqrt.f32 %v1224_v42  ;;  %v1228_v42 = vadd.f32 0.001, %v1168_v43 }
 0x191   : > { %v1229_v60 = vadd.f32 0.001, %v1169_v47  ;;  %v1401_v28 = vmul.f32 %v2623_v26, %v1341_v54  ;;  %v2625_v16 = vpop.eup %2624  ;;  %v1345_v54 = vld [vmem:[%s3897_s22 + $0x148] sm:$0xff] }
 0x192   : > { %v1075_v33 = vpop.xlane.xlu1 %1074  ;;  %v1079_v55 = vpop.xlane.xlu0 %1078 }
 0x193   : > { %2638 = vrsqrt.f32 %v1229_v60  ;;  %v1171_v8 = vmul.f32 0.0051020407, %v1075_v33  ;;  %1611 = vperm.xlu0 %2550, %v1401_v28   ;;  %1576 = vperm.xlu1 %2551, %v1394_v52   ;;  %v1398_v60 = vmul.f32 %v2625_v16, %v1338_v50  ;;  %v1172_v43 = vmul.f32 0.0051020407, %v1079_v55  ;;  %v1342_v16 = vld [vmem:[%s3897_s22 + $0x130] sm:$0xff] }
 0x194   : > { %v2627_v40 = vpop.eup %2626  ;;  %2640 = vrsqrt.f32 %v1226_v24  ;;  %v1230_v24 = vadd.f32 0.001, %v1170_v2 }
 0x195   : > { %v1231_v44 = vadd.f32 0.001, %v1171_v8  ;;  %v1403_v32 = vmul.f32 %v2627_v40, %v1343_v12  ;;  %v2629_v17 = vpop.eup %2628  ;;  %v1347_v12 = vld [vmem:[%s3897_s22 + $0x158] sm:$0xff] }
 0x196   : > { %v1083_v27 = vpop.xlane.xlu1 %1082  ;;  %v1087_v47 = vpop.xlane.xlu0 %1086 }
 0x197   : > { %2642 = vrsqrt.f32 %v1231_v44  ;;  %v1173_v26 = vmul.f32 0.0051020407, %v1083_v27  ;;  %1621 = vperm.xlu0 %2550, %v1403_v32   ;;  %1586 = vperm.xlu1 %2551, %v1396_v63   ;;  %v1400_v44 = vmul.f32 %v2629_v17, %v1340_v11  ;;  %v1174_v2 = vmul.f32 0.0051020407, %v1087_v47 }
 0x198   : > { %v2631_v52 = vpop.eup %2630  ;;  %2644 = vrsqrt.f32 %v1228_v42  ;;  %v1232_v42 = vadd.f32 0.001, %v1172_v43 }
 0x199   : > { %v1233_v34 = vadd.f32 0.001, %v1173_v26  ;;  %v1405_v28 = vmul.f32 %v2631_v52, %v1345_v54  ;;  %v2633_v58 = vpop.eup %2632  ;;  %v1349_v54 = vld [vmem:[%s3897_s22 + $0x168] sm:$0xff] }
 0x19a   : > { %v1091_v33 = vpop.xlane.xlu1 %1090  ;;  %v1095_v8 = vpop.xlane.xlu0 %1094  ;;  %v1402_v52 = vmul.f32 %v2633_v58, %v1342_v16  ;;  %v1346_v58 = vld [vmem:[%s3897_s22 + $0x150] sm:$0xff] }
 0x19b   : > { %2646 = vrsqrt.f32 %v1233_v34  ;;  %v1175_v40 = vmul.f32 0.0051020407, %v1091_v33  ;;  %1631 = vperm.xlu0 %2550, %v1405_v28   ;;  %1596 = vperm.xlu1 %2551, %v1398_v60   ;;  %v1344_v60 = vld [vmem:[%s3897_s22 + $0x140] sm:$0xff]  ;;  %v1176_v43 = vmul.f32 0.0051020407, %v1095_v8 }
 0x19c   : > { %v2635_v63 = vpop.eup %2634  ;;  %2648 = vrsqrt.f32 %v1230_v24  ;;  %v1234_v24 = vadd.f32 0.001, %v1174_v2 }
 0x19d   : > { %v1235_v50 = vadd.f32 0.001, %v1175_v40  ;;  %v1407_v32 = vmul.f32 %v2635_v63, %v1347_v12  ;;  %v2637_v26 = vpop.eup %2636  ;;  %v1351_v12 = vld [vmem:[%s3897_s22 + $0x178] sm:$0xff] }
 0x19e   : > { %v1099_v27 = vpop.xlane.xlu1 %1098  ;;  %v1103_v17 = vpop.xlane.xlu0 %1102  ;;  %v1404_v63 = vmul.f32 %v2637_v26, %v1344_v60  ;;  %v1348_v26 = vld [vmem:[%s3897_s22 + $0x160] sm:$0xff] }
 0x19f   : > { %2650 = vrsqrt.f32 %v1235_v50  ;;  %v1177_v55 = vmul.f32 0.0051020407, %v1099_v27  ;;  %1641 = vperm.xlu0 %2550, %v1407_v32   ;;  %1606 = vperm.xlu1 %2551, %v1400_v44   ;;  %v1236_v27 = vadd.f32 0.001, %v1176_v43 }
 0x1a0   : > { %v2639_v34 = vpop.eup %2638  ;;  %2652 = vrsqrt.f32 %v1232_v42  ;;  %v1353_v42 = vld [vmem:[%s3897_s22 + $0x188] sm:$0xff] }
 0x1a1   : > { %v1237_v11 = vadd.f32 0.001, %v1177_v55  ;;  %v1409_v28 = vmul.f32 %v2639_v34, %v1349_v54  ;;  %v2641_v40 = vpop.eup %2640  ;;  %v1178_v54 = vmul.f32 0.0051020407, %v1103_v17 }
 0x1a2   : > { %v1107_v33 = vpop.xlane.xlu1 %1106  ;;  %v1111_v2 = vpop.xlane.xlu0 %1110  ;;  %v1406_v34 = vmul.f32 %v2641_v40, %v1346_v58  ;;  %v1350_v40 = vld [vmem:[%s3897_s22 + $0x170] sm:$0xff] }
 0x1a3   : > { %2654 = vrsqrt.f32 %v1237_v11  ;;  %v1179_v47 = vmul.f32 0.0051020407, %v1107_v33  ;;  %1651 = vperm.xlu0 %2550, %v1409_v28   ;;  %1616 = vperm.xlu1 %2551, %v1402_v52   ;;  %v1238_v33 = vadd.f32 0.001, %v1178_v54 }
 0x1a4   : > { %v2643_v44 = vpop.eup %2642  ;;  %2656 = vrsqrt.f32 %v1234_v24  ;;  %v1355_v24 = vld [vmem:[%s3897_s22 + $0x198] sm:$0xff] }
 0x1a5   : > { %v1239_v16 = vadd.f32 0.001, %v1179_v47  ;;  %v1411_v50 = vmul.f32 %v2643_v44, %v1351_v12  ;;  %v2645_v55 = vpop.eup %2644  ;;  %v1180_v47 = vmul.f32 0.0051020407, %v1111_v2  ;;  %v1352_v2 = vld [vmem:[%s3897_s22 + $0x180] sm:$0xff] }
 0x1a6   : > { %v1115_v32 = vpop.xlane.xlu1 %1114  ;;  %v1408_v43 = vmul.f32 %v2645_v55, %v1348_v26  ;;  %v1119_v44 = vpop.xlane.xlu0 %1118 }
 0x1a7   : > { %2658 = vrsqrt.f32 %v1239_v16  ;;  %v1181_v8 = vmul.f32 0.0051020407, %v1115_v32  ;;  %1661 = vperm.xlu0 %2550, %v1411_v50   ;;  %1626 = vperm.xlu1 %2551, %v1404_v63   ;;  %v1357_v50 = vld [vmem:[%s3897_s22 + $0x1a8] sm:$0xff]  ;;  %v1182_v54 = vmul.f32 0.0051020407, %v1119_v44 }
 0x1a8   : > { %v2647_v52 = vpop.eup %2646  ;;  %2660 = vrsqrt.f32 %v1236_v27  ;;  %v1240_v27 = vadd.f32 0.001, %v1180_v47  ;;  %v1356_v47 = vld [vmem:[%s3897_s22 + $0x1a0] sm:$0xff] }
 0x1a9   : > { %v1241_v60 = vadd.f32 0.001, %v1181_v8  ;;  %v1413_v11 = vmul.f32 %v2647_v52, %v1353_v42  ;;  %v2649_v12 = vpop.eup %2648  ;;  %v1242_v26 = vadd.f32 0.001, %v1182_v54  ;;  %v1845_v54 = vld [vmem:[%s3962_s25 + $0x8] sm:$0xff] }
 0x1aa   : > { %v1123_v28 = vpop.xlane.xlu1 %1122  ;;  %v1410_v42 = vmul.f32 %v2649_v12, %v1350_v40  ;;  %v1363_v40 = vld [vmem:[%s3897_s22 + $0x1d8] sm:$0xff] }
 0x1ab   : > { %2662 = vrsqrt.f32 %v1241_v60  ;;  %v1183_v17 = vmul.f32 0.0051020407, %v1123_v28  ;;  %1671 = vperm.xlu0 %2550, %v1413_v11   ;;  %1636 = vperm.xlu1 %2551, %v1406_v34   ;;  %v1359_v34 = vld [vmem:[%s3897_s22 + $0x1b8] sm:$0xff]  ;;  %v1354_v28 = vld [vmem:[%s3897_s22 + $0x190] sm:$0xff] }
 0x1ac   : > { %v2651_v63 = vpop.eup %2650  ;;  %2664 = vrsqrt.f32 %v1238_v33 }
 0x1ad   : > { %v1243_v58 = vadd.f32 0.001, %v1183_v17  ;;  %v1415_v16 = vmul.f32 %v2651_v63, %v1355_v24  ;;  %v2653_v32 = vpop.eup %2652  ;;  %v1361_v24 = vld [vmem:[%s3897_s22 + $0x1c8] sm:$0xff] }
 0x1ae   : > { %v1412_v60 = vmul.f32 %v2653_v32, %v1352_v2 }
 0x1af   : > { %2666 = vrsqrt.f32 %v1243_v58  ;;  %1681 = vperm.xlu0 %2550, %v1415_v16   ;;  %1646 = vperm.xlu1 %2551, %v1408_v43  }
 0x1b0   : > { %v2655_v55 = vpop.eup %2654  ;;  %2668 = vrsqrt.f32 %v1240_v27 }
 0x1b1   : > { %v1417_v8 = vmul.f32 %v2655_v55, %v1357_v50  ;;  %v2657_v52 = vpop.eup %2656  ;;  %2670 = vrsqrt.f32 %v1242_v26  ;;  %v1358_v50 = vld [vmem:[%s3897_s22 + $0x1b0] sm:$0xff]  ;;  %v1360_v55 = vld [vmem:[%s3897_s22 + $0x1c0] sm:$0xff] }
 0x1b2   : > { %v1414_v12 = vmul.f32 %v2657_v52, %v1354_v28  ;;  %v1362_v52 = vld [vmem:[%s3897_s22 + $0x1d0] sm:$0xff] }
 0x1b3   : > { %1691 = vperm.xlu0 %2550, %v1417_v8   ;;  %1656 = vperm.xlu1 %2551, %v1410_v42  }
 0x1b4   : > { %v2659_v11 = vpop.eup %2658 }
 0x1b5   : > { %v1419_v33 = vmul.f32 %v2659_v11, %v1359_v34  ;;  %v2661_v17 = vpop.eup %2660  ;;  %v1847_v34 = vld [vmem:[%s3962_s25 + $0x18] sm:$0xff]  ;;  %v1849_v11 = vld [vmem:[%s3962_s25 + $0x28] sm:$0xff] }
 0x1b6   : > { %v1416_v58 = vmul.f32 %v2661_v17, %v1356_v47 }
 0x1b7   : > { %1701 = vperm.xlu0 %2550, %v1419_v33   ;;  %1666 = vperm.xlu1 %2551, %v1412_v60   ;;  %v1851_v33 = vld [vmem:[%s3962_s25 + $0x38] sm:$0xff] }
 0x1b8   : > { %v2663_v43 = vpop.eup %2662 }
 0x1b9   : > { %v1421_v63 = vmul.f32 %v2663_v43, %v1361_v24  ;;  %v2665_v44 = vpop.eup %2664  ;;  %v1844_v24 = vld [vmem:[%s3962_s25] sm:$0xff]  ;;  %v1846_v43 = vld [vmem:[%s3962_s25 + $0x10] sm:$0xff] }
 0x1ba   : > { %v1418_v27 = vmul.f32 %v2665_v44, %v1358_v50  ;;  %v1848_v44 = vld [vmem:[%s3962_s25 + $0x20] sm:$0xff]  ;;  %v1857_v50 = vld [vmem:[%s3962_s25 + $0x68] sm:$0xff] }
 0x1bb   : > { %1711 = vperm.xlu0 %2550, %v1421_v63   ;;  %1676 = vperm.xlu1 %2551, %v1414_v12   ;;  %v1853_v12 = vld [vmem:[%s3962_s25 + $0x48] sm:$0xff] }
 0x1bc   : > { %v2667_v16 = vpop.eup %2666 }
 0x1bd   : > { %v1423_v32 = vmul.f32 %v2667_v16, %v1363_v40  ;;  %v2669_v42 = vpop.eup %2668  ;;  %v1855_v40 = vld [vmem:[%s3962_s25 + $0x58] sm:$0xff] }
 0x1be   : > { %v1420_v2 = vmul.f32 %v2669_v42, %v1360_v55  ;;  %v2671_v8 = vpop.eup %2670  ;;  %v1852_v55 = vld [vmem:[%s3962_s25 + $0x40] sm:$0xff] }
 0x1bf   : > { %1721 = vperm.xlu0 %2550, %v1423_v32   ;;  %1686 = vperm.xlu1 %2551, %v1416_v58   ;;  %v1422_v60 = vmul.f32 %v2671_v8, %v1362_v52  ;;  %v1850_v32 = vld [vmem:[%s3962_s25 + $0x30] sm:$0xff] }
 0x1c0   : > { %v1854_v52 = vld [vmem:[%s3962_s25 + $0x50] sm:$0xff] }
 0x1c2   : > { %v3979_v47 = vpop.permute.xlu0 %1426 }
 0x1c3   : > { %1911 = vperm.xlu0 %2550, %v1845_v54   ;;  %1696 = vperm.xlu1 %2551, %v1418_v27   ;;  %v1859_v54 = vld [vmem:[%s3962_s25 + $0x78] sm:$0xff] }
 0x1c6   : > { %v3968_v26 = vpop.permute.xlu1 %1431 }
 0x1c7   : > { %1921 = vperm.xlu0 %2550, %v1847_v34   ;;  %1706 = vperm.xlu1 %2551, %v1420_v2   ;;  %v1861_v34 = vld [vmem:[%s3962_s25 + $0x88] sm:$0xff] }
 0x1ca   : > { %v3971_v28 = vpop.permute.xlu1 %1436 }
 0x1cb   : > { %1931 = vperm.xlu0 %2550, %v1849_v11   ;;  %1716 = vperm.xlu1 %2551, %v1422_v60  }
 0x1ce   : > { %v3975_v17 = vpop.permute.xlu1 %1441 }
 0x1cf   : > { %1941 = vperm.xlu0 %2550, %v1851_v33   ;;  %1906 = vperm.xlu1 %2551, %v1844_v24   ;;  %v1863_v33 = vld [vmem:[%s3962_s25 + $0x98] sm:$0xff]  ;;  %v1856_v24 = vld [vmem:[%s3962_s25 + $0x60] sm:$0xff] }
 0x1d2   : > { %v3981_v63 = vpop.permute.xlu1 %1446 }
 0x1d3   : > { %1951 = vperm.xlu0 %2550, %v1853_v12   ;;  %1916 = vperm.xlu1 %2551, %v1846_v43  }
 0x1d6   : > { %v3985_v58 = vpop.permute.xlu1 %1451  ;;  %v3987_v16 = vpop.permute.xlu0 %1471 }
 0x1d7   : > { %1961 = vperm.xlu0 %2550, %v1855_v40   ;;  %1926 = vperm.xlu1 %2551, %v1848_v44   ;;  %v1865_v40 = vld [vmem:[%s3962_s25 + $0xa8] sm:$0xff]  ;;  %v1858_v44 = vld [vmem:[%s3962_s25 + $0x70] sm:$0xff] }
 0x1da   : > { %v3991_v27 = vpop.permute.xlu1 %1456  ;;  %v3993_v42 = vpop.permute.xlu0 %1481 }
 0x1db   : > { %1971 = vperm.xlu0 %2550, %v1857_v50   ;;  %1936 = vperm.xlu1 %2551, %v1850_v32  }
 0x1de   : > { %v3997_v2 = vpop.permute.xlu1 %1461  ;;  %v3999_v8 = vpop.permute.xlu0 %1491 }
 0x1df   : > { %1981 = vperm.xlu0 %2550, %v1859_v54   ;;  %1946 = vperm.xlu1 %2551, %v1852_v55   ;;  %v1867_v54 = vld [vmem:[%s3962_s25 + $0xb8] sm:$0xff]  ;;  %v1860_v55 = vld [vmem:[%s3962_s25 + $0x80] sm:$0xff] }
 0x1e2   : > { %v4003_v60 = vpop.permute.xlu1 %1466  ;;  %v4005_v11 = vpop.permute.xlu0 %1501 }
 0x1e3   : > { %1991 = vperm.xlu0 %2550, %v1861_v34   ;;  %1956 = vperm.xlu1 %2551, %v1854_v52  }
 0x1e6   : > { %v4009_v12 = vpop.permute.xlu1 %1476  ;;  %v4011_v43 = vpop.permute.xlu0 %1511 }
 0x1e7   : > { %2001 = vperm.xlu0 %2550, %v1863_v33   ;;  %1966 = vperm.xlu1 %2551, %v1856_v24   ;;  %v1869_v33 = vld [vmem:[%s3962_s25 + $0xc8] sm:$0xff]  ;;  %v1862_v24 = vld [vmem:[%s3962_s25 + $0x90] sm:$0xff] }
 0x1ea   : > { %v4015_v50 = vpop.permute.xlu1 %1486  ;;  %v4017_v32 = vpop.permute.xlu0 %1521 }
 0x1eb   : > { %2011 = vperm.xlu0 %2550, %v1865_v40   ;;  %1976 = vperm.xlu1 %2551, %v1858_v44   ;;  %v1871_v40 = vld [vmem:[%s3962_s25 + $0xd8] sm:$0xff]  ;;  %v1864_v44 = vld [vmem:[%s3962_s25 + $0xa0] sm:$0xff] }
 0x1ee   : > { %v4021_v34 = vpop.permute.xlu1 %1496  ;;  %v4023_v52 = vpop.permute.xlu0 %1531 }
 0x1ef   : > { %4974 = vst [vmem:[#allocation87_spill] sm:$0xff] %v4021_v34  ;;  %2021 = vperm.xlu0 %2550, %v1867_v54   ;;  %1986 = vperm.xlu1 %2551, %v1860_v55   ;;  %v1873_v54 = vld [vmem:[%s3962_s25 + $0xe8] sm:$0xff]  ;;  %v1866_v55 = vld [vmem:[%s3962_s25 + $0xb0] sm:$0xff] }
 0x1f2   : > { %v4027_v62 = vpop.permute.xlu1 %1506  ;;  %v4029_v20 = vpop.permute.xlu0 %1541 }
 0x1f3   : > { %4975 = vst [vmem:[#allocation88_spill] sm:$0xff] %v4027_v62  ;;  %4976 = vst [vmem:[#allocation89_spill] sm:$0xff] %v4029_v20  ;;  %2031 = vperm.xlu0 %2550, %v1869_v33   ;;  %1996 = vperm.xlu1 %2551, %v1862_v24   ;;  %v1875_v33 = vld [vmem:[%s3962_s25 + $0xf8] sm:$0xff]  ;;  %v1868_v24 = vld [vmem:[%s3962_s25 + $0xc0] sm:$0xff] }
 0x1f6   : > { %v4033_v21 = vpop.permute.xlu1 %1516  ;;  %v4035_v34 = vpop.permute.xlu0 %1551 }
 0x1f7   : > { %4977 = vst [vmem:[#allocation90_spill] sm:$0xff] %v4033_v21  ;;  %4978 = vst [vmem:[#allocation91_spill] sm:$0xff] %v4035_v34  ;;  %2041 = vperm.xlu0 %2550, %v1871_v40   ;;  %2006 = vperm.xlu1 %2551, %v1864_v44   ;;  %v1877_v40 = vld [vmem:[%s3962_s25 + $0x108] sm:$0xff]  ;;  %v1870_v44 = vld [vmem:[%s3962_s25 + $0xd0] sm:$0xff] }
 0x1fa   : > { %v4039_v29 = vpop.permute.xlu1 %1526  ;;  %v4041_v62 = vpop.permute.xlu0 %1561 }
 0x1fb   : > { %4979 = vst [vmem:[#allocation92_spill] sm:$0xff] %v4039_v29  ;;  %4980 = vst [vmem:[#allocation93_spill] sm:$0xff] %v4041_v62  ;;  %2051 = vperm.xlu0 %2550, %v1873_v54   ;;  %2016 = vperm.xlu1 %2551, %v1866_v55   ;;  %v1879_v54 = vld [vmem:[%s3962_s25 + $0x118] sm:$0xff]  ;;  %v1872_v55 = vld [vmem:[%s3962_s25 + $0xe0] sm:$0xff] }
 0x1fe   : > { %v4045_v20 = vpop.permute.xlu1 %1536  ;;  %v4047_v21 = vpop.permute.xlu0 %1571 }
 0x1ff   : > { %4981 = vst [vmem:[#allocation94_spill] sm:$0xff] %v4045_v20  ;;  %4982 = vst [vmem:[#allocation95_spill] sm:$0xff] %v4047_v21  ;;  %2061 = vperm.xlu0 %2550, %v1875_v33   ;;  %2026 = vperm.xlu1 %2551, %v1868_v24   ;;  %v1881_v33 = vld [vmem:[%s3962_s25 + $0x128] sm:$0xff]  ;;  %v1874_v24 = vld [vmem:[%s3962_s25 + $0xf0] sm:$0xff] }
 0x202   : > { %v4051_v34 = vpop.permute.xlu1 %1546  ;;  %v4053_v29 = vpop.permute.xlu0 %1581 }
 0x203   : > { %4983 = vst [vmem:[#allocation96_spill] sm:$0xff] %v4051_v34  ;;  %4984 = vst [vmem:[#allocation97_spill] sm:$0xff] %v4053_v29  ;;  %2071 = vperm.xlu0 %2550, %v1877_v40   ;;  %2036 = vperm.xlu1 %2551, %v1870_v44   ;;  %v1883_v40 = vld [vmem:[%s3962_s25 + $0x138] sm:$0xff]  ;;  %v1876_v44 = vld [vmem:[%s3962_s25 + $0x100] sm:$0xff] }
 0x206   : > { %v4057_v62 = vpop.permute.xlu1 %1556  ;;  %v4059_v20 = vpop.permute.xlu0 %1591 }
 0x207   : > { %4985 = vst [vmem:[#allocation98_spill] sm:$0xff] %v4057_v62  ;;  %4986 = vst [vmem:[#allocation99_spill] sm:$0xff] %v4059_v20  ;;  %2081 = vperm.xlu0 %2550, %v1879_v54   ;;  %2046 = vperm.xlu1 %2551, %v1872_v55   ;;  %v1885_v54 = vld [vmem:[%s3962_s25 + $0x148] sm:$0xff]  ;;  %v1878_v55 = vld [vmem:[%s3962_s25 + $0x110] sm:$0xff] }
 0x20a   : > { %v4063_v21 = vpop.permute.xlu1 %1566  ;;  %v4065_v34 = vpop.permute.xlu0 %1601 }
 0x20b   : > { %4987 = vst [vmem:[#allocation100_spill] sm:$0xff] %v4063_v21  ;;  %4988 = vst [vmem:[#allocation101_spill] sm:$0xff] %v4065_v34  ;;  %2091 = vperm.xlu0 %2550, %v1881_v33   ;;  %2056 = vperm.xlu1 %2551, %v1874_v24   ;;  %v1887_v33 = vld [vmem:[%s3962_s25 + $0x158] sm:$0xff]  ;;  %v1880_v24 = vld [vmem:[%s3962_s25 + $0x120] sm:$0xff] }
 0x20e   : > { %v4069_v29 = vpop.permute.xlu1 %1576  ;;  %v4071_v62 = vpop.permute.xlu0 %1611 }
 0x20f   : > { %4989 = vst [vmem:[#allocation102_spill] sm:$0xff] %v4069_v29  ;;  %4990 = vst [vmem:[#allocation103_spill] sm:$0xff] %v4071_v62  ;;  %2101 = vperm.xlu0 %2550, %v1883_v40   ;;  %2066 = vperm.xlu1 %2551, %v1876_v44   ;;  %v1889_v40 = vld [vmem:[%s3962_s25 + $0x168] sm:$0xff]  ;;  %v1882_v44 = vld [vmem:[%s3962_s25 + $0x130] sm:$0xff] }
 0x212   : > { %v4075_v20 = vpop.permute.xlu1 %1586  ;;  %v4077_v21 = vpop.permute.xlu0 %1621 }
 0x213   : > { %4991 = vst [vmem:[#allocation104_spill] sm:$0xff] %v4075_v20  ;;  %4992 = vst [vmem:[#allocation105_spill] sm:$0xff] %v4077_v21  ;;  %2111 = vperm.xlu0 %2550, %v1885_v54   ;;  %2076 = vperm.xlu1 %2551, %v1878_v55   ;;  %v1891_v54 = vld [vmem:[%s3962_s25 + $0x178] sm:$0xff]  ;;  %v1884_v55 = vld [vmem:[%s3962_s25 + $0x140] sm:$0xff] }
 0x216   : > { %v4081_v34 = vpop.permute.xlu1 %1596  ;;  %v4083_v29 = vpop.permute.xlu0 %1631 }
 0x217   : > { %4993 = vst [vmem:[#allocation106_spill] sm:$0xff] %v4081_v34  ;;  %4994 = vst [vmem:[#allocation107_spill] sm:$0xff] %v4083_v29  ;;  %2121 = vperm.xlu0 %2550, %v1887_v33   ;;  %2086 = vperm.xlu1 %2551, %v1880_v24   ;;  %v1893_v33 = vld [vmem:[%s3962_s25 + $0x188] sm:$0xff]  ;;  %v1886_v24 = vld [vmem:[%s3962_s25 + $0x150] sm:$0xff] }
 0x21a   : > { %v4087_v62 = vpop.permute.xlu1 %1606  ;;  %v4089_v20 = vpop.permute.xlu0 %1641 }
 0x21b   : > { %4995 = vst [vmem:[#allocation108_spill] sm:$0xff] %v4087_v62  ;;  %4996 = vst [vmem:[#allocation109_spill] sm:$0xff] %v4089_v20  ;;  %2131 = vperm.xlu0 %2550, %v1889_v40   ;;  %2096 = vperm.xlu1 %2551, %v1882_v44   ;;  %v1895_v40 = vld [vmem:[%s3962_s25 + $0x198] sm:$0xff]  ;;  %v1888_v44 = vld [vmem:[%s3962_s25 + $0x160] sm:$0xff] }
 0x21e   : > { %v4093_v21 = vpop.permute.xlu1 %1616  ;;  %v4095_v34 = vpop.permute.xlu0 %1651 }
 0x21f   : > { %4997 = vst [vmem:[#allocation110_spill] sm:$0xff] %v4093_v21  ;;  %4998 = vst [vmem:[#allocation111_spill] sm:$0xff] %v4095_v34  ;;  %2141 = vperm.xlu0 %2550, %v1891_v54   ;;  %2106 = vperm.xlu1 %2551, %v1884_v55   ;;  %v1897_v54 = vld [vmem:[%s3962_s25 + $0x1a8] sm:$0xff]  ;;  %v1890_v55 = vld [vmem:[%s3962_s25 + $0x170] sm:$0xff] }
 0x222   : > { %v4099_v29 = vpop.permute.xlu1 %1626  ;;  %v4101_v62 = vpop.permute.xlu0 %1661 }
 0x223   : > { %4999 = vst [vmem:[#allocation112_spill] sm:$0xff] %v4099_v29  ;;  %5000 = vst [vmem:[#allocation113_spill] sm:$0xff] %v4101_v62  ;;  %2151 = vperm.xlu0 %2550, %v1893_v33   ;;  %2116 = vperm.xlu1 %2551, %v1886_v24   ;;  %v1899_v33 = vld [vmem:[%s3962_s25 + $0x1b8] sm:$0xff]  ;;  %v1892_v24 = vld [vmem:[%s3962_s25 + $0x180] sm:$0xff] }
 0x226   : > { %v4105_v20 = vpop.permute.xlu1 %1636  ;;  %v4107_v21 = vpop.permute.xlu0 %1671 }
 0x227   : > { %5001 = vst [vmem:[#allocation114_spill] sm:$0xff] %v4105_v20  ;;  %5002 = vst [vmem:[#allocation115_spill] sm:$0xff] %v4107_v21  ;;  %2161 = vperm.xlu0 %2550, %v1895_v40   ;;  %2126 = vperm.xlu1 %2551, %v1888_v44   ;;  %v1901_v40 = vld [vmem:[%s3962_s25 + $0x1c8] sm:$0xff]  ;;  %v1894_v44 = vld [vmem:[%s3962_s25 + $0x190] sm:$0xff] }
 0x22a   : > { %v4111_v34 = vpop.permute.xlu1 %1646  ;;  %v4113_v29 = vpop.permute.xlu0 %1681 }
 0x22b   : > { %5003 = vst [vmem:[#allocation116_spill] sm:$0xff] %v4111_v34  ;;  %5004 = vst [vmem:[#allocation117_spill] sm:$0xff] %v4113_v29  ;;  %2171 = vperm.xlu0 %2550, %v1897_v54   ;;  %2136 = vperm.xlu1 %2551, %v1890_v55   ;;  %v1903_v54 = vld [vmem:[%s3962_s25 + $0x1d8] sm:$0xff]  ;;  %v1896_v55 = vld [vmem:[%s3962_s25 + $0x1a0] sm:$0xff] }
 0x22e   : > { %v4117_v62 = vpop.permute.xlu1 %1656  ;;  %v4119_v20 = vpop.permute.xlu0 %1691 }
 0x22f   : > { %5005 = vst [vmem:[#allocation118_spill] sm:$0xff] %v4117_v62  ;;  %5006 = vst [vmem:[#allocation119_spill] sm:$0xff] %v4119_v20  ;;  %2181 = vperm.xlu0 %2550, %v1899_v33   ;;  %2146 = vperm.xlu1 %2551, %v1892_v24   ;;  %v1898_v33 = vld [vmem:[%s3962_s25 + $0x1b0] sm:$0xff] }
 0x232   : > { %v4123_v21 = vpop.permute.xlu1 %1666  ;;  %v4125_v34 = vpop.permute.xlu0 %1701 }
 0x233   : > { %5007 = vst [vmem:[#allocation120_spill] sm:$0xff] %v4123_v21  ;;  %2191 = vperm.xlu0 %2550, %v1901_v40   ;;  %2156 = vperm.xlu1 %2551, %v1894_v44   ;;  %v1726_v21 = vmul.f32 %v3968_v26, %v3252_v53  ;;  %v1727_v40 = vmul.f32 %v3968_v26, %v3255_v4  ;;  %v1900_v44 = vld [vmem:[%s3962_s25 + $0x1c0] sm:$0xff]  ;;  %v1902_v26 = vld [vmem:[%s3962_s25 + $0x1d0] sm:$0xff] }
 0x234   : > { %v1730_v53 = vmul.f32 %v3975_v17, %v3259_v19  ;;  %v1731_v4 = vmul.f32 %v3975_v17, %v3262_v9  ;;  %v1735_v19 = vmul.f32 %v3985_v58, %v3284_v51  ;;  %v1739_v51 = vmul.f32 %v3997_v2, %v3306_v13 }
 0x235   : > { %v1742_v13 = vmul.f32 %v3987_v16, %v3325_v18  ;;  %v1746_v18 = vmul.f32 %v3993_v42, %v3347_v22 }
 0x236   : > { %v4129_v29 = vpop.permute.xlu1 %1676  ;;  %v4131_v62 = vpop.permute.xlu0 %1711 }
 0x237   : > { %5008 = vst [vmem:[#allocation121_spill] sm:$0xff] %v4129_v29  ;;  %2201 = vperm.xlu0 %2550, %v1903_v54   ;;  %2166 = vperm.xlu1 %2551, %v1896_v55  }
 0x23a   : > { %v4134_v24 = vpop.permute.xlu1 %1686  ;;  %v4136_v20 = vpop.permute.xlu0 %1721 }
 0x23b   : > { %5009 = vst [vmem:[#allocation122_spill] sm:$0xff] %v4134_v24  ;;  %5010 = vst [vmem:[#allocation123_spill] sm:$0xff] %v4136_v20  ;;  %2176 = vperm.xlu1 %2551, %v1898_v33  }
 0x23e   : > { %v4150_v54 = vpop.permute.xlu1 %1696  ;;  %v1912_v55 = vpop.permute.xlu0 %1911 }
 0x23f   : > { %5011 = vst [vmem:[#allocation124_spill] sm:$0xff] %v4150_v54  ;;  %v2206_v33 = vadd.f32 %v1912_v55, %v1726_v21  ;;  %v2207_v24 = vadd.f32 %v1912_v55, %v1727_v40  ;;  %2186 = vperm.xlu1 %2551, %v1900_v44   ;;  %v1734_v40 = vmul.f32 %v3985_v58, %v3281_v41 }
 0x240   : > { %v1724_v55 = vmul.f32 %v3979_v47, %v3232_v37  ;;  %v1738_v41 = vmul.f32 %v3997_v2, %v3303_v3  ;;  %v1729_v3 = vmul.f32 %v3971_v28, %v3241_v59 }
 0x241   : > { %2326 = vst [vmem:[%s4148_s28 + $0x10] sm:$0xff] %v2206_v33  ;;  %2327 = vst.msk [vmem:[%s4148_s28 + $0x18] sm:$0xff] %vm343_vm0, %v2207_v24 }
 0x242   : > { %v4160_v20 = vpop.permute.xlu1 %1706  ;;  %v1922_v29 = vpop.permute.xlu0 %1921 }
 0x243   : > { %v2210_v54 = vadd.f32 %v1922_v29, %v1730_v53  ;;  %v2211_v21 = vadd.f32 %v1922_v29, %v1731_v4  ;;  %2196 = vperm.xlu1 %2551, %v1902_v26   ;;  %v1725_v29 = vmul.f32 %v3979_v47, %v3235_v49  ;;  %v1728_v49 = vmul.f32 %v3971_v28, %v3238_v61 }
 0x244   : > { %v1743_v47 = vmul.f32 %v3987_v16, %v3328_v15  ;;  %v1747_v15 = vmul.f32 %v3993_v42, %v3350_v1  ;;  %v1732_v16 = vmul.f32 %v3981_v63, %v3275_v56  ;;  %v1736_v56 = vmul.f32 %v3991_v27, %v3296_v25 }
 0x245   : > { %2330 = vst [vmem:[%s4148_s28 + $0x30] sm:$0xff] %v2210_v54  ;;  %2331 = vst.msk [vmem:[%s4148_s28 + $0x38] sm:$0xff] %vm343_vm0, %v2211_v21  ;;  %v1755_v25 = vmul.f32 %v4005_v11, %v3394_v14 }
 0x246   : > { %v4169_v9 = vpop.permute.xlu1 %1716  ;;  %v1932_v17 = vpop.permute.xlu0 %1931 }
 0x247   : > { %v2214_v24 = vadd.f32 %v1932_v17, %v1734_v40  ;;  %v2215_v44 = vadd.f32 %v1932_v17, %v1735_v19  ;;  %v1733_v40 = vmul.f32 %v3981_v63, %v3278_v7  ;;  %v1737_v7 = vmul.f32 %v3991_v27, %v3299_v5 }
 0x248   : > { %v1740_v5 = vmul.f32 %v4003_v60, %v3318_v45  ;;  %v1741_v27 = vmul.f32 %v4003_v60, %v3321_v57  ;;  %v1759_v45 = vmul.f32 %v4011_v43, %v3416_v23  ;;  %v1744_v57 = vmul.f32 %v4009_v12, %v3340_v48 }
 0x249   : > { %2334 = vst [vmem:[%s4148_s28 + $0x50] sm:$0xff] %v2214_v24  ;;  %2335 = vst.msk [vmem:[%s4148_s28 + $0x58] sm:$0xff] %vm343_vm0, %v2215_v44  ;;  %v1750_v44 = vmul.f32 %v3999_v8, %v3369_v30  ;;  %v1745_v60 = vmul.f32 %v4009_v12, %v3343_v0  ;;  %v1763_v48 = vmul.f32 %v4017_v32, %v3438_v31 }
 0x24a   : > { %v1907_v58 = vpop.permute.xlu1 %1906  ;;  %v1942_v54 = vpop.permute.xlu0 %1941  ;;  %v1748_v0 = vmul.f32 %v4015_v50, %v3362_v6  ;;  %v1749_v12 = vmul.f32 %v4015_v50, %v3365_v35  ;;  %v5013_v35 = vld [vmem:[#allocation64_spill] sm:$0xff]  ;;  %v5014_v50 = vld [vmem:[#allocation87_spill] sm:$0xff] }
 0x24b   : > { %v2204_v33 = vadd.f32 %v1907_v58, %v1724_v55  ;;  %v2205_v37 = vadd.f32 %v1907_v58, %v1725_v29  ;;  %v2218_v53 = vadd.f32 %v1942_v54, %v1738_v41  ;;  %v2219_v4 = vadd.f32 %v1942_v54, %v1739_v51 }
 0x24c   : > { %v1751_v55 = vmul.f32 %v3999_v8, %v3372_v10  ;;  %v1754_v51 = vmul.f32 %v4005_v11, %v3391_v38 }
 0x24d   : > { %2324 = vst [vmem:[%s4148_s28] sm:$0xff] %v2204_v33  ;;  %2325 = vst.msk [vmem:[%s4148_s28 + $0x8] sm:$0xff] %vm343_vm0, %v2205_v37  ;;  %v1758_v37 = vmul.f32 %v4011_v43, %v3413_v46 }
 0x24e   : > { %2338 = vst [vmem:[%s4148_s28 + $0x70] sm:$0xff] %v2218_v53  ;;  %2339 = vst.msk [vmem:[%s4148_s28 + $0x78] sm:$0xff] %vm343_vm0, %v2219_v4  ;;  %v1917_v61 = vpop.permute.xlu1 %1916  ;;  %v1952_v2 = vpop.permute.xlu0 %1951 }
 0x24f   : > { %v2208_v26 = vadd.f32 %v1917_v61, %v1728_v49  ;;  %v2209_v21 = vadd.f32 %v1917_v61, %v1729_v3  ;;  %v2222_v59 = vadd.f32 %v1952_v2, %v1742_v13  ;;  %v2223_v28 = vadd.f32 %v1952_v2, %v1743_v47 }
 0x250   : > { %v1762_v3 = vmul.f32 %v4017_v32, %v3435_v36  ;;  %v1766_v2 = vmul.f32 %v4023_v52, %v3457_v39 }
 0x251   : > { %2328 = vst [vmem:[%s4148_s28 + $0x20] sm:$0xff] %v2208_v26  ;;  %2329 = vst.msk [vmem:[%s4148_s28 + $0x28] sm:$0xff] %vm343_vm0, %v2209_v21  ;;  %v5012_v26 = vld [vmem:[#allocation72_spill] sm:$0xff]  ;;  %v1752_v21 = vmul.f32 %v5014_v50, %v5013_v35  ;;  %v5035_v35 = vld [vmem:[#allocation95_spill] sm:$0xff] }
 0x252   : > { %2342 = vst [vmem:[%s4148_s28 + $0x90] sm:$0xff] %v2222_v59  ;;  %2343 = vst.msk [vmem:[%s4148_s28 + $0x98] sm:$0xff] %vm343_vm0, %v2223_v28  ;;  %v1962_v22 = vpop.permute.xlu0 %1961  ;;  %v1927_v19 = vpop.permute.xlu1 %1926  ;;  %v1767_v6 = vmul.f32 %v4023_v52, %v5012_v26  ;;  %v5015_v59 = vld [vmem:[#allocation65_spill] sm:$0xff] }
 0x253   : > { %v2226_v17 = vadd.f32 %v1962_v22, %v1746_v18  ;;  %v2227_v24 = vadd.f32 %v1962_v22, %v1747_v15  ;;  %v2212_v1 = vadd.f32 %v1927_v19, %v1732_v16  ;;  %v2213_v42 = vadd.f32 %v1927_v19, %v1733_v40  ;;  %v5016_v22 = vld [vmem:[#allocation5_spill] sm:$0xff] }
 0x254   : > { %v1753_v28 = vmul.f32 %v5014_v50, %v5015_v59  ;;  %v5017_v19 = vld [vmem:[#allocation89_spill] sm:$0xff] }
 0x255   : > { %2346 = vst [vmem:[%s4148_s28 + $0xb0] sm:$0xff] %v2226_v17  ;;  %2347 = vst.msk [vmem:[%s4148_s28 + $0xb8] sm:$0xff] %vm343_vm0, %v2227_v24  ;;  %v1770_v17 = vmul.f32 %v5017_v19, %v5016_v22  ;;  %v5018_v24 = vld [vmem:[#allocation3_spill] sm:$0xff] }
 0x256   : > { %2332 = vst [vmem:[%s4148_s28 + $0x40] sm:$0xff] %v2212_v1  ;;  %2333 = vst.msk [vmem:[%s4148_s28 + $0x48] sm:$0xff] %vm343_vm0, %v2213_v42  ;;  %v1972_v30 = vpop.permute.xlu0 %1971  ;;  %v1937_v63 = vpop.permute.xlu1 %1936  ;;  %v1771_v1 = vmul.f32 %v5017_v19, %v5018_v24  ;;  %v5019_v42 = vld [vmem:[#allocation66_spill] sm:$0xff] }
 0x257   : > { %v2230_v29 = vadd.f32 %v1972_v30, %v1750_v44  ;;  %v2231_v41 = vadd.f32 %v1972_v30, %v1751_v55  ;;  %v2216_v10 = vadd.f32 %v1937_v63, %v1736_v56  ;;  %v2217_v8 = vadd.f32 %v1937_v63, %v1737_v7  ;;  %v5020_v44 = vld [vmem:[#allocation88_spill] sm:$0xff]  ;;  %v5021_v56 = vld [vmem:[#allocation67_spill] sm:$0xff] }
 0x258   : > { %v1756_v55 = vmul.f32 %v5020_v44, %v5019_v42  ;;  %v1757_v7 = vmul.f32 %v5020_v44, %v5021_v56  ;;  %v5041_v42 = vld [vmem:[#allocation97_spill] sm:$0xff] }
 0x259   : > { %2350 = vst [vmem:[%s4148_s28 + $0xd0] sm:$0xff] %v2230_v29  ;;  %2351 = vst.msk [vmem:[%s4148_s28 + $0xd8] sm:$0xff] %vm343_vm0, %v2231_v41 }
 0x25a   : > { %2336 = vst [vmem:[%s4148_s28 + $0x60] sm:$0xff] %v2216_v10  ;;  %2337 = vst.msk [vmem:[%s4148_s28 + $0x68] sm:$0xff] %vm343_vm0, %v2217_v8  ;;  %v1982_v38 = vpop.permute.xlu0 %1981  ;;  %v1947_v58 = vpop.permute.xlu1 %1946 }
 0x25b   : > { %v2234_v54 = vadd.f32 %v1982_v38, %v1754_v51  ;;  %v2235_v33 = vadd.f32 %v1982_v38, %v1755_v25  ;;  %v2220_v14 = vadd.f32 %v1947_v58, %v1740_v5  ;;  %v2221_v11 = vadd.f32 %v1947_v58, %v1741_v27  ;;  %v5022_v51 = vld [vmem:[#allocation9_spill] sm:$0xff]  ;;  %v5023_v25 = vld [vmem:[#allocation91_spill] sm:$0xff]  ;;  %v5025_v58 = vld [vmem:[#allocation68_spill] sm:$0xff] }
 0x25c   : > { %v1774_v5 = vmul.f32 %v5023_v25, %v5022_v51  ;;  %v5024_v27 = vld [vmem:[#allocation7_spill] sm:$0xff] }
 0x25d   : > { %2354 = vst [vmem:[%s4148_s28 + $0xf0] sm:$0xff] %v2234_v54  ;;  %2355 = vst.msk [vmem:[%s4148_s28 + $0xf8] sm:$0xff] %vm343_vm0, %v2235_v33  ;;  %v1775_v38 = vmul.f32 %v5023_v25, %v5024_v27  ;;  %v5026_v54 = vld [vmem:[#allocation90_spill] sm:$0xff] }
 0x25e   : > { %2340 = vst [vmem:[%s4148_s28 + $0x80] sm:$0xff] %v2220_v14  ;;  %2341 = vst.msk [vmem:[%s4148_s28 + $0x88] sm:$0xff] %vm343_vm0, %v2221_v11  ;;  %v1992_v46 = vpop.permute.xlu0 %1991  ;;  %v1957_v53 = vpop.permute.xlu1 %1956  ;;  %v1760_v33 = vmul.f32 %v5026_v54, %v5025_v58  ;;  %v5027_v14 = vld [vmem:[#allocation69_spill] sm:$0xff]  ;;  %v5047_v58 = vld [vmem:[#allocation99_spill] sm:$0xff] }
 0x25f   : > { %v2238_v4 = vadd.f32 %v1992_v46, %v1758_v37  ;;  %v2239_v49 = vadd.f32 %v1992_v46, %v1759_v45  ;;  %v2224_v23 = vadd.f32 %v1957_v53, %v1744_v57  ;;  %v2225_v43 = vadd.f32 %v1957_v53, %v1745_v60 }
 0x260   : > { %v1761_v11 = vmul.f32 %v5026_v54, %v5027_v14 }
 0x261   : > { %2358 = vst [vmem:[%s4148_s28 + $0x110] sm:$0xff] %v2238_v4  ;;  %2359 = vst.msk [vmem:[%s4148_s28 + $0x118] sm:$0xff] %vm343_vm0, %v2239_v49  ;;  %v5028_v4 = vld [vmem:[#allocation13_spill] sm:$0xff] }
 0x262   : > { %2344 = vst [vmem:[%s4148_s28 + $0xa0] sm:$0xff] %v2224_v23  ;;  %2345 = vst.msk [vmem:[%s4148_s28 + $0xa8] sm:$0xff] %vm343_vm0, %v2225_v43  ;;  %v2002_v36 = vpop.permute.xlu0 %2001  ;;  %v1967_v13 = vpop.permute.xlu1 %1966  ;;  %v5029_v49 = vld [vmem:[#allocation93_spill] sm:$0xff]  ;;  %v5030_v43 = vld [vmem:[#allocation11_spill] sm:$0xff] }
 0x263   : > { %v2242_v47 = vadd.f32 %v2002_v36, %v1762_v3  ;;  %v2243_v61 = vadd.f32 %v2002_v36, %v1763_v48  ;;  %v2228_v31 = vadd.f32 %v1967_v13, %v1748_v0  ;;  %v2229_v32 = vadd.f32 %v1967_v13, %v1749_v12  ;;  %v5031_v48 = vld [vmem:[#allocation70_spill] sm:$0xff]  ;;  %v5032_v0 = vld [vmem:[#allocation92_spill] sm:$0xff]  ;;  %v5033_v36 = vld [vmem:[#allocation71_spill] sm:$0xff] }
 0x264   : > { %v1778_v23 = vmul.f32 %v5029_v49, %v5028_v4  ;;  %v1779_v3 = vmul.f32 %v5029_v49, %v5030_v43  ;;  %v1764_v12 = vmul.f32 %v5032_v0, %v5031_v48  ;;  %v1765_v13 = vmul.f32 %v5032_v0, %v5033_v36  ;;  %v5053_v48 = vld [vmem:[#allocation101_spill] sm:$0xff] }
 0x265   : > { %2362 = vst [vmem:[%s4148_s28 + $0x130] sm:$0xff] %v2242_v47  ;;  %2363 = vst.msk [vmem:[%s4148_s28 + $0x138] sm:$0xff] %vm343_vm0, %v2243_v61 }
 0x266   : > { %2348 = vst [vmem:[%s4148_s28 + $0xc0] sm:$0xff] %v2228_v31  ;;  %2349 = vst.msk [vmem:[%s4148_s28 + $0xc8] sm:$0xff] %vm343_vm0, %v2229_v32  ;;  %v2012_v39 = vpop.permute.xlu0 %2011  ;;  %v1977_v18 = vpop.permute.xlu1 %1976 }
 0x267   : > { %v2246_v15 = vadd.f32 %v2012_v39, %v1766_v2  ;;  %v2247_v16 = vadd.f32 %v2012_v39, %v1767_v6  ;;  %v2232_v52 = vadd.f32 %v1977_v18, %v1752_v21  ;;  %v2233_v40 = vadd.f32 %v1977_v18, %v1753_v28  ;;  %v5034_v6 = vld [vmem:[#allocation17_spill] sm:$0xff]  ;;  %v5036_v21 = vld [vmem:[#allocation15_spill] sm:$0xff]  ;;  %v5037_v28 = vld [vmem:[#allocation4_spill] sm:$0xff] }
 0x268   : > { %v1782_v50 = vmul.f32 %v5035_v35, %v5034_v6  ;;  %v1783_v59 = vmul.f32 %v5035_v35, %v5036_v21  ;;  %v5038_v39 = vld [vmem:[#allocation94_spill] sm:$0xff] }
 0x269   : > { %2366 = vst [vmem:[%s4148_s28 + $0x150] sm:$0xff] %v2246_v15  ;;  %2367 = vst.msk [vmem:[%s4148_s28 + $0x158] sm:$0xff] %vm343_vm0, %v2247_v16  ;;  %v1768_v18 = vmul.f32 %v5038_v39, %v5037_v28  ;;  %v5039_v15 = vld [vmem:[#allocation2_spill] sm:$0xff]  ;;  %v5059_v28 = vld [vmem:[#allocation103_spill] sm:$0xff] }
 0x26a   : > { %2352 = vst [vmem:[%s4148_s28 + $0xe0] sm:$0xff] %v2232_v52  ;;  %2353 = vst.msk [vmem:[%s4148_s28 + $0xe8] sm:$0xff] %vm343_vm0, %v2233_v40  ;;  %v2022_v30 = vpop.permute.xlu0 %2021  ;;  %v1987_v63 = vpop.permute.xlu1 %1986  ;;  %v1769_v16 = vmul.f32 %v5038_v39, %v5039_v15 }
 0x26b   : > { %v2250_v29 = vadd.f32 %v2022_v30, %v1770_v17  ;;  %v2251_v41 = vadd.f32 %v2022_v30, %v1771_v1  ;;  %v2236_v10 = vadd.f32 %v1987_v63, %v1756_v55  ;;  %v2237_v8 = vadd.f32 %v1987_v63, %v1757_v7  ;;  %v5040_v1 = vld [vmem:[#allocation21_spill] sm:$0xff]  ;;  %v5042_v55 = vld [vmem:[#allocation19_spill] sm:$0xff]  ;;  %v5043_v7 = vld [vmem:[#allocation8_spill] sm:$0xff] }
 0x26c   : > { %v1786_v44 = vmul.f32 %v5041_v42, %v5040_v1  ;;  %v1787_v56 = vmul.f32 %v5041_v42, %v5042_v55  ;;  %v5044_v30 = vld [vmem:[#allocation96_spill] sm:$0xff] }
 0x26d   : > { %2370 = vst [vmem:[%s4148_s28 + $0x170] sm:$0xff] %v2250_v29  ;;  %2371 = vst.msk [vmem:[%s4148_s28 + $0x178] sm:$0xff] %vm343_vm0, %v2251_v41  ;;  %v1772_v63 = vmul.f32 %v5044_v30, %v5043_v7  ;;  %v5045_v29 = vld [vmem:[#allocation6_spill] sm:$0xff]  ;;  %v5065_v7 = vld [vmem:[#allocation105_spill] sm:$0xff] }
 0x26e   : > { %2356 = vst [vmem:[%s4148_s28 + $0x100] sm:$0xff] %v2236_v10  ;;  %2357 = vst.msk [vmem:[%s4148_s28 + $0x108] sm:$0xff] %vm343_vm0, %v2237_v8  ;;  %v2032_v37 = vpop.permute.xlu0 %2031  ;;  %v1997_v45 = vpop.permute.xlu1 %1996  ;;  %v1773_v41 = vmul.f32 %v5044_v30, %v5045_v29 }
 0x26f   : > { %v2254_v57 = vadd.f32 %v2032_v37, %v1774_v5  ;;  %v2255_v60 = vadd.f32 %v2032_v37, %v1775_v38  ;;  %v2240_v46 = vadd.f32 %v1997_v45, %v1760_v33  ;;  %v2241_v53 = vadd.f32 %v1997_v45, %v1761_v11  ;;  %v5046_v38 = vld [vmem:[#allocation25_spill] sm:$0xff]  ;;  %v5048_v33 = vld [vmem:[#allocation23_spill] sm:$0xff]  ;;  %v5049_v11 = vld [vmem:[#allocation12_spill] sm:$0xff] }
 0x270   : > { %v1790_v54 = vmul.f32 %v5047_v58, %v5046_v38  ;;  %v1791_v14 = vmul.f32 %v5047_v58, %v5048_v33  ;;  %v5050_v37 = vld [vmem:[#allocation98_spill] sm:$0xff] }
 0x271   : > { %2374 = vst [vmem:[%s4148_s28 + $0x190] sm:$0xff] %v2254_v57  ;;  %2375 = vst.msk [vmem:[%s4148_s28 + $0x198] sm:$0xff] %vm343_vm0, %v2255_v60  ;;  %v1776_v45 = vmul.f32 %v5050_v37, %v5049_v11  ;;  %v5051_v57 = vld [vmem:[#allocation10_spill] sm:$0xff]  ;;  %v5071_v11 = vld [vmem:[#allocation107_spill] sm:$0xff] }
 0x272   : > { %2360 = vst [vmem:[%s4148_s28 + $0x120] sm:$0xff] %v2240_v46  ;;  %2361 = vst.msk [vmem:[%s4148_s28 + $0x128] sm:$0xff] %vm343_vm0, %v2241_v53  ;;  %v2042_v47 = vpop.permute.xlu0 %2041  ;;  %v2007_v61 = vpop.permute.xlu1 %2006  ;;  %v1777_v60 = vmul.f32 %v5050_v37, %v5051_v57 }
 0x273   : > { %v2258_v31 = vadd.f32 %v2042_v47, %v1778_v23  ;;  %v2259_v32 = vadd.f32 %v2042_v47, %v1779_v3  ;;  %v2244_v2 = vadd.f32 %v2007_v61, %v1764_v12  ;;  %v2245_v26 = vadd.f32 %v2007_v61, %v1765_v13  ;;  %v5052_v3 = vld [vmem:[#allocation29_spill] sm:$0xff]  ;;  %v5054_v12 = vld [vmem:[#allocation27_spill] sm:$0xff]  ;;  %v5055_v13 = vld [vmem:[#allocation16_spill] sm:$0xff] }
 0x274   : > { %v1794_v0 = vmul.f32 %v5053_v48, %v5052_v3  ;;  %v1795_v36 = vmul.f32 %v5053_v48, %v5054_v12  ;;  %v5056_v47 = vld [vmem:[#allocation100_spill] sm:$0xff] }
 0x275   : > { %2378 = vst [vmem:[%s4148_s28 + $0x1b0] sm:$0xff] %v2258_v31  ;;  %2379 = vst.msk [vmem:[%s4148_s28 + $0x1b8] sm:$0xff] %vm343_vm0, %v2259_v32  ;;  %v1780_v61 = vmul.f32 %v5056_v47, %v5055_v13  ;;  %v5057_v31 = vld [vmem:[#allocation14_spill] sm:$0xff]  ;;  %v5077_v13 = vld [vmem:[#allocation109_spill] sm:$0xff] }
 0x276   : > { %2364 = vst [vmem:[%s4148_s28 + $0x140] sm:$0xff] %v2244_v2  ;;  %2365 = vst.msk [vmem:[%s4148_s28 + $0x148] sm:$0xff] %vm343_vm0, %v2245_v26  ;;  %v2052_v52 = vpop.permute.xlu0 %2051  ;;  %v2017_v40 = vpop.permute.xlu1 %2016  ;;  %v1781_v32 = vmul.f32 %v5056_v47, %v5057_v31 }
 0x277   : > { %v2262_v22 = vadd.f32 %v2052_v52, %v1782_v50  ;;  %v2263_v19 = vadd.f32 %v2052_v52, %v1783_v59  ;;  %v2248_v17 = vadd.f32 %v2017_v40, %v1768_v18  ;;  %v2249_v24 = vadd.f32 %v2017_v40, %v1769_v16  ;;  %v5058_v59 = vld [vmem:[#allocation33_spill] sm:$0xff]  ;;  %v5060_v18 = vld [vmem:[#allocation31_spill] sm:$0xff]  ;;  %v5061_v16 = vld [vmem:[#allocation20_spill] sm:$0xff] }
 0x278   : > { %v1798_v39 = vmul.f32 %v5059_v28, %v5058_v59  ;;  %v1799_v15 = vmul.f32 %v5059_v28, %v5060_v18  ;;  %v5062_v52 = vld [vmem:[#allocation102_spill] sm:$0xff] }
 0x279   : > { %2382 = vst [vmem:[%s4148_s28 + $0x1d0] sm:$0xff] %v2262_v22  ;;  %2383 = vst.msk [vmem:[%s4148_s28 + $0x1d8] sm:$0xff] %vm343_vm0, %v2263_v19  ;;  %v1784_v40 = vmul.f32 %v5062_v52, %v5061_v16  ;;  %v5063_v22 = vld [vmem:[#allocation18_spill] sm:$0xff]  ;;  %v5083_v16 = vld [vmem:[#allocation111_spill] sm:$0xff] }
 0x27a   : > { %2368 = vst [vmem:[%s4148_s28 + $0x160] sm:$0xff] %v2248_v17  ;;  %2369 = vst.msk [vmem:[%s4148_s28 + $0x168] sm:$0xff] %vm343_vm0, %v2249_v24  ;;  %v2062_v10 = vpop.permute.xlu0 %2061  ;;  %v2027_v8 = vpop.permute.xlu1 %2026  ;;  %v1785_v19 = vmul.f32 %v5062_v52, %v5063_v22 }
 0x27b   : > { %v2266_v51 = vadd.f32 %v2062_v10, %v1786_v44  ;;  %v2267_v25 = vadd.f32 %v2062_v10, %v1787_v56  ;;  %v2252_v5 = vadd.f32 %v2027_v8, %v1772_v63  ;;  %v2253_v27 = vadd.f32 %v2027_v8, %v1773_v41  ;;  %v5064_v56 = vld [vmem:[#allocation37_spill] sm:$0xff]  ;;  %v5066_v63 = vld [vmem:[#allocation35_spill] sm:$0xff]  ;;  %v5067_v41 = vld [vmem:[#allocation24_spill] sm:$0xff] }
 0x27c   : > { %v1802_v30 = vmul.f32 %v5065_v7, %v5064_v56  ;;  %v1803_v29 = vmul.f32 %v5065_v7, %v5066_v63  ;;  %v5068_v10 = vld [vmem:[#allocation104_spill] sm:$0xff] }
 0x27d   : > { %2386 = vst [vmem:[%s4148_s28 + $0x1f0] sm:$0xff] %v2266_v51  ;;  %2387 = vst.msk [vmem:[%s4148_s28 + $0x1f8] sm:$0xff] %vm343_vm0, %v2267_v25  ;;  %v1788_v8 = vmul.f32 %v5068_v10, %v5067_v41  ;;  %v5069_v51 = vld [vmem:[#allocation22_spill] sm:$0xff]  ;;  %v5089_v41 = vld [vmem:[#allocation113_spill] sm:$0xff] }
 0x27e   : > { %2372 = vst [vmem:[%s4148_s28 + $0x180] sm:$0xff] %v2252_v5  ;;  %2373 = vst.msk [vmem:[%s4148_s28 + $0x188] sm:$0xff] %vm343_vm0, %v2253_v27  ;;  %v2072_v46 = vpop.permute.xlu0 %2071  ;;  %v2037_v53 = vpop.permute.xlu1 %2036  ;;  %v1789_v25 = vmul.f32 %v5068_v10, %v5069_v51 }
 0x27f   : > { %v2270_v4 = vadd.f32 %v2072_v46, %v1790_v54  ;;  %v2271_v49 = vadd.f32 %v2072_v46, %v1791_v14  ;;  %v2256_v23 = vadd.f32 %v2037_v53, %v1776_v45  ;;  %v2257_v43 = vadd.f32 %v2037_v53, %v1777_v60  ;;  %v5070_v14 = vld [vmem:[#allocation41_spill] sm:$0xff]  ;;  %v5072_v45 = vld [vmem:[#allocation39_spill] sm:$0xff]  ;;  %v5073_v60 = vld [vmem:[#allocation28_spill] sm:$0xff] }
 0x280   : > { %v1806_v37 = vmul.f32 %v5071_v11, %v5070_v14  ;;  %v1807_v57 = vmul.f32 %v5071_v11, %v5072_v45  ;;  %v5074_v46 = vld [vmem:[#allocation106_spill] sm:$0xff] }
 0x281   : > { %2390 = vst [vmem:[%s4148_s28 + $0x210] sm:$0xff] %v2270_v4  ;;  %2391 = vst.msk [vmem:[%s4148_s28 + $0x218] sm:$0xff] %vm343_vm0, %v2271_v49  ;;  %v1792_v53 = vmul.f32 %v5074_v46, %v5073_v60  ;;  %v5075_v4 = vld [vmem:[#allocation26_spill] sm:$0xff]  ;;  %v5095_v60 = vld [vmem:[#allocation115_spill] sm:$0xff] }
 0x282   : > { %2376 = vst [vmem:[%s4148_s28 + $0x1a0] sm:$0xff] %v2256_v23  ;;  %2377 = vst.msk [vmem:[%s4148_s28 + $0x1a8] sm:$0xff] %vm343_vm0, %v2257_v43  ;;  %v2082_v2 = vpop.permute.xlu0 %2081  ;;  %v2047_v26 = vpop.permute.xlu1 %2046  ;;  %v1793_v49 = vmul.f32 %v5074_v46, %v5075_v4 }
 0x283   : > { %v2274_v6 = vadd.f32 %v2082_v2, %v1794_v0  ;;  %v2275_v35 = vadd.f32 %v2082_v2, %v1795_v36  ;;  %v2260_v50 = vadd.f32 %v2047_v26, %v1780_v61  ;;  %v2261_v21 = vadd.f32 %v2047_v26, %v1781_v32  ;;  %v5076_v36 = vld [vmem:[#allocation45_spill] sm:$0xff]  ;;  %v5078_v61 = vld [vmem:[#allocation43_spill] sm:$0xff]  ;;  %v5079_v32 = vld [vmem:[#allocation32_spill] sm:$0xff] }
 0x284   : > { %v1810_v47 = vmul.f32 %v5077_v13, %v5076_v36  ;;  %v1811_v31 = vmul.f32 %v5077_v13, %v5078_v61  ;;  %v5080_v2 = vld [vmem:[#allocation108_spill] sm:$0xff] }
 0x285   : > { %2394 = vst [vmem:[%s4148_s28 + $0x230] sm:$0xff] %v2274_v6  ;;  %2395 = vst.msk [vmem:[%s4148_s28 + $0x238] sm:$0xff] %vm343_vm0, %v2275_v35  ;;  %v1796_v26 = vmul.f32 %v5080_v2, %v5079_v32  ;;  %v5081_v6 = vld [vmem:[#allocation30_spill] sm:$0xff]  ;;  %v5101_v32 = vld [vmem:[#allocation117_spill] sm:$0xff] }
 0x286   : > { %2380 = vst [vmem:[%s4148_s28 + $0x1c0] sm:$0xff] %v2260_v50  ;;  %2381 = vst.msk [vmem:[%s4148_s28 + $0x1c8] sm:$0xff] %vm343_vm0, %v2261_v21  ;;  %v2092_v17 = vpop.permute.xlu0 %2091  ;;  %v2057_v24 = vpop.permute.xlu1 %2056  ;;  %v1797_v35 = vmul.f32 %v5080_v2, %v5081_v6 }
 0x287   : > { %v2278_v1 = vadd.f32 %v2092_v17, %v1798_v39  ;;  %v2279_v42 = vadd.f32 %v2092_v17, %v1799_v15  ;;  %v2264_v44 = vadd.f32 %v2057_v24, %v1784_v40  ;;  %v2265_v55 = vadd.f32 %v2057_v24, %v1785_v19  ;;  %v5082_v15 = vld [vmem:[#allocation49_spill] sm:$0xff]  ;;  %v5084_v40 = vld [vmem:[#allocation47_spill] sm:$0xff]  ;;  %v5085_v19 = vld [vmem:[#allocation36_spill] sm:$0xff] }
 0x288   : > { %v1814_v52 = vmul.f32 %v5083_v16, %v5082_v15  ;;  %v1815_v22 = vmul.f32 %v5083_v16, %v5084_v40  ;;  %v5086_v17 = vld [vmem:[#allocation110_spill] sm:$0xff] }
 0x289   : > { %2398 = vst [vmem:[%s4148_s28 + $0x250] sm:$0xff] %v2278_v1  ;;  %2399 = vst.msk [vmem:[%s4148_s28 + $0x258] sm:$0xff] %vm343_vm0, %v2279_v42  ;;  %v1800_v24 = vmul.f32 %v5086_v17, %v5085_v19  ;;  %v5087_v1 = vld [vmem:[#allocation34_spill] sm:$0xff]  ;;  %v5107_v19 = vld [vmem:[#allocation119_spill] sm:$0xff] }
 0x28a   : > { %2384 = vst [vmem:[%s4148_s28 + $0x1e0] sm:$0xff] %v2264_v44  ;;  %2385 = vst.msk [vmem:[%s4148_s28 + $0x1e8] sm:$0xff] %vm343_vm0, %v2265_v55  ;;  %v2102_v5 = vpop.permute.xlu0 %2101  ;;  %v2067_v27 = vpop.permute.xlu1 %2066  ;;  %v1801_v42 = vmul.f32 %v5086_v17, %v5087_v1 }
 0x28b   : > { %v2282_v38 = vadd.f32 %v2102_v5, %v1802_v30  ;;  %v2283_v58 = vadd.f32 %v2102_v5, %v1803_v29  ;;  %v2268_v54 = vadd.f32 %v2067_v27, %v1788_v8  ;;  %v2269_v33 = vadd.f32 %v2067_v27, %v1789_v25  ;;  %v5088_v29 = vld [vmem:[#allocation53_spill] sm:$0xff]  ;;  %v5090_v8 = vld [vmem:[#allocation51_spill] sm:$0xff]  ;;  %v5091_v25 = vld [vmem:[#allocation40_spill] sm:$0xff] }
 0x28c   : > { %v1818_v10 = vmul.f32 %v5089_v41, %v5088_v29  ;;  %v1819_v51 = vmul.f32 %v5089_v41, %v5090_v8  ;;  %v5092_v5 = vld [vmem:[#allocation112_spill] sm:$0xff] }
 0x28d   : > { %2402 = vst [vmem:[%s4148_s28 + $0x270] sm:$0xff] %v2282_v38  ;;  %2403 = vst.msk [vmem:[%s4148_s28 + $0x278] sm:$0xff] %vm343_vm0, %v2283_v58  ;;  %v1804_v27 = vmul.f32 %v5092_v5, %v5091_v25  ;;  %v5093_v38 = vld [vmem:[#allocation38_spill] sm:$0xff] }
 0x28e   : > { %2388 = vst [vmem:[%s4148_s28 + $0x200] sm:$0xff] %v2268_v54  ;;  %2389 = vst.msk [vmem:[%s4148_s28 + $0x208] sm:$0xff] %vm343_vm0, %v2269_v33  ;;  %v2112_v23 = vpop.permute.xlu0 %2111  ;;  %v2077_v43 = vpop.permute.xlu1 %2076  ;;  %v1805_v58 = vmul.f32 %v5092_v5, %v5093_v38  ;;  %v5113_v5 = vld [vmem:[#allocation78_spill] sm:$0xff]  ;;  %v5114_v38 = vld [vmem:[#allocation56_spill] sm:$0xff] }
 0x28f   : > { %v2286_v3 = vadd.f32 %v2112_v23, %v1806_v37  ;;  %v2287_v48 = vadd.f32 %v2112_v23, %v1807_v57  ;;  %v2272_v0 = vadd.f32 %v2077_v43, %v1792_v53  ;;  %v2273_v12 = vadd.f32 %v2077_v43, %v1793_v49  ;;  %v5094_v57 = vld [vmem:[#allocation57_spill] sm:$0xff]  ;;  %v5096_v53 = vld [vmem:[#allocation55_spill] sm:$0xff]  ;;  %v5097_v49 = vld [vmem:[#allocation44_spill] sm:$0xff] }
 0x290   : > { %v1822_v46 = vmul.f32 %v5095_v60, %v5094_v57  ;;  %v1823_v4 = vmul.f32 %v5095_v60, %v5096_v53  ;;  %v5098_v23 = vld [vmem:[#allocation114_spill] sm:$0xff] }
 0x291   : > { %2406 = vst [vmem:[%s4148_s28 + $0x290] sm:$0xff] %v2286_v3  ;;  %2407 = vst.msk [vmem:[%s4148_s28 + $0x298] sm:$0xff] %vm343_vm0, %v2287_v48  ;;  %v1808_v43 = vmul.f32 %v5098_v23, %v5097_v49  ;;  %v5099_v3 = vld [vmem:[#allocation42_spill] sm:$0xff] }
 0x292   : > { %2392 = vst [vmem:[%s4148_s28 + $0x220] sm:$0xff] %v2272_v0  ;;  %2393 = vst.msk [vmem:[%s4148_s28 + $0x228] sm:$0xff] %vm343_vm0, %v2273_v12  ;;  %v2122_v50 = vpop.permute.xlu0 %2121  ;;  %v2087_v21 = vpop.permute.xlu1 %2086  ;;  %v1809_v48 = vmul.f32 %v5098_v23, %v5099_v3  ;;  %v5119_v23 = vld [vmem:[#allocation60_spill] sm:$0xff] }
 0x293   : > { %v2290_v59 = vadd.f32 %v2122_v50, %v1810_v47  ;;  %v2291_v28 = vadd.f32 %v2122_v50, %v1811_v31  ;;  %v2276_v39 = vadd.f32 %v2087_v21, %v1796_v26  ;;  %v2277_v18 = vadd.f32 %v2087_v21, %v1797_v35  ;;  %v5100_v31 = vld [vmem:[#allocation61_spill] sm:$0xff]  ;;  %v5102_v26 = vld [vmem:[#allocation59_spill] sm:$0xff]  ;;  %v5103_v35 = vld [vmem:[#allocation48_spill] sm:$0xff] }
 0x294   : > { %v1826_v2 = vmul.f32 %v5101_v32, %v5100_v31  ;;  %v1827_v6 = vmul.f32 %v5101_v32, %v5102_v26  ;;  %v5104_v50 = vld [vmem:[#allocation116_spill] sm:$0xff]  ;;  %v5122_v31 = vld [vmem:[#allocation85_spill] sm:$0xff]  ;;  %v5123_v32 = vld [vmem:[#allocation123_spill] sm:$0xff] }
 0x295   : > { %2410 = vst [vmem:[%s4148_s28 + $0x2b0] sm:$0xff] %v2290_v59  ;;  %2411 = vst.msk [vmem:[%s4148_s28 + $0x2b8] sm:$0xff] %vm343_vm0, %v2291_v28  ;;  %v1812_v21 = vmul.f32 %v5104_v50, %v5103_v35  ;;  %v5105_v59 = vld [vmem:[#allocation46_spill] sm:$0xff] }
 0x296   : > { %2396 = vst [vmem:[%s4148_s28 + $0x240] sm:$0xff] %v2276_v39  ;;  %2397 = vst.msk [vmem:[%s4148_s28 + $0x248] sm:$0xff] %vm343_vm0, %v2277_v18  ;;  %v2132_v44 = vpop.permute.xlu0 %2131  ;;  %v2097_v55 = vpop.permute.xlu1 %2096  ;;  %v1813_v28 = vmul.f32 %v5104_v50, %v5105_v59  ;;  %v5124_v26 = vld [vmem:[#allocation86_spill] sm:$0xff]  ;;  %v5127_v59 = vld [vmem:[#allocation73_spill] sm:$0xff] }
 0x297   : > { %v2294_v56 = vadd.f32 %v2132_v44, %v1814_v52  ;;  %v2295_v7 = vadd.f32 %v2132_v44, %v1815_v22  ;;  %v2280_v30 = vadd.f32 %v2097_v55, %v1800_v24  ;;  %v2281_v63 = vadd.f32 %v2097_v55, %v1801_v42  ;;  %v5106_v22 = vld [vmem:[#allocation63_spill] sm:$0xff]  ;;  %v5108_v24 = vld [vmem:[#allocation74_spill] sm:$0xff]  ;;  %v5109_v42 = vld [vmem:[#allocation52_spill] sm:$0xff] }
 0x298   : > { %v1830_v17 = vmul.f32 %v5107_v19, %v5106_v22  ;;  %v1831_v1 = vmul.f32 %v5107_v19, %v5108_v24  ;;  %v5110_v44 = vld [vmem:[#allocation118_spill] sm:$0xff]  ;;  %v5128_v22 = vld [vmem:[#allocation75_spill] sm:$0xff]  ;;  %v5129_v19 = vld [vmem:[#allocation124_spill] sm:$0xff] }
 0x299   : > { %2414 = vst [vmem:[%s4148_s28 + $0x2d0] sm:$0xff] %v2294_v56  ;;  %2415 = vst.msk [vmem:[%s4148_s28 + $0x2d8] sm:$0xff] %vm343_vm0, %v2295_v7  ;;  %v1816_v55 = vmul.f32 %v5110_v44, %v5109_v42  ;;  %v5111_v56 = vld [vmem:[#allocation50_spill] sm:$0xff]  ;;  %v5130_v24 = vld [vmem:[#allocation76_spill] sm:$0xff] }
 0x29a   : > { %2400 = vst [vmem:[%s4148_s28 + $0x260] sm:$0xff] %v2280_v30  ;;  %2401 = vst.msk [vmem:[%s4148_s28 + $0x268] sm:$0xff] %vm343_vm0, %v2281_v63  ;;  %v2142_v54 = vpop.permute.xlu0 %2141  ;;  %v2107_v33 = vpop.permute.xlu1 %2106  ;;  %v1817_v7 = vmul.f32 %v5110_v44, %v5111_v56  ;;  %v5125_v35 = vld [vmem:[#allocation62_spill] sm:$0xff]  ;;  %v5131_v56 = vld [vmem:[#allocation79_spill] sm:$0xff] }
 0x29b   : > { %v2298_v14 = vadd.f32 %v2142_v54, %v1818_v10  ;;  %v2299_v11 = vadd.f32 %v2142_v54, %v1819_v51  ;;  %v2284_v37 = vadd.f32 %v2107_v33, %v1804_v27  ;;  %v2285_v45 = vadd.f32 %v2107_v33, %v1805_v58  ;;  %v5112_v51 = vld [vmem:[#allocation77_spill] sm:$0xff]  ;;  %v5115_v58 = vld [vmem:[#allocation120_spill] sm:$0xff]  ;;  %v5116_v33 = vld [vmem:[#allocation54_spill] sm:$0xff] }
 0x29c   : > { %v1834_v25 = vmul.f32 %v4125_v34, %v5112_v51  ;;  %v1835_v27 = vmul.f32 %v4125_v34, %v5113_v5  ;;  %v1820_v54 = vmul.f32 %v5115_v58, %v5114_v38  ;;  %v5126_v50 = vld [vmem:[#allocation122_spill] sm:$0xff] }
 0x29d   : > { %2418 = vst [vmem:[%s4148_s28 + $0x2f0] sm:$0xff] %v2298_v14  ;;  %2419 = vst.msk [vmem:[%s4148_s28 + $0x2f8] sm:$0xff] %vm343_vm0, %v2299_v11  ;;  %v1821_v14 = vmul.f32 %v5115_v58, %v5116_v33 }
 0x29e   : > { %2404 = vst [vmem:[%s4148_s28 + $0x280] sm:$0xff] %v2284_v37  ;;  %2405 = vst.msk [vmem:[%s4148_s28 + $0x288] sm:$0xff] %vm343_vm0, %v2285_v45  ;;  %v2152_v0 = vpop.permute.xlu0 %2151  ;;  %v2117_v12 = vpop.permute.xlu1 %2116 }
 0x29f   : > { %v2302_v36 = vadd.f32 %v2152_v0, %v1822_v46  ;;  %v2303_v13 = vadd.f32 %v2152_v0, %v1823_v4  ;;  %v2288_v47 = vadd.f32 %v2117_v12, %v1808_v43  ;;  %v2289_v61 = vadd.f32 %v2117_v12, %v1809_v48  ;;  %v5117_v46 = vld [vmem:[#allocation81_spill] sm:$0xff]  ;;  %v5118_v4 = vld [vmem:[#allocation82_spill] sm:$0xff] }
 0x2a0   : > { %v1838_v53 = vmul.f32 %v4131_v62, %v5117_v46  ;;  %v1839_v49 = vmul.f32 %v4131_v62, %v5118_v4  ;;  %v5120_v43 = vld [vmem:[#allocation121_spill] sm:$0xff]  ;;  %v5121_v48 = vld [vmem:[#allocation58_spill] sm:$0xff] }
 0x2a1   : > { %2422 = vst [vmem:[%s4148_s28 + $0x310] sm:$0xff] %v2302_v36  ;;  %2423 = vst.msk [vmem:[%s4148_s28 + $0x318] sm:$0xff] %vm343_vm0, %v2303_v13  ;;  %v1824_v3 = vmul.f32 %v5120_v43, %v5119_v23  ;;  %v1825_v0 = vmul.f32 %v5120_v43, %v5121_v48 }
 0x2a2   : > { %2408 = vst [vmem:[%s4148_s28 + $0x2a0] sm:$0xff] %v2288_v47  ;;  %2409 = vst.msk [vmem:[%s4148_s28 + $0x2a8] sm:$0xff] %vm343_vm0, %v2289_v61  ;;  %v2162_v39 = vpop.permute.xlu0 %2161  ;;  %v2127_v18 = vpop.permute.xlu1 %2126 }
 0x2a3   : > { %v2306_v15 = vadd.f32 %v2162_v39, %v1826_v2  ;;  %v2307_v16 = vadd.f32 %v2162_v39, %v1827_v6  ;;  %v2292_v52 = vadd.f32 %v2127_v18, %v1812_v21  ;;  %v2293_v40 = vadd.f32 %v2127_v18, %v1813_v28 }
 0x2a4   : > { %v1842_v2 = vmul.f32 %v5123_v32, %v5122_v31  ;;  %v1843_v6 = vmul.f32 %v5123_v32, %v5124_v26  ;;  %v1828_v21 = vmul.f32 %v5126_v50, %v5125_v35  ;;  %v1829_v28 = vmul.f32 %v5126_v50, %v5127_v59 }
 0x2a5   : > { %2426 = vst [vmem:[%s4148_s28 + $0x330] sm:$0xff] %v2306_v15  ;;  %2427 = vst.msk [vmem:[%s4148_s28 + $0x338] sm:$0xff] %vm343_vm0, %v2307_v16 }
 0x2a6   : > { %2412 = vst [vmem:[%s4148_s28 + $0x2c0] sm:$0xff] %v2292_v52  ;;  %2413 = vst.msk [vmem:[%s4148_s28 + $0x2c8] sm:$0xff] %vm343_vm0, %v2293_v40  ;;  %v2172_v30 = vpop.permute.xlu0 %2171  ;;  %v2137_v63 = vpop.permute.xlu1 %2136 }
 0x2a7   : > { %v2310_v29 = vadd.f32 %v2172_v30, %v1830_v17  ;;  %v2311_v41 = vadd.f32 %v2172_v30, %v1831_v1  ;;  %v2296_v10 = vadd.f32 %v2137_v63, %v1816_v55  ;;  %v2297_v8 = vadd.f32 %v2137_v63, %v1817_v7  ;;  %v5132_v30 = vld [vmem:[#allocation80_spill] sm:$0xff] }
 0x2a8   : > { %v1832_v17 = vmul.f32 %v5129_v19, %v5128_v22  ;;  %v1833_v1 = vmul.f32 %v5129_v19, %v5130_v24  ;;  %v1836_v7 = vmul.f32 %v4160_v20, %v5131_v56  ;;  %v1837_v63 = vmul.f32 %v4160_v20, %v5132_v30 }
 0x2a9   : > { %2430 = vst [vmem:[%s4148_s28 + $0x350] sm:$0xff] %v2310_v29  ;;  %2431 = vst.msk [vmem:[%s4148_s28 + $0x358] sm:$0xff] %vm343_vm0, %v2311_v41 }
 0x2aa   : > { %2416 = vst [vmem:[%s4148_s28 + $0x2e0] sm:$0xff] %v2296_v10  ;;  %2417 = vst.msk [vmem:[%s4148_s28 + $0x2e8] sm:$0xff] %vm343_vm0, %v2297_v8  ;;  %v2182_v11 = vpop.permute.xlu0 %2181  ;;  %v2147_v37 = vpop.permute.xlu1 %2146  ;;  %v5133_v8 = vld [vmem:[#allocation83_spill] sm:$0xff] }
 0x2ab   : > { %v2314_v45 = vadd.f32 %v2182_v11, %v1834_v25  ;;  %v2315_v57 = vadd.f32 %v2182_v11, %v1835_v27  ;;  %v2300_v34 = vadd.f32 %v2147_v37, %v1820_v54  ;;  %v2301_v60 = vadd.f32 %v2147_v37, %v1821_v14  ;;  %v5134_v25 = vld [vmem:[#allocation84_spill] sm:$0xff] }
 0x2ac   : > { %v1840_v51 = vmul.f32 %v4169_v9, %v5133_v8  ;;  %v1841_v5 = vmul.f32 %v4169_v9, %v5134_v25 }
 0x2ad   : > { %2434 = vst [vmem:[%s4148_s28 + $0x370] sm:$0xff] %v2314_v45  ;;  %2435 = vst.msk [vmem:[%s4148_s28 + $0x378] sm:$0xff] %vm343_vm0, %v2315_v57 }
 0x2ae   : > { %2420 = vst [vmem:[%s4148_s28 + $0x300] sm:$0xff] %v2300_v34  ;;  %2421 = vst.msk [vmem:[%s4148_s28 + $0x308] sm:$0xff] %vm343_vm0, %v2301_v60  ;;  %v2192_v12 = vpop.permute.xlu0 %2191  ;;  %v2157_v36 = vpop.permute.xlu1 %2156 }
 0x2af   : > { %v2318_v13 = vadd.f32 %v2192_v12, %v1838_v53  ;;  %v2319_v47 = vadd.f32 %v2192_v12, %v1839_v49  ;;  %v2304_v62 = vadd.f32 %v2157_v36, %v1824_v3  ;;  %v2305_v61 = vadd.f32 %v2157_v36, %v1825_v0 }
 0x2b1   : > { %2438 = vst [vmem:[%s4148_s28 + $0x390] sm:$0xff] %v2318_v13  ;;  %2439 = vst.msk [vmem:[%s4148_s28 + $0x398] sm:$0xff] %vm343_vm0, %v2319_v47 }
 0x2b2   : > { %2424 = vst [vmem:[%s4148_s28 + $0x320] sm:$0xff] %v2304_v62  ;;  %2425 = vst.msk [vmem:[%s4148_s28 + $0x328] sm:$0xff] %vm343_vm0, %v2305_v61  ;;  %v2202_v39 = vpop.permute.xlu0 %2201  ;;  %v2167_v18 = vpop.permute.xlu1 %2166 }
 0x2b3   : > { %v2322_v15 = vadd.f32 %v2202_v39, %v1842_v2  ;;  %v2323_v16 = vadd.f32 %v2202_v39, %v1843_v6  ;;  %v2308_v52 = vadd.f32 %v2167_v18, %v1828_v21  ;;  %v2309_v40 = vadd.f32 %v2167_v18, %v1829_v28 }
 0x2b5   : > { %2442 = vst [vmem:[%s4148_s28 + $0x3b0] sm:$0xff] %v2322_v15  ;;  %2443 = vst.msk [vmem:[%s4148_s28 + $0x3b8] sm:$0xff] %vm343_vm0, %v2323_v16 }
 0x2b6   : > { %2428 = vst [vmem:[%s4148_s28 + $0x340] sm:$0xff] %v2308_v52  ;;  %2429 = vst.msk [vmem:[%s4148_s28 + $0x348] sm:$0xff] %vm343_vm0, %v2309_v40  ;;  %v2177_v42 = vpop.permute.xlu1 %2176 }
 0x2b7   : > { %v2312_v44 = vadd.f32 %v2177_v42, %v1832_v17  ;;  %v2313_v55 = vadd.f32 %v2177_v42, %v1833_v1 }
 0x2b9   : > { %2432 = vst [vmem:[%s4148_s28 + $0x360] sm:$0xff] %v2312_v44  ;;  %2433 = vst.msk [vmem:[%s4148_s28 + $0x368] sm:$0xff] %vm343_vm0, %v2313_v55 }
 0x2ba   : > { %v2187_v29 = vpop.permute.xlu1 %2186 }
 0x2bb   : > { %v2316_v41 = vadd.f32 %v2187_v29, %v1836_v7  ;;  %v2317_v10 = vadd.f32 %v2187_v29, %v1837_v63 }
 0x2bd   : > { %2436 = vst [vmem:[%s4148_s28 + $0x380] sm:$0xff] %v2316_v41  ;;  %2437 = vst.msk [vmem:[%s4148_s28 + $0x388] sm:$0xff] %vm343_vm0, %v2317_v10 }
 0x2be   : > { %v2197_v27 = vpop.permute.xlu1 %2196 }
 0x2bf   : > { %v2320_v38 = vadd.f32 %v2197_v27, %v1840_v51  ;;  %v2321_v58 = vadd.f32 %v2197_v27, %v1841_v5 }
 0x2c1   : > { %2440 = vst [vmem:[%s4148_s28 + $0x3a0] sm:$0xff] %v2320_v38  ;;  %2441 = vst.msk [vmem:[%s4148_s28 + $0x3a8] sm:$0xff] %vm343_vm0, %v2321_v58 }
 0x2c2 PF: > { %s13_s12 = sadd.s32 1, %s2692_s12  }
 0x2c3   : > { %p10_p4 = scmp.ge.s32.totalorder %s13_s12, 4  }
 0x2c5   :  { %12 = sbr.rel (!%p10_p4) target bundleno = 1 (0x1), region = 68 }

</bundles_post_ra>
